<compile_context>
chip_gen: v7x
topology: tpu7x:2x2x1
jax: 0.10.0
libtpu: 0.0.40
codegen_flags: <defaults>
</compile_context>

<pallas_src>
import jax
import jax.numpy as jnp
from jax.experimental import pallas as pl
from jax.experimental.pallas import tpu as pltpu


# ------------------------- problem sizes -------------------------
BATCH = 1024                  # many environments per call (perf review item #1)
NUM_OBS = 30
NUM_CRITIC_OBS = 48
NUM_ACTIONS = 8
NUM_ENCODER_OBS = 90          # e.g. a history of 3 x 30 observations
LATENT_DIM = 16
HIDDEN = 64                   # encoder/actor/critic hidden dims = [64, 64]

LANE = 128
SUB = 8
M_TILE = 256                  # batch rows per grid step (multiple of 256 for v6e/v7x MXU)


def _ceil_to(x, m):
    return ((x + m - 1) // m) * m


ENC_P = _ceil_to(NUM_ENCODER_OBS, LANE)    # 128
COBS_P = _ceil_to(NUM_CRITIC_OBS, LANE)    # 128
OBS_P = _ceil_to(NUM_OBS, LANE)            # 128
HID_P = _ceil_to(HIDDEN, LANE)             # 128
ACT_P = _ceil_to(NUM_ACTIONS, LANE)        # 128
IN_LANES = 3 * LANE                        # [obs_hist | critic_obs | obs]
OUT_LANES = 2 * LANE                       # [mean | latent(0:16)+value(16)]


# ----------------------------- Pallas kernel ---------------------------------
def actor_critic_kernel(
    x_ref,                    # (M_TILE, 3*LANE) bf16: [obs_hist | critic_obs | obs]
    w1_ec, b1_ec, w2_ec, b2_ec, w3_ec, b3_ec,   # fused enc/critic block-diag params
    wa1, ba1, wa2, ba2, wa3, ba3,               # actor params (layer-1 stacked)
    out_ref,                  # (M_TILE, 2*LANE) f32: [mean | latent+value]
):
    def elu(x):
        # ELU(alpha=1.0), matches torch.nn.ELU default.  exp(x)-1 instead of expm1:
        # negligible precision delta vs the bf16 matmul error; keeps lowering simple.
        return jnp.where(x > 0, x, jnp.exp(x) - 1.0)

    def dot(x_bf16, w_ref):
        # bf16 MXU matmul, f32 accumulation
        return jnp.dot(x_bf16, w_ref[...], preferred_element_type=jnp.float32)

    x = x_ref[...]
    x_ec = x[:, : 2 * LANE]          # encoder input | critic input
    obs = x[:, 2 * LANE:]            # actor observation block

    # ---- fused encoder + critic: 3 block-diagonal matmuls ----
    h = elu(dot(x_ec, w1_ec) + b1_ec[...]).astype(jnp.bfloat16)
    h = elu(dot(h, w2_ec) + b2_ec[...]).astype(jnp.bfloat16)
    # single 128-lane block: latent in cols 0:16, critic value in col 16, rest exactly 0
    lat_val = dot(h, w3_ec) + b3_ec[...]

    # ---- actor: concat(obs, latent-block) -> single K=256 first-layer matmul ----
    # (wa1 rows 128:144 carry the latent; row 144 -- the value lane -- is zero.)
    xa = jnp.concatenate([obs, lat_val.astype(jnp.bfloat16)], axis=-1)
    a = elu(dot(xa, wa1) + ba1[...]).astype(jnp.bfloat16)
    a = elu(dot(a, wa2) + ba2[...]).astype(jnp.bfloat16)
    mean = dot(a, wa3) + ba3[...]

    # ---- single lane-dense output slab ----
    out_ref[...] = jnp.concatenate([mean, lat_val], axis=-1)


# ----------------------------- wrapper ---------------------------------------
PARAM_ORDER = ["w1_ec", "b1_ec", "w2_ec", "b2_ec", "w3_ec", "b3_ec",
               "wa1", "ba1", "wa2", "ba2", "wa3", "ba3"]


def pack_inputs(obs, obs_hist, critic_obs):
    """Build the lane-dense bf16 input slab.  In a real rollout loop the environment
    buffers would be STORED in this layout; here it is done once outside the hot path."""
    b = obs.shape[0]
    bp = _ceil_to(b, M_TILE)
    x = jnp.zeros((bp, IN_LANES), jnp.float32)
    x = x.at[:b, 0:obs_hist.shape[1]].set(obs_hist)
    x = x.at[:b, LANE:LANE + critic_obs.shape[1]].set(critic_obs)
    x = x.at[:b, 2 * LANE:2 * LANE + obs.shape[1]].set(obs)
    return x.astype(jnp.bfloat16)


def actor_critic_forward(x_packed, packed, batch):
    """Returns (actions_mean, latent, value) — the act_inference + evaluate paths."""
    bp = x_packed.shape[0]
    assert bp % M_TILE == 0
    grid = (bp // M_TILE,)

    params = [packed[k] for k in PARAM_ORDER]

    # activations stream per-tile; weights/biases use a constant index_map so the
    # pipeline keeps them VMEM-resident across grid steps.
    x_spec = pl.BlockSpec((M_TILE, IN_LANES), lambda i: (i, 0))
    param_specs = [pl.BlockSpec(p.shape, lambda i: (0, 0)) for p in params]
    out_spec = pl.BlockSpec((M_TILE, OUT_LANES), lambda i: (i, 0))

    # per-row MACs: ec1 256*256 + ec2 256*256 + ec3 256*128 + a1 256*128 + a2/a3 128*128
    macs_per_row = 2 * (2 * LANE) * (2 * LANE) + 2 * (2 * LANE) * LANE + 2 * LANE * LANE
    weight_bytes = sum(int(p.size) * p.dtype.itemsize for p in params)
    cost = pl.CostEstimate(
        flops=2 * bp * macs_per_row,
        transcendentals=bp * (2 * LANE + 2 * LANE + LANE + LANE),   # ELU exps
        bytes_accessed=int(x_packed.size) * 2 + bp * OUT_LANES * 4 + weight_bytes,
    )

    out = pl.pallas_call(
        actor_critic_kernel,
        out_shape=jax.ShapeDtypeStruct((bp, OUT_LANES), jnp.float32),
        grid_spec=pltpu.PrefetchScalarGridSpec(
            num_scalar_prefetch=0,
            grid=grid,
            in_specs=[x_spec] + param_specs,
            out_specs=out_spec,
        ),
        compiler_params=pltpu.CompilerParams(
            dimension_semantics=("parallel",),
            vmem_limit_bytes=32 * 1024 * 1024,
        ),
        cost_estimate=cost,
    )(x_packed, *params)

    mean = out[:batch, :NUM_ACTIONS]
    latent = out[:batch, LANE:LANE + LATENT_DIM]
    value = out[:batch, LANE + LATENT_DIM:LANE + LATENT_DIM + 1]
    return mean, latent, value


# --------------------------- parameter construction ---------------------------
def make_params(key):
    """Deterministic synthetic parameters: raw (for reference) and packed (for kernel)."""
    def rand_linear(k, d_in, d_out, scale=0.1):
        kw, kb = jax.random.split(k)
        w = scale * jax.random.normal(kw, (d_in, d_out), jnp.float32)
        b = scale * jax.random.normal(kb, (d_out,), jnp.float32)
        return w, b

    def pad_w(w, pin, pout):
        return jnp.zeros((pin, pout), jnp.float32).at[:w.shape[0], :w.shape[1]].set(w)

    def pad_b(b, pout):
        return jnp.zeros((1, pout), jnp.float32).at[0, :b.shape[0]].set(b)

    def bdiag(a, b):
        out = jnp.zeros((a.shape[0] + b.shape[0], a.shape[1] + b.shape[1]), jnp.float32)
        out = out.at[:a.shape[0], :a.shape[1]].set(a)
        out = out.at[a.shape[0]:, a.shape[1]:].set(b)
        return out

    keys = jax.random.split(key, 9)
    we1, be1 = rand_linear(keys[0], NUM_ENCODER_OBS, HIDDEN)
    we2, be2 = rand_linear(keys[1], HIDDEN, HIDDEN)
    we3, be3 = rand_linear(keys[2], HIDDEN, LATENT_DIM)
    wa1, ba1 = rand_linear(keys[3], NUM_OBS + LATENT_DIM, HIDDEN)
    wa2, ba2 = rand_linear(keys[4], HIDDEN, HIDDEN)
    wa3, ba3 = rand_linear(keys[5], HIDDEN, NUM_ACTIONS)
    wc1, bc1 = rand_linear(keys[6], NUM_CRITIC_OBS, HIDDEN)
    wc2, bc2 = rand_linear(keys[7], HIDDEN, HIDDEN)
    wc3, bc3 = rand_linear(keys[8], HIDDEN, 1)

    raw = dict(we1=we1, be1=be1, we2=we2, be2=be2, we3=we3, be3=be3,
               wa1=wa1, ba1=ba1, wa2=wa2, ba2=ba2, wa3=wa3, ba3=ba3,
               wc1=wc1, bc1=bc1, wc2=wc2, bc2=bc2, wc3=wc3, bc3=bc3,
               # std exists in the module but only feeds sampling / log-prob,
               # not the deterministic forward path.
               std=jnp.ones((NUM_ACTIONS,), jnp.float32))

    # third fused layer: encoder latent -> cols 0:16, critic value -> col 16 (one 128 block)
    w3 = jnp.zeros((2 * HID_P, LANE), jnp.float32)
    w3 = w3.at[:HIDDEN, :LATENT_DIM].set(we3)
    w3 = w3.at[HID_P:HID_P + HIDDEN, LATENT_DIM:LATENT_DIM + 1].set(wc3)
    b3 = jnp.zeros((1, LANE), jnp.float32)
    b3 = b3.at[0, :LATENT_DIM].set(be3)
    b3 = b3.at[0, LATENT_DIM].set(bc3[0])

    # actor layer 1 stacked so concat(obs, latent-block) is a single K=256 matmul;
    # latent rows aligned to cols 0:16 of the block, value lane (row 128+16) stays zero.
    wa1s = jnp.zeros((2 * LANE, HID_P), jnp.float32)
    wa1s = wa1s.at[:NUM_OBS, :HIDDEN].set(wa1[:NUM_OBS])
    wa1s = wa1s.at[LANE:LANE + LATENT_DIM, :HIDDEN].set(wa1[NUM_OBS:])

    packed = {
        # fused encoder (left lanes) / critic (right lanes) block-diagonal layers
        "w1_ec": bdiag(pad_w(we1, ENC_P, HID_P), pad_w(wc1, COBS_P, HID_P)).astype(jnp.bfloat16),
        "b1_ec": jnp.concatenate([pad_b(be1, HID_P), pad_b(bc1, HID_P)], axis=1),
        "w2_ec": bdiag(pad_w(we2, HID_P, HID_P), pad_w(wc2, HID_P, HID_P)).astype(jnp.bfloat16),
        "b2_ec": jnp.concatenate([pad_b(be2, HID_P), pad_b(bc2, HID_P)], axis=1),
        "w3_ec": w3.astype(jnp.bfloat16),
        "b3_ec": b3,
        "wa1": wa1s.astype(jnp.bfloat16),
        "ba1": pad_b(ba1, HID_P),
        "wa2": pad_w(wa2, HID_P, HID_P).astype(jnp.bfloat16),
        "ba2": pad_b(ba2, HID_P),
        "wa3": pad_w(wa3, HID_P, ACT_P).astype(jnp.bfloat16),
        "ba3": pad_b(ba3, ACT_P),
    }
    return raw, packed


# ----------------------------- pure-JAX reference ------------------------------
def reference_forward(obs, obs_hist, critic_obs, raw):
    def elu(x):
        return jnp.where(x > 0, x, jnp.exp(x) - 1.0)

    h = elu(obs_hist @ raw["we1"] + raw["be1"])
    h = elu(h @ raw["we2"] + raw["be2"])
    latent = h @ raw["we3"] + raw["be3"]

    a_in = jnp.concatenate([obs, latent], axis=-1)
    a = elu(a_in @ raw["wa1"] + raw["ba1"])
    a = elu(a @ raw["wa2"] + raw["ba2"])
    mean = a @ raw["wa3"] + raw["ba3"]

    v = elu(critic_obs @ raw["wc1"] + raw["bc1"])
    v = elu(v @ raw["wc2"] + raw["bc2"])
    value = v @ raw["wc3"] + raw["bc3"]
    return mean, latent, value


# ----------------------------------- main --------------------------------------
if __name__ == "__main__":
    key = jax.random.PRNGKey(0)
    k_obs, k_hist, k_cobs, k_par = jax.random.split(key, 4)

    observations = jax.random.normal(k_obs, (BATCH, NUM_OBS), jnp.float32)
    observation_history = jax.random.normal(k_hist, (BATCH, NUM_ENCODER_OBS), jnp.float32)
    critic_observations = jax.random.normal(k_cobs, (BATCH, NUM_CRITIC_OBS), jnp.float32)

    raw_params, packed_params = make_params(k_par)

    # input packing done ONCE (stand-in for keeping rollout buffers in this layout)
    x_packed = pack_inputs(observations, observation_history, critic_observations)

    mean, latent, value = actor_critic_forward(x_packed, packed_params, batch=BATCH)
    jax.block_until_ready((mean, latent, value))

    mean_ref, latent_ref, value_ref = reference_forward(
        observations, observation_history, critic_observations, raw_params)

    assert mean.shape == (BATCH, NUM_ACTIONS)
    assert latent.shape == (BATCH, LATENT_DIM)
    assert value.shape == (BATCH, 1)

    # bf16 weights + bf16 streamed activations (intentional, RL-inference precision) vs
    # an all-f32 reference -> absolute-error check sized for 3-layer bf16 MLP error.
    def check(x, x_ref, name, tol=5e-2):
        err = float(jnp.max(jnp.abs(x - x_ref)))
        assert err < tol, f"{name}: max abs err {err} >= {tol}"

    check(mean, mean_ref, "mean")
    check(latent, latent_ref, "latent")
    check(value, value_ref, "value")

    # TODO(synk): Normal-distribution sampling / log_prob / entropy (act,
    # get_actions_log_prob) are stochastic torch.distributions ops outside the
    # deterministic forward path; not kernelized.
    print("KERNEL_OK")
</pallas_src>

<mosaic_0001>
module attributes {stable_mosaic.version = 11 : i64} {
  func.func @actor_critic_kernel(%arg0: i32, %arg1: memref<256x384xbf16, #tpu.memory_space<vmem>>, %arg2: memref<256x256xbf16, #tpu.memory_space<vmem>>, %arg3: memref<1x256xf32, #tpu.memory_space<vmem>>, %arg4: memref<256x256xbf16, #tpu.memory_space<vmem>>, %arg5: memref<1x256xf32, #tpu.memory_space<vmem>>, %arg6: memref<256x128xbf16, #tpu.memory_space<vmem>>, %arg7: memref<1x128xf32, #tpu.memory_space<vmem>>, %arg8: memref<256x128xbf16, #tpu.memory_space<vmem>>, %arg9: memref<1x128xf32, #tpu.memory_space<vmem>>, %arg10: memref<128x128xbf16, #tpu.memory_space<vmem>>, %arg11: memref<1x128xf32, #tpu.memory_space<vmem>>, %arg12: memref<128x128xbf16, #tpu.memory_space<vmem>>, %arg13: memref<1x128xf32, #tpu.memory_space<vmem>>, %arg14: memref<256x256xf32, #tpu.memory_space<vmem>>) attributes {dimension_semantics = [#tpu.dimension_semantics<parallel>], iteration_bounds = array<i64: 4>, scalar_prefetch = 0 : i64, scratch_operands = 0 : i64, tpu.core_type = #tpu.core_type<tc>, window_params = [{transform_indices = @transform_0, window_bounds = array<i64: 256, 384>}, {pipeline_mode = #tpu.pipeline_mode<synchronous>, transform_indices = @transform_1, window_bounds = array<i64: 256, 256>}, {pipeline_mode = #tpu.pipeline_mode<synchronous>, transform_indices = @transform_2, window_bounds = array<i64: 1, 256>}, {pipeline_mode = #tpu.pipeline_mode<synchronous>, transform_indices = @transform_3, window_bounds = array<i64: 256, 256>}, {pipeline_mode = #tpu.pipeline_mode<synchronous>, transform_indices = @transform_4, window_bounds = array<i64: 1, 256>}, {pipeline_mode = #tpu.pipeline_mode<synchronous>, transform_indices = @transform_5, window_bounds = array<i64: 256, 128>}, {pipeline_mode = #tpu.pipeline_mode<synchronous>, transform_indices = @transform_6, window_bounds = array<i64: 1, 128>}, {pipeline_mode = #tpu.pipeline_mode<synchronous>, transform_indices = @transform_7, window_bounds = array<i64: 256, 128>}, {pipeline_mode = #tpu.pipeline_mode<synchronous>, transform_indices = @transform_8, window_bounds = array<i64: 1, 128>}, {pipeline_mode = #tpu.pipeline_mode<synchronous>, transform_indices = @transform_9, window_bounds = array<i64: 128, 128>}, {pipeline_mode = #tpu.pipeline_mode<synchronous>, transform_indices = @transform_10, window_bounds = array<i64: 1, 128>}, {pipeline_mode = #tpu.pipeline_mode<synchronous>, transform_indices = @transform_11, window_bounds = array<i64: 128, 128>}, {pipeline_mode = #tpu.pipeline_mode<synchronous>, transform_indices = @transform_12, window_bounds = array<i64: 1, 128>}, {transform_indices = @transform_13, window_bounds = array<i64: 256, 256>}]} {
    %c0 = arith.constant 0 : index
    %c0_0 = arith.constant 0 : index
    %0 = vector.load %arg1[%c0, %c0_0] : memref<256x384xbf16, #tpu.memory_space<vmem>>, vector<256x384xbf16>
    %1 = vector.extract_strided_slice %0 {offsets = [0, 0], sizes = [256, 256], strides = [1, 1]} : vector<256x384xbf16> to vector<256x256xbf16>
    %2 = vector.extract_strided_slice %0 {offsets = [0, 256], sizes = [256, 128], strides = [1, 1]} : vector<256x384xbf16> to vector<256x128xbf16>
    %c0_1 = arith.constant 0 : index
    %c0_2 = arith.constant 0 : index
    %3 = vector.load %arg2[%c0_1, %c0_2] : memref<256x256xbf16, #tpu.memory_space<vmem>>, vector<256x256xbf16>
    %cst = arith.constant dense<0.000000e+00> : vector<256x256xf32>
    %4 = tpu.matmul %1, %3, %cst {dimension_numbers = #tpu.dot_dimension_numbers<[1], [0], [0], [1], [0, 0, 1, 1], [], []>} : vector<256x256xbf16>, vector<256x256xbf16>, vector<256x256xf32> -> vector<256x256xf32>
    %c0_3 = arith.constant 0 : index
    %c0_4 = arith.constant 0 : index
    %5 = vector.load %arg3[%c0_3, %c0_4] : memref<1x256xf32, #tpu.memory_space<vmem>>, vector<1x256xf32>
    %6 = vector.broadcast %5 : vector<1x256xf32> to vector<256x256xf32>
    %7 = arith.addf %4, %6 : vector<256x256xf32>
    %cst_5 = arith.constant 0.000000e+00 : f32
    %8 = vector.broadcast %cst_5 : f32 to vector<256x256xf32>
    %9 = arith.cmpf ogt, %7, %8 : vector<256x256xf32>
    %10 = math.exp %7 : vector<256x256xf32>
    %cst_6 = arith.constant 1.000000e+00 : f32
    %11 = vector.broadcast %cst_6 : f32 to vector<256x256xf32>
    %12 = arith.subf %10, %11 : vector<256x256xf32>
    %13 = arith.select %9, %7, %12 : vector<256x256xi1>, vector<256x256xf32>
    %14 = arith.truncf %13 : vector<256x256xf32> to vector<256x256xbf16>
    %c0_7 = arith.constant 0 : index
    %c0_8 = arith.constant 0 : index
    %15 = vector.load %arg4[%c0_7, %c0_8] : memref<256x256xbf16, #tpu.memory_space<vmem>>, vector<256x256xbf16>
    %cst_9 = arith.constant dense<0.000000e+00> : vector<256x256xf32>
    %16 = tpu.matmul %14, %15, %cst_9 {dimension_numbers = #tpu.dot_dimension_numbers<[1], [0], [0], [1], [0, 0, 1, 1], [], []>} : vector<256x256xbf16>, vector<256x256xbf16>, vector<256x256xf32> -> vector<256x256xf32>
    %c0_10 = arith.constant 0 : index
    %c0_11 = arith.constant 0 : index
    %17 = vector.load %arg5[%c0_10, %c0_11] : memref<1x256xf32, #tpu.memory_space<vmem>>, vector<1x256xf32>
    %18 = vector.broadcast %17 : vector<1x256xf32> to vector<256x256xf32>
    %19 = arith.addf %16, %18 : vector<256x256xf32>
    %cst_12 = arith.constant 0.000000e+00 : f32
    %20 = vector.broadcast %cst_12 : f32 to vector<256x256xf32>
    %21 = arith.cmpf ogt, %19, %20 : vector<256x256xf32>
    %22 = math.exp %19 : vector<256x256xf32>
    %cst_13 = arith.constant 1.000000e+00 : f32
    %23 = vector.broadcast %cst_13 : f32 to vector<256x256xf32>
    %24 = arith.subf %22, %23 : vector<256x256xf32>
    %25 = arith.select %21, %19, %24 : vector<256x256xi1>, vector<256x256xf32>
    %26 = arith.truncf %25 : vector<256x256xf32> to vector<256x256xbf16>
    %c0_14 = arith.constant 0 : index
    %c0_15 = arith.constant 0 : index
    %27 = vector.load %arg6[%c0_14, %c0_15] : memref<256x128xbf16, #tpu.memory_space<vmem>>, vector<256x128xbf16>
    %cst_16 = arith.constant dense<0.000000e+00> : vector<256x128xf32>
    %28 = tpu.matmul %26, %27, %cst_16 {dimension_numbers = #tpu.dot_dimension_numbers<[1], [0], [0], [1], [0, 0, 1, 1], [], []>} : vector<256x256xbf16>, vector<256x128xbf16>, vector<256x128xf32> -> vector<256x128xf32>
    %c0_17 = arith.constant 0 : index
    %c0_18 = arith.constant 0 : index
    %29 = vector.load %arg7[%c0_17, %c0_18] : memref<1x128xf32, #tpu.memory_space<vmem>>, vector<1x128xf32>
    %30 = vector.broadcast %29 : vector<1x128xf32> to vector<256x128xf32>
    %31 = arith.addf %28, %30 : vector<256x128xf32>
    %32 = arith.truncf %31 : vector<256x128xf32> to vector<256x128xbf16>
    %33 = tpu.concatenate %2, %32 in 1 : vector<256x128xbf16>, vector<256x128xbf16> -> vector<256x256xbf16>
    %c0_19 = arith.constant 0 : index
    %c0_20 = arith.constant 0 : index
    %34 = vector.load %arg8[%c0_19, %c0_20] : memref<256x128xbf16, #tpu.memory_space<vmem>>, vector<256x128xbf16>
    %cst_21 = arith.constant dense<0.000000e+00> : vector<256x128xf32>
    %35 = tpu.matmul %33, %34, %cst_21 {dimension_numbers = #tpu.dot_dimension_numbers<[1], [0], [0], [1], [0, 0, 1, 1], [], []>} : vector<256x256xbf16>, vector<256x128xbf16>, vector<256x128xf32> -> vector<256x128xf32>
    %c0_22 = arith.constant 0 : index
    %c0_23 = arith.constant 0 : index
    %36 = vector.load %arg9[%c0_22, %c0_23] : memref<1x128xf32, #tpu.memory_space<vmem>>, vector<1x128xf32>
    %37 = vector.broadcast %36 : vector<1x128xf32> to vector<256x128xf32>
    %38 = arith.addf %35, %37 : vector<256x128xf32>
    %cst_24 = arith.constant 0.000000e+00 : f32
    %39 = vector.broadcast %cst_24 : f32 to vector<256x128xf32>
    %40 = arith.cmpf ogt, %38, %39 : vector<256x128xf32>
    %41 = math.exp %38 : vector<256x128xf32>
    %cst_25 = arith.constant 1.000000e+00 : f32
    %42 = vector.broadcast %cst_25 : f32 to vector<256x128xf32>
    %43 = arith.subf %41, %42 : vector<256x128xf32>
    %44 = arith.select %40, %38, %43 : vector<256x128xi1>, vector<256x128xf32>
    %45 = arith.truncf %44 : vector<256x128xf32> to vector<256x128xbf16>
    %c0_26 = arith.constant 0 : index
    %c0_27 = arith.constant 0 : index
    %46 = vector.load %arg10[%c0_26, %c0_27] : memref<128x128xbf16, #tpu.memory_space<vmem>>, vector<128x128xbf16>
    %cst_28 = arith.constant dense<0.000000e+00> : vector<256x128xf32>
    %47 = tpu.matmul %45, %46, %cst_28 {dimension_numbers = #tpu.dot_dimension_numbers<[1], [0], [0], [1], [0, 0, 1, 1], [], []>} : vector<256x128xbf16>, vector<128x128xbf16>, vector<256x128xf32> -> vector<256x128xf32>
    %c0_29 = arith.constant 0 : index
    %c0_30 = arith.constant 0 : index
    %48 = vector.load %arg11[%c0_29, %c0_30] : memref<1x128xf32, #tpu.memory_space<vmem>>, vector<1x128xf32>
    %49 = vector.broadcast %48 : vector<1x128xf32> to vector<256x128xf32>
    %50 = arith.addf %47, %49 : vector<256x128xf32>
    %cst_31 = arith.constant 0.000000e+00 : f32
    %51 = vector.broadcast %cst_31 : f32 to vector<256x128xf32>
    %52 = arith.cmpf ogt, %50, %51 : vector<256x128xf32>
    %53 = math.exp %50 : vector<256x128xf32>
    %cst_32 = arith.constant 1.000000e+00 : f32
    %54 = vector.broadcast %cst_32 : f32 to vector<256x128xf32>
    %55 = arith.subf %53, %54 : vector<256x128xf32>
    %56 = arith.select %52, %50, %55 : vector<256x128xi1>, vector<256x128xf32>
    %57 = arith.truncf %56 : vector<256x128xf32> to vector<256x128xbf16>
    %c0_33 = arith.constant 0 : index
    %c0_34 = arith.constant 0 : index
    %58 = vector.load %arg12[%c0_33, %c0_34] : memref<128x128xbf16, #tpu.memory_space<vmem>>, vector<128x128xbf16>
    %cst_35 = arith.constant dense<0.000000e+00> : vector<256x128xf32>
    %59 = tpu.matmul %57, %58, %cst_35 {dimension_numbers = #tpu.dot_dimension_numbers<[1], [0], [0], [1], [0, 0, 1, 1], [], []>} : vector<256x128xbf16>, vector<128x128xbf16>, vector<256x128xf32> -> vector<256x128xf32>
    %c0_36 = arith.constant 0 : index
    %c0_37 = arith.constant 0 : index
    %60 = vector.load %arg13[%c0_36, %c0_37] : memref<1x128xf32, #tpu.memory_space<vmem>>, vector<1x128xf32>
    %61 = vector.broadcast %60 : vector<1x128xf32> to vector<256x128xf32>
    %62 = arith.addf %59, %61 : vector<256x128xf32>
    %63 = tpu.concatenate %62, %31 in 1 : vector<256x128xf32>, vector<256x128xf32> -> vector<256x256xf32>
    %c0_38 = arith.constant 0 : index
    %c0_39 = arith.constant 0 : index
    %64 = vector.load %arg14[%c0_38, %c0_39] : memref<256x256xf32, #tpu.memory_space<vmem>>, vector<256x256xf32>
    tpu.vector_store %arg14[%c0_38, %c0_39], %63 {strides = array<i32>} : memref<256x256xf32, #tpu.memory_space<vmem>>, vector<256x256xf32>,
    return
  }
  func.func @transform_0(%arg0: i32) -> (i32, i32) {
    %c0_i32 = arith.constant 0 : i32
    %c0_i32_0 = arith.constant 0 : i32
    return %arg0, %c0_i32 : i32, i32
  }
  func.func @transform_1(%arg0: i32) -> (i32, i32) {
    %c0_i32 = arith.constant 0 : i32
    %c0_i32_0 = arith.constant 0 : i32
    %c0_i32_1 = arith.constant 0 : i32
    return %c0_i32, %c0_i32_0 : i32, i32
  }
  func.func @transform_2(%arg0: i32) -> (i32, i32) {
    %c0_i32 = arith.constant 0 : i32
    %c0_i32_0 = arith.constant 0 : i32
    %c0_i32_1 = arith.constant 0 : i32
    return %c0_i32, %c0_i32_0 : i32, i32
  }
  func.func @transform_3(%arg0: i32) -> (i32, i32) {
    %c0_i32 = arith.constant 0 : i32
    %c0_i32_0 = arith.constant 0 : i32
    %c0_i32_1 = arith.constant 0 : i32
    return %c0_i32, %c0_i32_0 : i32, i32
  }
  func.func @transform_4(%arg0: i32) -> (i32, i32) {
    %c0_i32 = arith.constant 0 : i32
    %c0_i32_0 = arith.constant 0 : i32
    %c0_i32_1 = arith.constant 0 : i32
    return %c0_i32, %c0_i32_0 : i32, i32
  }
  func.func @transform_5(%arg0: i32) -> (i32, i32) {
    %c0_i32 = arith.constant 0 : i32
    %c0_i32_0 = arith.constant 0 : i32
    %c0_i32_1 = arith.constant 0 : i32
    return %c0_i32, %c0_i32_0 : i32, i32
  }
  func.func @transform_6(%arg0: i32) -> (i32, i32) {
    %c0_i32 = arith.constant 0 : i32
    %c0_i32_0 = arith.constant 0 : i32
    %c0_i32_1 = arith.constant 0 : i32
    return %c0_i32, %c0_i32_0 : i32, i32
  }
  func.func @transform_7(%arg0: i32) -> (i32, i32) {
    %c0_i32 = arith.constant 0 : i32
    %c0_i32_0 = arith.constant 0 : i32
    %c0_i32_1 = arith.constant 0 : i32
    return %c0_i32, %c0_i32_0 : i32, i32
  }
  func.func @transform_8(%arg0: i32) -> (i32, i32) {
    %c0_i32 = arith.constant 0 : i32
    %c0_i32_0 = arith.constant 0 : i32
    %c0_i32_1 = arith.constant 0 : i32
    return %c0_i32, %c0_i32_0 : i32, i32
  }
  func.func @transform_9(%arg0: i32) -> (i32, i32) {
    %c0_i32 = arith.constant 0 : i32
    %c0_i32_0 = arith.constant 0 : i32
    %c0_i32_1 = arith.constant 0 : i32
    return %c0_i32, %c0_i32_0 : i32, i32
  }
  func.func @transform_10(%arg0: i32) -> (i32, i32) {
    %c0_i32 = arith.constant 0 : i32
    %c0_i32_0 = arith.constant 0 : i32
    %c0_i32_1 = arith.constant 0 : i32
    return %c0_i32, %c0_i32_0 : i32, i32
  }
  func.func @transform_11(%arg0: i32) -> (i32, i32) {
    %c0_i32 = arith.constant 0 : i32
    %c0_i32_0 = arith.constant 0 : i32
    %c0_i32_1 = arith.constant 0 : i32
    return %c0_i32, %c0_i32_0 : i32, i32
  }
  func.func @transform_12(%arg0: i32) -> (i32, i32) {
    %c0_i32 = arith.constant 0 : i32
    %c0_i32_0 = arith.constant 0 : i32
    %c0_i32_1 = arith.constant 0 : i32
    return %c0_i32, %c0_i32_0 : i32, i32
  }
  func.func @transform_13(%arg0: i32) -> (i32, i32) {
    %c0_i32 = arith.constant 0 : i32
    %c0_i32_0 = arith.constant 0 : i32
    return %arg0, %c0_i32 : i32, i32
  }
}

</mosaic_0001>

<bundles_post_ra>
// kernel: tpu_custom_call.1
= control target key start
LH: loop header
LB: loop body
LE: loop exit
PB: predicated region body
PF: predicated region fallthrough
CT: control target
= control target key end

     0   :  { %s7233_s0 = inlined_call_operand.hbm [shape: bf16[1024,384], index: 0, kind: input, shape index: {}]   ;;  %s7234_s1 = inlined_call_operand.hbm [shape: bf16[256,256], index: 1, kind: input, shape index: {}]   ;;  %s7235_s2 = inlined_call_operand.vmem [shape: f32[1,256], index: 2, kind: input, shape index: {}]   ;;  %s7236_s3 = inlined_call_operand.hbm [shape: bf16[256,256], index: 3, kind: input, shape index: {}]   ;;  %s7237_s4 = inlined_call_operand.vmem [shape: f32[1,256], index: 4, kind: input, shape index: {}]   ;;  %s7238_s5 = inlined_call_operand.hbm [shape: bf16[256,128], index: 5, kind: input, shape index: {}]   ;;  %s7239_s6 = inlined_call_operand.vmem [shape: f32[1,128], index: 6, kind: input, shape index: {}]   ;;  %s7240_s7 = inlined_call_operand.hbm [shape: bf16[256,128], index: 7, kind: input, shape index: {}]   ;;  %s7241_s8 = inlined_call_operand.vmem [shape: f32[1,128], index: 8, kind: input, shape index: {}]   ;;  %s7242_s9 = inlined_call_operand.hbm [shape: bf16[128,128], index: 9, kind: input, shape index: {}]   ;;  %s7243_s10 = inlined_call_operand.vmem [shape: f32[1,128], index: 10, kind: input, shape index: {}]   ;;  %s7244_s11 = inlined_call_operand.hbm [shape: bf16[128,128], index: 11, kind: input, shape index: {}]   ;;  %s7245_s12 = inlined_call_operand.vmem [shape: f32[1,128], index: 12, kind: input, shape index: {}]   ;;  %s7246_s13 = inlined_call_operand.hbm [shape: f32[1024,256], index: 13, kind: output, shape index: {}]  }
   0x1   :  { %7253 = sst [smem:[#allocation20_spill]] %s7234_s1 }
   0x2   :  { %7254 = sst [smem:[#allocation21_spill]] %s7236_s3 }
   0x3   :  { %7255 = sst [smem:[#allocation22_spill]] %s7239_s6 }
   0x4   :  { %7256 = sst [smem:[#allocation23_spill]] %s7241_s8 }
   0x5   :  { %7257 = sst [smem:[#allocation24_spill]] %s7243_s10 }
   0x6   :  { %7258 = sst [smem:[#allocation25_spill]] %s7245_s12 }
   0x7   :  { %7259 = sst [smem:[#allocation26_spill]] %s7246_s13 }
   0x8   :  { %18 = vsyncpa [#allocation3], 0 }
   0x9   :  { %20 = vsyncpa [#allocation3 + $0x1], 0 }
   0xa   :  { %21 = vsyncpa [#allocation6], 0 }
   0xb   :  { %22 = vsyncpa [#allocation9], 0 }
   0xc   :  { %23 = vsyncpa [#allocation12], 0 }
   0xd   :  { %24 = vsyncpa [#allocation4], 0 }
   0xe   :  { %26 = vsyncpa [#allocation4 + $0x1], 0  ;;  %s5827_s25 = smov 0   ;;  %s5829_s26 = smov 0  }
   0xf   :  { %s5831_s27 = smov 0   ;;  %s5833_s28 = smov 0  }
  0x10 LB: > { %s5741_s29 = smov [#allocation5]   ;;  %s5848_s14 = sadd.s32 4294967295, %s5739_s28   ;;  %s5739_s28 = sphi %s5833_s28, %s7289_s28   ;;  %s5735_s27 = sphi %s5831_s27, %s7288_s27   ;;  %s5731_s26 = sphi %s5829_s26, %s7287_s26   ;;  %s5727_s25 = sphi %s5827_s25, %s7286_s25  }
  0x11   : > { %s353_s30 = sshll.u32 %s5741_s29, 4  ;;  %p4002_p0 = scmp.ge.s32.totalorder %s5739_s28, 1  ;;  %s5853_s30 = int_to_ptr.vmem [resolvable:$true] %s353_s30 }
  0x12   : > { %p7249_p1 = scmp.eq.s32.totalorder %s5848_s14, 0  ;;  %p341_p2 = scmp.lt.s32.totalorder %s5739_s28, 5 }
  0x13   : > { %s5742_s16 = smov [#allocation8]   ;;  %s5743_s19 = smov [#allocation11]  }
  0x14   : > { %p5855_p3 = pnand %p4002_p0, %p341_p2  ;;  %s385_s17 = sshll.u32 %s5742_s16, 4  ;;  %s5867_s17 = int_to_ptr.vmem [resolvable:$true] %s385_s17 }
  0x15   : > { %s5869_s20 = sshll.u32 %s5743_s19, 4  ;;  %s7262_s1 = sld [smem:[#allocation20_spill]]  ;;  %s418_s20 = int_to_ptr.vmem [resolvable:$true] %s5869_s20 }
  0x16   : > { %s7260_s15 = scalar_select %p5855_p3, 1, 0 }
  0x17   : > { %p4784_p4 = pneg %p5855_p3 }
  0x19   : > { %p5863_p5 = pnand %p4784_p4, %p7249_p1 }
  0x1b   : > { %s5463_s23 = scalar_lea.hbm %s7262_s1, 4096  ;;  %p5879_p7 = pneg %p5863_p5 }
  0x1c   : > { %p5464_p6 = scmp.ne.s32.totalorder %s7262_s1, %s5463_s23  ;;  %p5470_p10 = scmp.lt.u32.totalorder %s5463_s23, %s7262_s1 }
  0x1e   : > { %p5466_p8 = pnand %p5879_p7, %p5464_p6 }
  0x20   : > { %p5467_p9 = pneg %p5466_p8 }
  0x22   : > { %p5472_p11 = pnand %p5470_p10, %p5467_p9 }
  0x24   : > { %5475 = shalt.err (!%p5472_p11)
}
  0x25   : > { %s5476_s21 = scalar_lea.vmem %s5853_s30, 4096  ;;  %p5484_p2 = scmp.lt.s32.totalorder %s5853_s30, %s5853_s30 }
  0x26   : > { %p5477_p12 = scmp.ne.s32.totalorder %s5853_s30, %s5476_s21  ;;  %p5485_p4 = scmp.lt.s32.totalorder %s5476_s21, %s5476_s21 }
  0x28   : > { %p5479_p13 = pnand %p5477_p12, %p5879_p7  ;;  %p5486_p6 = por %p5485_p4, %p5484_p2 }
  0x2a   : > { %p5480_p0 = pneg %p5479_p13 }
  0x2c   : > { %p5487_p8 = pnand %p5486_p6, %p5480_p0 }
  0x2e   : > { %5490 = shalt.err (!%p5487_p8)
}
  0x2f   : > { %s7248_s22 = smov 128   ;;  %s7251_s13 = smov 8  }
  0x30   : > { %4787 = dma.hbm_to_vmem [thread:$0]  (!%p5863_p5), %s7262_s1, 4096, %s5853_s30, [#allocation6], %s7248_s22, %s7248_s22, %s7251_s13  }
  0x31   : > { %s5491_s21 = scalar_lea.hbm %s7238_s5, 2048 }
  0x32   : > { %p5492_p9 = scmp.ne.s32.totalorder %s7238_s5, %s5491_s21  ;;  %p5498_p12 = scmp.lt.u32.totalorder %s5491_s21, %s7238_s5 }
  0x34   : > { %p5494_p10 = pnand %p5492_p9, %p5879_p7 }
  0x36   : > { %p5495_p11 = pneg %p5494_p10 }
  0x38   : > { %p5500_p13 = pnand %p5498_p12, %p5495_p11 }
  0x3a   : > { %5503 = shalt.err (!%p5500_p13)
}
  0x3b   : > { %s5504_s30 = scalar_lea.vmem %s5867_s17, 2048  ;;  %p5512_p6 = scmp.lt.s32.totalorder %s5867_s17, %s5867_s17 }
  0x3c   : > { %p5505_p0 = scmp.ne.s32.totalorder %s5867_s17, %s5504_s30  ;;  %p5513_p8 = scmp.lt.s32.totalorder %s5504_s30, %s5504_s30 }
  0x3e   : > { %p5507_p2 = pnand %p5505_p0, %p5879_p7  ;;  %p5514_p9 = por %p5513_p8, %p5512_p6 }
  0x40   : > { %p5508_p4 = pneg %p5507_p2 }
  0x42   : > { %p5515_p10 = pnand %p5514_p9, %p5508_p4 }
  0x44   : > { %5518 = shalt.err (!%p5515_p10)
}
  0x45   : > { %s5746_s10 = smov 64   ;;  %s5747_s6 = smov 4  }
  0x46   : > { %4793 = dma.hbm_to_vmem [thread:$0]  (!%p5863_p5), %s7238_s5, 2048, %s5867_s17, [#allocation9], %s5746_s10, %s5746_s10, %s5747_s6  }
  0x47   : > { %s5519_s29 = scalar_lea.hbm %s7242_s9, 1024 }
  0x48   : > { %p5520_p11 = scmp.ne.s32.totalorder %s7242_s9, %s5519_s29  ;;  %p5526_p0 = scmp.lt.u32.totalorder %s5519_s29, %s7242_s9 }
  0x4a   : > { %p5522_p12 = pnand %p5520_p11, %p5879_p7 }
  0x4c   : > { %p5523_p13 = pneg %p5522_p12 }
  0x4e   : > { %p5528_p2 = pnand %p5526_p0, %p5523_p13 }
  0x50   : > { %5531 = shalt.err (!%p5528_p2)
}
  0x51   : > { %s5532_s8 = scalar_lea.vmem %s418_s20, 1024  ;;  %p5540_p9 = scmp.lt.s32.totalorder %s418_s20, %s418_s20 }
  0x52   : > { %p5533_p4 = scmp.ne.s32.totalorder %s418_s20, %s5532_s8  ;;  %p5541_p10 = scmp.lt.s32.totalorder %s5532_s8, %s5532_s8 }
  0x54   : > { %p5535_p6 = pnand %p5533_p4, %p5879_p7  ;;  %p5542_p1 = por %p5541_p10, %p5540_p9 }
  0x56   : > { %p5536_p8 = pneg %p5535_p6 }
  0x58   : > { %p5543_p3 = pnand %p5542_p1, %p5536_p8 }
  0x5a   : > { %5546 = shalt.err (!%p5543_p3)
}
  0x5b   : > { %4799 = dma.hbm_to_vmem [thread:$0]  (!%p5863_p5), %s7242_s9, 1024, %s418_s20, [#allocation12], %s5746_s10, %s5746_s10, %s5747_s6  }
  0x5c   : > { %s5748_s12 = smov [#allocation7]   ;;  %s5749_s24 = smov [#allocation10]  }
  0x5d   : > { %s369_s23 = sshll.u32 %s5748_s12, 4  ;;  %s401_s29 = sshll.u32 %s5749_s24, 4  ;;  %s370_s23 = int_to_ptr.vmem [resolvable:$true] %s369_s23  ;;  %s402_s29 = int_to_ptr.vmem [resolvable:$true] %s401_s29 }
  0x5e   : > { %s7264_s3 = sld [smem:[#allocation21_spill]] }
  0x64   : > { %s5547_s30 = scalar_lea.hbm %s7264_s3, 4096 }
  0x65   : > { %p5548_p1 = scmp.ne.s32.totalorder %s7264_s3, %s5547_s30  ;;  %p5554_p12 = scmp.lt.u32.totalorder %s5547_s30, %s7264_s3 }
  0x67   : > { %p5550_p3 = pnand %p5548_p1, %p5879_p7 }
  0x69   : > { %p5551_p11 = pneg %p5550_p3 }
  0x6b   : > { %p5556_p13 = pnand %p5554_p12, %p5551_p11 }
  0x6d   : > { %5559 = shalt.err (!%p5556_p13)
}
  0x6e   : > { %s5560_s20 = scalar_lea.vmem %s370_s23, 4096  ;;  %p5568_p6 = scmp.lt.s32.totalorder %s370_s23, %s370_s23 }
  0x6f   : > { %p5561_p0 = scmp.ne.s32.totalorder %s370_s23, %s5560_s20  ;;  %p5569_p8 = scmp.lt.s32.totalorder %s5560_s20, %s5560_s20 }
  0x71   : > { %p5563_p2 = pnand %p5561_p0, %p5879_p7  ;;  %p5570_p9 = por %p5569_p8, %p5568_p6 }
  0x73   : > { %p5564_p4 = pneg %p5563_p2 }
  0x75   : > { %p5571_p10 = pnand %p5570_p9, %p5564_p4 }
  0x77   : > { %5574 = shalt.err (!%p5571_p10)
}
  0x78   : > { %s7265_s13 = smov 8   ;;  %s7266_s22 = smov 128  }
  0x79   : > { %4790 = dma.hbm_to_vmem [thread:$0]  (!%p5863_p5), %s7264_s3, 4096, %s370_s23, [#allocation6], %s7266_s22, %s7266_s22, %s7265_s13  }
  0x7a   : > { %s5575_s21 = scalar_lea.hbm %s7240_s7, 2048 }
  0x7b   : > { %p5576_p1 = scmp.ne.s32.totalorder %s7240_s7, %s5575_s21  ;;  %p5582_p12 = scmp.lt.u32.totalorder %s5575_s21, %s7240_s7 }
  0x7d   : > { %p5578_p3 = pnand %p5576_p1, %p5879_p7 }
  0x7f   : > { %p5579_p11 = pneg %p5578_p3 }
  0x81   : > { %p5584_p13 = pnand %p5582_p12, %p5579_p11 }
  0x83   : > { %5587 = shalt.err (!%p5584_p13)
}
  0x84   : > { %s5588_s1 = scalar_lea.vmem %s402_s29, 2048  ;;  %p5596_p6 = scmp.lt.s32.totalorder %s402_s29, %s402_s29 }
  0x85   : > { %p5589_p0 = scmp.ne.s32.totalorder %s402_s29, %s5588_s1  ;;  %p5597_p8 = scmp.lt.s32.totalorder %s5588_s1, %s5588_s1 }
  0x87   : > { %p5591_p2 = pnand %p5589_p0, %p5879_p7  ;;  %p5598_p9 = por %p5597_p8, %p5596_p6 }
  0x89   : > { %p5592_p4 = pneg %p5591_p2 }
  0x8b   : > { %p5599_p10 = pnand %p5598_p9, %p5592_p4 }
  0x8d   : > { %5602 = shalt.err (!%p5599_p10)
}
  0x8e   : > { %4796 = dma.hbm_to_vmem [thread:$0]  (!%p5863_p5), %s7240_s7, 2048, %s402_s29, [#allocation9], %s5746_s10, %s5746_s10, %s5747_s6  }
  0x8f   : > { %s5750_s22 = smov [#allocation13]   ;;  %s5603_s21 = scalar_lea.hbm %s7244_s11, 1024 }
  0x90   : > { %s433_s12 = sshll.u32 %s5750_s22, 4  ;;  %p5604_p1 = scmp.ne.s32.totalorder %s7244_s11, %s5603_s21  ;;  %s434_s12 = int_to_ptr.vmem [resolvable:$true] %s433_s12 }
  0x91   : > { %p5610_p12 = scmp.lt.u32.totalorder %s5603_s21, %s7244_s11 }
  0x92   : > { %p5606_p3 = pnand %p5604_p1, %p5879_p7 }
  0x94   : > { %p5607_p11 = pneg %p5606_p3 }
  0x96   : > { %p5612_p13 = pnand %p5610_p12, %p5607_p11 }
  0x98   : > { %5615 = shalt.err (!%p5612_p13)
}
  0x99   : > { %s5616_s29 = scalar_lea.vmem %s434_s12, 1024  ;;  %p5624_p6 = scmp.lt.s32.totalorder %s434_s12, %s434_s12 }
  0x9a   : > { %p5617_p0 = scmp.ne.s32.totalorder %s434_s12, %s5616_s29  ;;  %p5625_p8 = scmp.lt.s32.totalorder %s5616_s29, %s5616_s29 }
  0x9c   : > { %p5619_p2 = pnand %p5617_p0, %p5879_p7  ;;  %p5626_p9 = por %p5625_p8, %p5624_p6 }
  0x9e   : > { %p5620_p4 = pneg %p5619_p2 }
  0xa0   : > { %p5627_p10 = pnand %p5626_p9, %p5620_p4 }
  0xa2   : > { %5630 = shalt.err (!%p5627_p10)
}
  0xa3   : > { %4802 = dma.hbm_to_vmem [thread:$0]  (!%p5863_p5), %s7244_s11, 1024, %s434_s12, [#allocation12], %s5746_s10, %s5746_s10, %s5747_s6  }
  0xa4   : > { %s4001_s18 = sadd.s32 4294967294, %s5739_s28   ;;  %s6016_s16 = sadd.s32 1, %s5739_s28  }
  0xa5   : > { %s36_s13 = ssub.s32 %s5739_s28, %s6016_s16  ;;  %s39_s22 = sadd.s32 1, %s5735_s27 }
  0xa6   : > { %p37_p7 = scmp.eq.s32.totalorder %s36_s13, 0  ;;  %p46_p1 = scmp.ne.s32.totalorder %s5735_s27, %s5731_s26 }
  0xa7   : > { %p47_p3 = scmp.eq.s32.totalorder %s5739_s28, 0  ;;  %p52_p11 = scmp.ne.s32.totalorder %s5731_s26, %s5727_s25 }
  0xa8   : > { %s6027_s24 = scalar_select %p37_p7, %s5735_s27, %s39_s22  }
  0xa9   : > { %p48_p12 = por %p47_p3, %p46_p1  ;;  %p7267_p13 = scmp.eq.s32.totalorder %s5848_s14, 0 }
  0xaa   : > { %p328_p5 = scmp.eq.s32.totalorder %s5848_s14, 3  ;;  %p334_p2 = scmp.eq.s32.totalorder %s4001_s18, 3 }
  0xab   : > { %p6031_p0 = por %p7267_p13, %p52_p11  ;;  %p4817_p4 = scmp.lt.s32.totalorder %s5739_s28, 4 }
  0xac   : > { %s450_s10 = sand.u32 1, %s5735_s27   ;;  %p6038_p6 = por %p328_p5, %p46_p1 }
  0xad   : > { %p6042_p8 = por %p334_p2, %p52_p11  ;;  %s4753_s21 = smul.u32 384, %s450_s10 }
  0xae   : > { %s7269_s6 = scalar_select %p6038_p6, 1, 0 }
  0xaf   : > { %s7270_s12 = scalar_select %p6042_p8, 1, 0 }
  0xb0   : > { %s4754_s30 = smul.u32 6144, %s5739_s28  ;;  %p6047_p9 = pnand %p4817_p4, %p48_p12 }
  0xb1   : > { %s454_s1 = scalar_lea.vmem [#allocation2], %s4753_s21  ;;  %s6058_s18 = scalar_lea.sflag [#allocation3], %s450_s10 }
  0xb2   : > { %s6054_s29 = scalar_lea.hbm %s7233_s0, %s4754_s30  ;;  %s462_s23 = sshll.u32 %s454_s1, 4  ;;  %s6056_s23 = int_to_ptr.vmem [resolvable:$true] %s462_s23 }
  0xb3   : > { %s5631_s13 = scalar_lea.hbm %s6054_s29, 6144  ;;  %p5633_p7 = pneg %p6047_p9 }
  0xb4   : > { %p5632_p10 = scmp.ne.s32.totalorder %s6054_s29, %s5631_s13  ;;  %s5636_s17 = scalar_lea.hbm %s7233_s0, 24576 }
  0xb5   : > { %p5637_p11 = scmp.lt.u32.totalorder %s6054_s29, %s7233_s0  ;;  %p5638_p12 = scmp.lt.u32.totalorder %s5636_s17, %s5631_s13 }
  0xb6   : > { %p5634_p1 = pnand %p5633_p7, %p5632_p10  ;;  %p5640_p5 = scmp.lt.u32.totalorder %s5631_s13, %s6054_s29 }
  0xb7   : > { %p5639_p13 = por %p5638_p12, %p5637_p11 }
  0xb8   : > { %p5635_p3 = pneg %p5634_p1 }
  0xb9   : > { %p5641_p2 = por %p5640_p5, %p5639_p13 }
  0xbb   : > { %p5642_p4 = pnand %p5641_p2, %p5635_p3 }
  0xbd   : > { %5645 = shalt.err (!%p5642_p4)
}
  0xbe   : > { %s5646_s10 = scalar_lea.vmem %s6056_s23, 6144  ;;  %s5751_s21 = smov [#allocation2]  }
  0xbf   : > { %p5647_p10 = scmp.ne.s32.totalorder %s6056_s23, %s5646_s10  ;;  %s5651_s1 = sshll.u32 %s5751_s21, 4  ;;  %s5652_s1 = int_to_ptr.vmem [resolvable:$false] %s5651_s1 }
  0xc0   : > { %s5653_s3 = scalar_lea.vmem %s5652_s1, 12288  ;;  %p5654_p6 = scmp.lt.s32.totalorder %s6056_s23, %s5652_s1 }
  0xc1   : > { %p5649_p1 = pnand %p5647_p10, %p5633_p7  ;;  %p5655_p11 = scmp.lt.s32.totalorder %s5653_s3, %s5646_s10 }
  0xc3   : > { %p5650_p8 = pneg %p5649_p1  ;;  %p5656_p12 = por %p5655_p11, %p5654_p6 }
  0xc5   : > { %p5657_p13 = pnand %p5656_p12, %p5650_p8 }
  0xc7   : > { %5660 = shalt.err (!%p5657_p13)
}
  0xc8   : > { %s5752_s13 = smov 192   ;;  %s5753_s22 = smov 12  }
  0xc9   : > { %4806 = dma.hbm_to_vmem [thread:$0]  (!%p6047_p9), %s6054_s29, 6144, %s6056_s23, %s6058_s18, %s5752_s13, %s5752_s13, %s5753_s22  }
  0xca   : > { %p7272_p7 = scmp.ne.s32.totalorder %s7260_s15, 0 }
  0xcb   : > { %s6089_s30 = sand.u32 (!%p7272_p7), 1, %s5731_s26  }
  0xcc   : > { %474 = sbr.rel (%p7272_p7) target bundleno = 1806 (0x70e), region = 72  ;;  %s477_s20 = scalar_lea.sflag (!%p7272_p7), [#allocation3], %s6089_s30 }
  0xcd   : > { %s4755_s17 = smul.u32 (!%p7272_p7), 384, %s6089_s30 }
  0xcf   : > { %s6093_s10 = scalar_lea.vmem (!%p7272_p7), [#allocation2], %s4755_s17 }
  0xd3   : > { %5706 = dma.done.wait (%p6031_p0), %s477_s20, 6144  }
  0xd4   : > { %5708 = vsyncadd (%p6031_p0), %s477_s20, 4294961152  ;;  %p7273_p6 = scmp.eq.s32.totalorder %s5848_s14, 0 }
  0xd6   : > { %5710 = dma.done.wait (%p7273_p6), [#allocation6], 8192   ;;  %p7274_p8 = pmov %p7273_p6 }
  0xd7   : > { %p7275_p9 = pmov %p7273_p6 }
  0xd8   : > { %5712 = vsyncadd (%p7274_p8), [#allocation6], 4294959104 }
  0xd9   : > { %5714 = dma.done.wait (%p7275_p9), [#allocation9], 4096   ;;  %p7276_p3 = pmov %p7273_p6 }
  0xdb   : > { %5716 = vsyncadd (%p7276_p3), [#allocation9], 4294963200  ;;  %p7277_p5 = pmov %p7276_p3 }
  0xdc   : > { %p7278_p2 = pmov %p7276_p3 }
  0xdd   : > { %5718 = dma.done.wait (%p7277_p5), [#allocation12], 2048  }
  0xde   : > { %5720 = vsyncadd (%p7278_p2), [#allocation12], 4294965248  ;;  %v4871_v0 = vld [vmem:[#allocation5 + $0x4] ss:$8 sps:$4 sm:$0xff]   ;;  %v4873_v1 = vld [vmem:[#allocation5] ss:$8 sps:$4 sm:$0xff]  }
  0xdf   : > { %978 = vmatprep.subr.bf16.mxu0 %v4871_v0  ;;  %v4874_v2 = vld [vmem:[#allocation5 + $0x14] ss:$8 sps:$4 sm:$0xff]   ;;  %v4876_v3 = vld [vmem:[#allocation5 + $0x10] ss:$8 sps:$4 sm:$0xff]   ;;  %v4877_v4 = vld [vmem:[#allocation5 + $0x24] ss:$8 sps:$4 sm:$0xff]  }
  0xe0   : > { %979 = vmatpush1.bf16.msra.mxu0 %v4873_v1  ;;  %v4879_v5 = vld [vmem:[#allocation5 + $0x20] ss:$8 sps:$4 sm:$0xff]   ;;  %v4880_v6 = vld [vmem:[#allocation5 + $0x34] ss:$8 sps:$4 sm:$0xff]   ;;  %v4882_v7 = vld [vmem:[#allocation5 + $0x30] ss:$8 sps:$4 sm:$0xff]  }
  0xe1   : > { %980 = vmatprep.subr.bf16.mxu0 %v4874_v2  ;;  %v4883_v8 = vld [vmem:[#allocation5 + $0x44] ss:$8 sps:$4 sm:$0xff]   ;;  %v4885_v9 = vld [vmem:[#allocation5 + $0x40] ss:$8 sps:$4 sm:$0xff]   ;;  %v4886_v10 = vld [vmem:[#allocation5 + $0x54] ss:$8 sps:$4 sm:$0xff]  }
  0xe2   : > { %v4888_v11 = vld [vmem:[#allocation5 + $0x50] ss:$8 sps:$4 sm:$0xff]   ;;  %v4889_v12 = vld [vmem:[#allocation5 + $0x64] ss:$8 sps:$4 sm:$0xff]   ;;  %v4891_v14 = vld [vmem:[#allocation5 + $0x60] ss:$8 sps:$4 sm:$0xff]  }
  0xe3   : > { %v4921_v13 = vld [vmem:[%s6093_s10 + $0x4] ss:$12 sps:$4 sm:$0xff]   ;;  %v4892_v15 = vld [vmem:[#allocation5 + $0x74] ss:$8 sps:$4 sm:$0xff]   ;;  %v4897_v18 = vld [vmem:[#allocation5 + $0x80] ss:$8 sps:$4 sm:$0xff]  }
  0xe4   : > { %981 = vmatpush1.bf16.msra.mxu0 %v4876_v3  ;;  %1010 = vmatprep.mubr.bf16.mxu0 %v4921_v13  ;;  %v4894_v16 = vld [vmem:[#allocation5 + $0x70] ss:$8 sps:$4 sm:$0xff]   ;;  %v4895_v17 = vld [vmem:[#allocation5 + $0x84] ss:$8 sps:$4 sm:$0xff]   ;;  %v4898_v19 = vld [vmem:[#allocation5 + $0x94] ss:$8 sps:$4 sm:$0xff]  }
  0xe5   : > { %982 = vmatprep.subr.bf16.mxu0 %v4877_v4  ;;  %v4900_v20 = vld [vmem:[#allocation5 + $0x90] ss:$8 sps:$4 sm:$0xff]   ;;  %v4901_v21 = vld [vmem:[#allocation5 + $0xa4] ss:$8 sps:$4 sm:$0xff]   ;;  %v4903_v22 = vld [vmem:[#allocation5 + $0xa0] ss:$8 sps:$4 sm:$0xff]  }
  0xe6   : > { %v4904_v23 = vld [vmem:[#allocation5 + $0xb4] ss:$8 sps:$4 sm:$0xff]   ;;  %v4906_v24 = vld [vmem:[#allocation5 + $0xb0] ss:$8 sps:$4 sm:$0xff]   ;;  %v4907_v25 = vld [vmem:[#allocation5 + $0xc4] ss:$8 sps:$4 sm:$0xff]  }
  0xe7   : > { %v4909_v26 = vld [vmem:[#allocation5 + $0xc0] ss:$8 sps:$4 sm:$0xff]   ;;  %v4910_v27 = vld [vmem:[#allocation5 + $0xd4] ss:$8 sps:$4 sm:$0xff]   ;;  %v4912_v28 = vld [vmem:[#allocation5 + $0xd0] ss:$8 sps:$4 sm:$0xff]  }
  0xe8   : > { %983 = vmatpush1.bf16.msra.mxu0 %v4879_v5  ;;  %v4913_v29 = vld [vmem:[#allocation5 + $0xe4] ss:$8 sps:$4 sm:$0xff]   ;;  %v4915_v30 = vld [vmem:[#allocation5 + $0xe0] ss:$8 sps:$4 sm:$0xff]   ;;  %v4916_v31 = vld [vmem:[#allocation5 + $0xf4] ss:$8 sps:$4 sm:$0xff]  }
  0xe9   : > { %984 = vmatprep.subr.bf16.mxu0 %v4880_v6  ;;  %v4967_v32 = vld [vmem:[#allocation7 + $0x4] ss:$8 sps:$4 sm:$0xff]   ;;  %v4969_v33 = vld [vmem:[#allocation7] ss:$8 sps:$4 sm:$0xff]   ;;  %v4970_v34 = vld [vmem:[#allocation7 + $0x14] ss:$8 sps:$4 sm:$0xff]  }
  0xea   : > { %v4918_v35 = vld [vmem:[#allocation5 + $0xf0] ss:$8 sps:$4 sm:$0xff]   ;;  %1727 = vmatprep.subr.bf16.mxu1 %v4967_v32  ;;  %v4919_v37 = vld [vmem:[%s6093_s10] ss:$12 sps:$4 sm:$0xff]   ;;  %v4922_v39 = vld [vmem:[%s6093_s10 + $0x1c] ss:$12 sps:$4 sm:$0xff]   ;;  %v648_v32 = vlaneseq }
  0xeb   : > { %1728 = vmatpush1.bf16.msra.mxu1 %v4969_v33  ;;  %v4972_v36 = vld [vmem:[#allocation7 + $0x10] ss:$8 sps:$4 sm:$0xff]   ;;  %v4973_v38 = vld [vmem:[#allocation7 + $0x24] ss:$8 sps:$4 sm:$0xff]   ;;  %v4975_v40 = vld [vmem:[#allocation7 + $0x20] ss:$8 sps:$4 sm:$0xff]  }
  0xec   : > { %985 = vmatpush1.bf16.msra.mxu0 %v4882_v7  ;;  %1729 = vmatprep.subr.bf16.mxu1 %v4970_v34  ;;  %v4976_v41 = vld [vmem:[#allocation7 + $0x34] ss:$8 sps:$4 sm:$0xff]   ;;  %v4978_v42 = vld [vmem:[#allocation7 + $0x30] ss:$8 sps:$4 sm:$0xff]   ;;  %v4979_v44 = vld [vmem:[#allocation7 + $0x44] ss:$8 sps:$4 sm:$0xff]  }
  0xed   : > { %986 = vmatprep.subr.bf16.mxu0 %v4883_v8  ;;  %v4924_v43 = vld [vmem:[%s6093_s10 + $0x18] ss:$12 sps:$4 sm:$0xff]   ;;  %v4925_v45 = vld [vmem:[%s6093_s10 + $0x34] ss:$12 sps:$4 sm:$0xff]   ;;  %v4927_v49 = vld [vmem:[%s6093_s10 + $0x30] ss:$12 sps:$4 sm:$0xff]  }
  0xee   : > { %v4981_v46 = vld [vmem:[#allocation7 + $0x40] ss:$8 sps:$4 sm:$0xff]   ;;  %v4982_v47 = vld [vmem:[#allocation7 + $0x54] ss:$8 sps:$4 sm:$0xff]   ;;  %v4984_v48 = vld [vmem:[#allocation7 + $0x50] ss:$8 sps:$4 sm:$0xff]  }
  0xef   : > { %1730 = vmatpush1.bf16.msra.mxu1 %v4972_v36  ;;  %v4985_v50 = vld [vmem:[#allocation7 + $0x64] ss:$8 sps:$4 sm:$0xff]   ;;  %v4987_v52 = vld [vmem:[#allocation7 + $0x60] ss:$8 sps:$4 sm:$0xff]   ;;  %v4988_v53 = vld [vmem:[#allocation7 + $0x74] ss:$8 sps:$4 sm:$0xff]  }
  0xf0   : > { %987 = vmatpush1.bf16.msra.mxu0 %v4885_v9  ;;  %1731 = vmatprep.subr.bf16.mxu1 %v4973_v38  ;;  %v4928_v51 = vld [vmem:[%s6093_s10 + $0x4c] ss:$12 sps:$4 sm:$0xff]   ;;  %v4930_v55 = vld [vmem:[%s6093_s10 + $0x48] ss:$12 sps:$4 sm:$0xff]   ;;  %v4931_v57 = vld [vmem:[%s6093_s10 + $0x64] ss:$12 sps:$4 sm:$0xff]  }
  0xf1   : > { %988 = vmatprep.subr.bf16.mxu0 %v4886_v10  ;;  %v4990_v54 = vld [vmem:[#allocation7 + $0x70] ss:$8 sps:$4 sm:$0xff]   ;;  %v4991_v56 = vld [vmem:[#allocation7 + $0x84] ss:$8 sps:$4 sm:$0xff]   ;;  %v4993_v58 = vld [vmem:[#allocation7 + $0x80] ss:$8 sps:$4 sm:$0xff]  }
  0xf2   : > { %v4994_v59 = vld [vmem:[#allocation7 + $0x94] ss:$8 sps:$4 sm:$0xff]   ;;  %v4996_v60 = vld [vmem:[#allocation7 + $0x90] ss:$8 sps:$4 sm:$0xff]   ;;  %v4933_v61 = vld [vmem:[%s6093_s10 + $0x60] ss:$12 sps:$4 sm:$0xff]  }
  0xf3   : > { %1732 = vmatpush1.bf16.msra.mxu1 %v4975_v40  ;;  %v4934_v62 = vld [vmem:[%s6093_s10 + $0x7c] ss:$12 sps:$4 sm:$0xff]   ;;  %v4936_v63 = vld [vmem:[%s6093_s10 + $0x78] ss:$12 sps:$4 sm:$0xff]   ;;  %v4937_v0 = vld [vmem:[%s6093_s10 + $0x94] ss:$12 sps:$4 sm:$0xff]  }
  0xf4   : > { %989 = vmatpush1.bf16.msra.mxu0 %v4888_v11  ;;  %1733 = vmatprep.subr.bf16.mxu1 %v4976_v41  ;;  %v4939_v1 = vld [vmem:[%s6093_s10 + $0x90] ss:$12 sps:$4 sm:$0xff]   ;;  %v4940_v2 = vld [vmem:[%s6093_s10 + $0xac] ss:$12 sps:$4 sm:$0xff]   ;;  %v4942_v3 = vld [vmem:[%s6093_s10 + $0xa8] ss:$12 sps:$4 sm:$0xff]  }
  0xf5   : > { %990 = vmatprep.subr.bf16.mxu0 %v4889_v12  ;;  %v4943_v4 = vld [vmem:[%s6093_s10 + $0xc4] ss:$12 sps:$4 sm:$0xff]   ;;  %v4945_v5 = vld [vmem:[%s6093_s10 + $0xc0] ss:$12 sps:$4 sm:$0xff]   ;;  %v4946_v6 = vld [vmem:[%s6093_s10 + $0xdc] ss:$12 sps:$4 sm:$0xff]  }
  0xf6   : > { %v4948_v7 = vld [vmem:[%s6093_s10 + $0xd8] ss:$12 sps:$4 sm:$0xff]   ;;  %v4949_v8 = vld [vmem:[%s6093_s10 + $0xf4] ss:$12 sps:$4 sm:$0xff]   ;;  %v4951_v9 = vld [vmem:[%s6093_s10 + $0xf0] ss:$12 sps:$4 sm:$0xff]  }
  0xf7   : > { %1734 = vmatpush1.bf16.msra.mxu1 %v4978_v42  ;;  %v4952_v10 = vld [vmem:[%s6093_s10 + $0x10c] ss:$12 sps:$4 sm:$0xff]   ;;  %v4999_v12 = vld [vmem:[#allocation7 + $0xa0] ss:$8 sps:$4 sm:$0xff]   ;;  %v6143_v33 = vshrl.u32 %v648_v32, 7  ;;  %s4020_s23 = sshll.u32 %s6089_s30, 9 }
  0xf8   : > { %991 = vmatpush1.bf16.msra.mxu0 %v4891_v14  ;;  %1735 = vmatprep.subr.bf16.mxu1 %v4979_v44  ;;  %v4997_v11 = vld [vmem:[#allocation7 + $0xa4] ss:$8 sps:$4 sm:$0xff]   ;;  %v4954_v13 = vld [vmem:[%s6093_s10 + $0x108] ss:$12 sps:$4 sm:$0xff]   ;;  %s7279_s1 = sld [smem:[#allocation22_spill]]  ;;  %s6953_s3 = scalar_lea.vmem [#allocation14], %s4020_s23 }
  0xf9   : > { %992 = vmatprep.subr.bf16.mxu0 %v4892_v15  ;;  %v4955_v14 = vld [vmem:[%s6093_s10 + $0x124] ss:$12 sps:$4 sm:$0xff]   ;;  %v5000_v15 = vld [vmem:[#allocation7 + $0xb4] ss:$8 sps:$4 sm:$0xff]   ;;  %v650_v34 = vsub.s32 0, %v6143_v33  ;;  %v654_v36 = vsub.s32 1, %v6143_v33 }
  0xfa   : > { %s7280_s17 = sld [smem:[#allocation23_spill]]  ;;  %s7281_s15 = sld [smem:[#allocation24_spill]] }
  0xfb   : > { %1736 = vmatpush1.bf16.msra.mxu1 %v4981_v46  ;;  %s7282_s29 = sld [smem:[#allocation25_spill]]  ;;  %s4384_s23 = sshll.u32 %s5848_s14, 13 }
  0xfc   : > { %993 = vmatpush1.bf16.msra.mxu0 %v4894_v16  ;;  %1737 = vmatprep.subr.bf16.mxu1 %v4982_v47  ;;  %v5002_v16 = vld [vmem:[#allocation7 + $0xb0] ss:$8 sps:$4 sm:$0xff]   ;;  %s3871_s18 = sshll.u32 %s6953_s3, 4  ;;  %s7283_s13 = sld [smem:[#allocation26_spill]]  ;;  %s7186_s18 = int_to_ptr.vmem [resolvable:$true] %s3871_s18 }
  0xfd   : > { %994 = vmatprep.subr.bf16.mxu0 %v4895_v17  ;;  %v5003_v17 = vld [vmem:[#allocation7 + $0xc4] ss:$8 sps:$4 sm:$0xff]   ;;  %s3857_s14 = scalar_lea.sflag [#allocation4], %s6089_s30  ;;  %p7284_p4 = scmp.ne.s32.totalorder %s7269_s6, 0 }
  0xfe   : > { %s5754_s20 = smov [#allocation14]  }
  0xff   : > { %1738 = vmatpush1.bf16.msra.mxu1 %v4984_v48 }
 0x100   : > { %995 = vmatpush1.bf16.msra.mxu0 %v4897_v18  ;;  %1739 = vmatprep.subr.bf16.mxu1 %v4985_v50  ;;  %v5005_v18 = vld [vmem:[#allocation7 + $0xc0] ss:$8 sps:$4 sm:$0xff]  }
 0x101   : > { %996 = vmatprep.subr.bf16.mxu0 %v4898_v19  ;;  %v4957_v19 = vld [vmem:[%s6093_s10 + $0x120] ss:$12 sps:$4 sm:$0xff]  }
 0x102   : > { %s7184_s22 = scalar_lea.hbm %s7283_s13, %s4384_s23 }
 0x103   : > { %1740 = vmatpush1.bf16.msra.mxu1 %v4987_v52 }
 0x104   : > { %997 = vmatpush1.bf16.msra.mxu0 %v4900_v20  ;;  %1741 = vmatprep.subr.bf16.mxu1 %v4988_v53  ;;  %v4958_v20 = vld [vmem:[%s6093_s10 + $0x13c] ss:$12 sps:$4 sm:$0xff]  }
 0x105   : > { %998 = vmatprep.subr.bf16.mxu0 %v4901_v21  ;;  %v5006_v21 = vld [vmem:[#allocation7 + $0xd4] ss:$8 sps:$4 sm:$0xff]  }
 0x107   : > { %1742 = vmatpush1.bf16.msra.mxu1 %v4990_v54 }
 0x108   : > { %999 = vmatpush1.bf16.msra.mxu0 %v4903_v22  ;;  %1743 = vmatprep.subr.bf16.mxu1 %v4991_v56  ;;  %v5008_v22 = vld [vmem:[#allocation7 + $0xd0] ss:$8 sps:$4 sm:$0xff]  }
 0x109   : > { %1000 = vmatprep.subr.bf16.mxu0 %v4904_v23  ;;  %v5009_v23 = vld [vmem:[#allocation7 + $0xe4] ss:$8 sps:$4 sm:$0xff]  }
 0x10b   : > { %1744 = vmatpush1.bf16.msra.mxu1 %v4993_v58 }
 0x10c   : > { %1001 = vmatpush1.bf16.msra.mxu0 %v4906_v24  ;;  %1745 = vmatprep.subr.bf16.mxu1 %v4994_v59  ;;  %v5011_v24 = vld [vmem:[#allocation7 + $0xe0] ss:$8 sps:$4 sm:$0xff]  }
 0x10d   : > { %1002 = vmatprep.subr.bf16.mxu0 %v4907_v25  ;;  %v4960_v25 = vld [vmem:[%s6093_s10 + $0x138] ss:$12 sps:$4 sm:$0xff]  }
 0x10e   : > { %v5015_v59 = vld [vmem:[#allocation8 + $0x40] sm:$0xff]  }
 0x10f   : > { %1746 = vmatpush1.bf16.msra.mxu1 %v4996_v60  ;;  %v5016_v60 = vld [vmem:[#allocation8] sm:$0xff]  }
 0x110   : > { %1003 = vmatpush1.bf16.msra.mxu0 %v4909_v26  ;;  %1747 = vmatprep.subr.bf16.mxu1 %v4997_v11  ;;  %v4961_v26 = vld [vmem:[%s6093_s10 + $0x154] ss:$12 sps:$4 sm:$0xff]  }
 0x111   : > { %1004 = vmatprep.subr.bf16.mxu0 %v4910_v27  ;;  %v5012_v27 = vld [vmem:[#allocation7 + $0xf4] ss:$8 sps:$4 sm:$0xff]  }
 0x113   : > { %1748 = vmatpush1.bf16.msra.mxu1 %v4999_v12  ;;  %v5017_v12 = vld [vmem:[#allocation8 + $0x48] sm:$0xff]  }
 0x114   : > { %1005 = vmatpush1.bf16.msra.mxu0 %v4912_v28  ;;  %1749 = vmatprep.subr.bf16.mxu1 %v5000_v15  ;;  %v5014_v28 = vld [vmem:[#allocation7 + $0xf0] ss:$8 sps:$4 sm:$0xff]  }
 0x115   : > { %1006 = vmatprep.subr.bf16.mxu0 %v4913_v29  ;;  %v4963_v29 = vld [vmem:[%s6093_s10 + $0x150] ss:$12 sps:$4 sm:$0xff]  }
 0x117   : > { %1750 = vmatpush1.bf16.msra.mxu1 %v5002_v16 }
 0x118   : > { %1007 = vmatpush1.bf16.msra.mxu0 %v4915_v30  ;;  %1751 = vmatprep.subr.bf16.mxu1 %v5003_v17  ;;  %v4964_v30 = vld [vmem:[%s6093_s10 + $0x16c] ss:$12 sps:$4 sm:$0xff]  }
 0x119   : > { %1008 = vmatprep.subr.bf16.mxu0 %v4916_v31  ;;  %v4966_v31 = vld [vmem:[%s6093_s10 + $0x168] ss:$12 sps:$4 sm:$0xff]  }
 0x11b   : > { %1752 = vmatpush1.bf16.msra.mxu1 %v5005_v18 }
 0x11c   : > { %1009 = vmatpush1.bf16.msra.mxu0 %v4918_v35  ;;  %1753 = vmatprep.subr.bf16.mxu1 %v5006_v21  ;;  %v646_v35 = vld [vmem:[%s7235_s2] sm:$0x3] }
 0x11d   : > { %v6156_v38 = vrot.slane %v646_v35, %v654_v36  ;;  %4385 = vmatprep.subr.bf16.mxu0 %v5015_v59 }
 0x11f   : > { %1011 = vmatmul.mubr.bf16.vlgmr.msra.gmra.mrb[0].mxu0 %v4919_v37  ;;  %1754 = vmatpush1.bf16.msra.mxu1 %v5008_v22  ;;  %v6152_v37 = vrot.slane %v646_v35, %v650_v34 }
 0x120   : > { %1020 = vmatprep.mubr.bf16.mxu0 %v4922_v39  ;;  %1755 = vmatprep.subr.bf16.mxu1 %v5009_v23 }
 0x121   : > { %4386 = vmatpush3.bf16.msra.mxu0 %v5016_v60 }
 0x122   : > { %4387 = vmatprep.subr.bf16.mxu0 %v5017_v12 }
 0x123   : > { %1756 = vmatpush1.bf16.msra.mxu1 %v5011_v24 }
 0x124   : > { %1757 = vmatprep.subr.bf16.mxu1 %v5012_v27 }
 0x127   : > { %1021 = vmatmul.mubr.bf16.gmra.mrb[4].mxu0 %v4924_v43  ;;  %1758 = vmatpush1.bf16.msra.mxu1 %v5014_v28  ;;  %v5021_v28 = vld [vmem:[#allocation8 + $0x58] sm:$0xff]  }
 0x128   : > { %1030 = vmatprep.mubr.bf16.mxu0 %v4925_v45 }
 0x12f   : > { %1031 = vmatmul.mubr.bf16.gmra.mrb[8].mxu0 %v4927_v49 }
 0x130   : > { %1040 = vmatprep.mubr.bf16.mxu0 %v4928_v51 }
 0x137   : > { %1041 = vmatmul.mubr.bf16.gmra.mrb[12].mxu0 %v4930_v55 }
 0x138   : > { %1050 = vmatprep.mubr.bf16.mxu0 %v4931_v57 }
 0x13f   : > { %1051 = vmatmul.mubr.bf16.gmra.mrb[16].mxu0 %v4933_v61 }
 0x140   : > { %1060 = vmatprep.mubr.bf16.mxu0 %v4934_v62 }
 0x147   : > { %1061 = vmatmul.mubr.bf16.gmra.mrb[20].mxu0 %v4936_v63 }
 0x148   : > { %1070 = vmatprep.mubr.bf16.mxu0 %v4937_v0 }
 0x14f   : > { %1071 = vmatmul.mubr.bf16.gmra.mrb[24].mxu0 %v4939_v1 }
 0x150   : > { %1080 = vmatprep.mubr.bf16.mxu0 %v4940_v2 }
 0x157   : > { %1081 = vmatmul.mubr.bf16.gmra.mrb[28].mxu0 %v4942_v3 }
 0x158   : > { %1090 = vmatprep.mubr.bf16.mxu0 %v4943_v4 }
 0x15f   : > { %1091 = vmatmul.mubr.bf16.gmra.mrb[32].mxu0 %v4945_v5 }
 0x160   : > { %1100 = vmatprep.mubr.bf16.mxu0 %v4946_v6 }
 0x167   : > { %1101 = vmatmul.mubr.bf16.gmra.mrb[36].mxu0 %v4948_v7 }
 0x168   : > { %1110 = vmatprep.mubr.bf16.mxu0 %v4949_v8 }
 0x16f   : > { %1111 = vmatmul.mubr.bf16.gmra.mrb[40].mxu0 %v4951_v9 }
 0x170   : > { %1120 = vmatprep.mubr.bf16.mxu0 %v4952_v10 }
 0x177   : > { %1121 = vmatmul.mubr.bf16.gmra.mrb[44].mxu0 %v4954_v13  ;;  %v5018_v13 = vld [vmem:[#allocation8 + $0x8] sm:$0xff]  }
 0x178   : > { %1130 = vmatprep.mubr.bf16.mxu0 %v4955_v14  ;;  %v5019_v14 = vld [vmem:[#allocation8 + $0x50] sm:$0xff]   ;;  %4388 = vmatpush3.bf16.msra.mxu0 %v5018_v13 }
 0x179   : > { %4389 = vmatprep.subr.bf16.mxu0 %v5019_v14  ;;  %v5026_v14 = vld [vmem:[#allocation8 + $0x28] sm:$0xff]  }
 0x17f   : > { %1131 = vmatmul.mubr.bf16.gmra.mrb[48].mxu0 %v4957_v19 }
 0x180   : > { %1140 = vmatprep.mubr.bf16.mxu0 %v4958_v20 }
 0x187   : > { %1141 = vmatmul.mubr.bf16.gmra.mrb[52].mxu0 %v4960_v25  ;;  %v5020_v25 = vld [vmem:[#allocation8 + $0x10] sm:$0xff]  }
 0x188   : > { %1150 = vmatprep.mubr.bf16.mxu0 %v4961_v26  ;;  %4390 = vmatpush3.bf16.msra.mxu0 %v5020_v25 }
 0x189   : > { %4391 = vmatprep.subr.bf16.mxu0 %v5021_v28 }
 0x18f   : > { %1151 = vmatmul.mubr.bf16.gmra.mrb[56].mxu0 %v4963_v29 }
 0x190   : > { %1160 = vmatprep.mubr.bf16.mxu0 %v4964_v30 }
 0x197   : > { %1161 = vmatmul.mubr.bf16.gmra.mrb[60].mxu0 %v4966_v31 }
 0x1f2   : > { %v1012_v39 = vpop.f32.mrb[0].mxu0 }
 0x1f3   : > { %v6159_v40 = vadd.f32 %v1012_v39, %v6152_v37  ;;  %v1014_v41 = vpop.f32.mrb[1].mxu0 }
 0x1f4   : > { %v1015_v42 = vadd.f32 %v1014_v41, %v6156_v38  ;;  %v1016_v43 = vpop.f32.mrb[2].mxu0 }
 0x1f5   : > { %v1235_v44 = vmul.f32 1.442695, %v6159_v40  ;;  %v6164_v45 = vadd.f32 %v1016_v43, %v6152_v37  ;;  %v1018_v46 = vpop.f32.mrb[3].mxu0  ;;  %vm1171_vm0 = vcmp.gt.f32.partialorder %v6159_v40, 0.0 }
 0x1f6   : > { %v1237_v47 = vmul.f32 1.442695, %v1015_v42  ;;  %v1019_v48 = vadd.f32 %v1018_v46, %v6156_v38  ;;  %vm1172_vm1 = vcmp.gt.f32.partialorder %v1015_v42, 0.0  ;;  %v5022_v46 = vld [vmem:[#allocation8 + $0x18] sm:$0xff]  }
 0x1f7   : > { %5079 = vpow2.f32 %v1235_v44  ;;  %v1239_v49 = vmul.f32 1.442695, %v6164_v45  ;;  %vm1173_vm3 = vcmp.gt.f32.partialorder %v6164_v45, 0.0  ;;  %4392 = vmatpush3.bf16.msra.mxu0 %v5022_v46 }
 0x1f8   : > { %5081 = vpow2.f32 %v1237_v47  ;;  %v1241_v50 = vmul.f32 1.442695, %v1019_v48  ;;  %vm1174_vm2 = vcmp.gt.f32.partialorder %v1019_v48, 0.0 }
 0x1f9   : > { %5083 = vpow2.f32 %v1239_v49  ;;  %v5023_v49 = vld [vmem:[#allocation8 + $0x60] sm:$0xff]  }
 0x1fa   : > { %5085 = vpow2.f32 %v1241_v50  ;;  %v1022_v51 = vpop.f32.mrb[4].mxu0  ;;  %4393 = vmatprep.subr.bf16.mxu0 %v5023_v49 }
 0x1fb   : > { %v6169_v52 = vadd.f32 %v1022_v51, %v6152_v37  ;;  %v1024_v53 = vpop.f32.mrb[5].mxu0 }
 0x1fc   : > { %v6172_v54 = vadd.f32 %v1024_v53, %v6156_v38  ;;  %v1026_v55 = vpop.f32.mrb[6].mxu0 }
 0x1fd   : > { %v1243_v56 = vmul.f32 1.442695, %v6169_v52  ;;  %v6176_v57 = vadd.f32 %v1026_v55, %v6152_v37  ;;  %v1028_v58 = vpop.f32.mrb[7].mxu0  ;;  %vm1175_vm4 = vcmp.gt.f32.partialorder %v6169_v52, 0.0 }
 0x1fe   : > { %v1245_v61 = vmul.f32 1.442695, %v6172_v54  ;;  %v6180_v62 = vadd.f32 %v1028_v58, %v6156_v38  ;;  %vm1176_vm5 = vcmp.gt.f32.partialorder %v6172_v54, 0.0 }
 0x1ff   : > { %5087 = vpow2.f32 %v1243_v56  ;;  %v1247_v63 = vmul.f32 1.442695, %v6176_v57  ;;  %vm1177_vm7 = vcmp.gt.f32.partialorder %v6176_v57, 0.0 }
 0x200   : > { %5089 = vpow2.f32 %v1245_v61  ;;  %v1249_v0 = vmul.f32 1.442695, %v6180_v62  ;;  %vm1178_vm6 = vcmp.gt.f32.partialorder %v6180_v62, 0.0 }
 0x201   : > { %v5080_v1 = vpop.eup %5079  ;;  %5091 = vpow2.f32 %v1247_v63 }
 0x202   : > { %v5082_v2 = vpop.eup %5081  ;;  %5093 = vpow2.f32 %v1249_v0  ;;  %v1032_v3 = vpop.f32.mrb[8].mxu0  ;;  %v4085_v9 = vadd.f32 -1.0, %v5080_v1  ;;  %v5024_v0 = vld [vmem:[#allocation8 + $0x20] sm:$0xff]  }
 0x203   : > { %v5084_v4 = vpop.eup %5083  ;;  %v6185_v5 = vadd.f32 %v1032_v3, %v6152_v37  ;;  %v1034_v6 = vpop.f32.mrb[9].mxu0  ;;  %v4086_v7 = vadd.f32 -1.0, %v5082_v2  ;;  %v5025_v3 = vld [vmem:[#allocation8 + $0x68] sm:$0xff]   ;;  %4394 = vmatpush3.bf16.msra.mxu0 %v5024_v0 }
 0x204   : > { %v5086_v8 = vpop.eup %5085  ;;  %v6189_v10 = vadd.f32 %v1034_v6, %v6156_v38  ;;  %v1036_v11 = vpop.f32.mrb[10].mxu0  ;;  %v4087_v15 = vadd.f32 -1.0, %v5084_v4  ;;  %v1427_v30 = vsel %vm1171_vm0, %v6159_v40, %v4085_v9  ;;  %4395 = vmatprep.subr.bf16.mxu0 %v5025_v3 }
 0x205   : > { %v1251_v16 = vmul.f32 1.442695, %v6185_v5  ;;  %v6193_v17 = vadd.f32 %v1036_v11, %v6152_v37  ;;  %v1038_v18 = vpop.f32.mrb[11].mxu0  ;;  %v4088_v19 = vadd.f32 -1.0, %v5086_v8  ;;  %v1428_v23 = vsel %vm1172_vm1, %v1015_v42, %v4086_v7 }
 0x206   : > { %v1253_v20 = vmul.f32 1.442695, %v6189_v10  ;;  %v6197_v21 = vadd.f32 %v1038_v18, %v6156_v38  ;;  %v1429_v31 = vsel %vm1173_vm3, %v6164_v45, %v4087_v15  ;;  %vm1179_vm8 = vcmp.gt.f32.partialorder %v6185_v5, 0.0  ;;  %v5027_v18 = vld [vmem:[#allocation8 + $0x70] sm:$0xff]  }
 0x207   : > { %5095 = vpow2.f32 %v1251_v16  ;;  %v1255_v22 = vmul.f32 1.442695, %v6193_v17  ;;  %v1430_v24 = vsel %vm1174_vm2, %v1019_v48, %v4088_v19  ;;  %v1491_v39 = vpack.c.bf16 %v1429_v31, %v1427_v30  ;;  %4396 = vmatpush3.bf16.msra.mxu0 %v5026_v14  ;;  %v5028_v30 = vld [vmem:[#allocation8 + $0x30] sm:$0xff]  }
 0x208   : > { %5097 = vpow2.f32 %v1253_v20  ;;  %v1257_v26 = vmul.f32 1.442695, %v6197_v21  ;;  %v1492_v27 = vpack.c.bf16 %v1430_v24, %v1428_v23  ;;  %vm1180_vm9 = vcmp.gt.f32.partialorder %v6189_v10, 0.0  ;;  %4397 = vmatprep.subr.bf16.mxu0 %v5027_v18 }
 0x209   : > { %v5088_v29 = vpop.eup %5087  ;;  %5099 = vpow2.f32 %v1255_v22  ;;  %vm1182_vm10 = vcmp.gt.f32.partialorder %v6197_v21, 0.0  ;;  %vm1181_vm11 = vcmp.gt.f32.partialorder %v6193_v17, 0.0 }
 0x20a   : > { %v5090_v32 = vpop.eup %5089  ;;  %5101 = vpow2.f32 %v1257_v26  ;;  %v1042_v35 = vpop.f32.mrb[12].mxu0  ;;  %1759 = vmatprep.mubr.bf16.mxu1 %v1492_v27  ;;  %v4089_v48 = vadd.f32 -1.0, %v5088_v29 }
 0x20b   : > { %v5092_v41 = vpop.eup %5091  ;;  %v4090_v42 = vadd.f32 -1.0, %v5090_v32  ;;  %v6207_v43 = vadd.f32 %v1042_v35, %v6152_v37  ;;  %v1044_v44 = vpop.f32.mrb[13].mxu0  ;;  %1760 = vmatmul.mubr.bf16.vlgmr.msra.gmra.mrb[0].mxu1 %v1491_v39  ;;  %4398 = vmatpush3.bf16.msra.mxu0 %v5028_v30 }
 0x20c   : > { %v5094_v47 = vpop.eup %5093  ;;  %v6211_v40 = vadd.f32 %v1044_v44, %v6156_v38  ;;  %v1046_v45 = vpop.f32.mrb[14].mxu0  ;;  %v4091_v50 = vadd.f32 -1.0, %v5092_v41  ;;  %v1431_v6 = vsel %vm1175_vm4, %v6169_v52, %v4089_v48 }
 0x20d   : > { %v4092_v51 = vadd.f32 -1.0, %v5094_v47  ;;  %v1259_v53 = vmul.f32 1.442695, %v6207_v43  ;;  %v6215_v55 = vadd.f32 %v1046_v45, %v6152_v37  ;;  %v1048_v56 = vpop.f32.mrb[15].mxu0  ;;  %v1432_v61 = vsel %vm1176_vm5, %v6172_v54, %v4090_v42 }
 0x20e   : > { %v1261_v58 = vmul.f32 1.442695, %v6211_v40  ;;  %v6221_v59 = vadd.f32 %v1048_v56, %v6156_v38  ;;  %v1433_v54 = vsel %vm1177_vm7, %v6176_v57, %v4091_v50  ;;  %vm1183_vm12 = vcmp.gt.f32.partialorder %v6207_v43, 0.0 }
 0x20f   : > { %5103 = vpow2.f32 %v1259_v53  ;;  %v1263_v60 = vmul.f32 1.442695, %v6215_v55  ;;  %v1434_v63 = vsel %vm1178_vm6, %v6180_v62, %v4092_v51  ;;  %v1493_v8 = vpack.c.bf16 %v1433_v54, %v1431_v6 }
 0x210   : > { %5105 = vpow2.f32 %v1261_v58  ;;  %v1265_v1 = vmul.f32 1.442695, %v6221_v59  ;;  %v1494_v2 = vpack.c.bf16 %v1434_v63, %v1432_v61  ;;  %vm1184_vm13 = vcmp.gt.f32.partialorder %v6211_v40, 0.0 }
 0x211   : > { %v5096_v4 = vpop.eup %5095  ;;  %5107 = vpow2.f32 %v1263_v60  ;;  %vm1186_vm14 = vcmp.gt.f32.partialorder %v6221_v59, 0.0  ;;  %vm1185_vm15 = vcmp.gt.f32.partialorder %v6215_v55, 0.0 }
 0x212   : > { %v5098_v7 = vpop.eup %5097  ;;  %5109 = vpow2.f32 %v1265_v1  ;;  %v1052_v62 = vpop.f32.mrb[16].mxu0  ;;  %1769 = vmatprep.mubr.bf16.mxu1 %v1494_v2  ;;  %v4093_v16 = vadd.f32 -1.0, %v5096_v4 }
 0x213   : > { %v5100_v9 = vpop.eup %5099  ;;  %v4094_v11 = vadd.f32 -1.0, %v5098_v7  ;;  %v6233_v12 = vadd.f32 %v1052_v62, %v6152_v37  ;;  %v1054_v13 = vpop.f32.mrb[17].mxu0  ;;  %1770 = vmatmul.mubr.bf16.gmra.mrb[4].mxu1 %v1493_v8 }
 0x214   : > { %v5102_v15 = vpop.eup %5101  ;;  %v6237_v52 = vadd.f32 %v1054_v13, %v6156_v38  ;;  %v1056_v57 = vpop.f32.mrb[18].mxu0  ;;  %v4095_v19 = vadd.f32 -1.0, %v5100_v9  ;;  %v1435_v39 = vsel %vm1179_vm8, %v6185_v5, %v4093_v16 }
 0x215   : > { %v4096_v20 = vadd.f32 -1.0, %v5102_v15  ;;  %v1267_v22 = vmul.f32 1.442695, %v6233_v12  ;;  %v6241_v23 = vadd.f32 %v1056_v57, %v6152_v37  ;;  %v1058_v24 = vpop.f32.mrb[19].mxu0  ;;  %v1436_v28 = vsel %vm1180_vm9, %v6189_v10, %v4094_v11 }
 0x216   : > { %v1269_v25 = vmul.f32 1.442695, %v6237_v52  ;;  %v6247_v26 = vadd.f32 %v1058_v24, %v6156_v38  ;;  %v1437_v41 = vsel %vm1181_vm11, %v6193_v17, %v4095_v19  ;;  %vm1187_vm0 = vcmp.gt.f32.partialorder %v6233_v12, 0.0 }
 0x217   : > { %5111 = vpow2.f32 %v1267_v22  ;;  %v1271_v27 = vmul.f32 1.442695, %v6241_v23  ;;  %v1438_v29 = vsel %vm1182_vm10, %v6197_v21, %v4096_v20  ;;  %v1495_v42 = vpack.c.bf16 %v1437_v41, %v1435_v39 }
 0x218   : > { %5113 = vpow2.f32 %v1269_v25  ;;  %v1273_v31 = vmul.f32 1.442695, %v6247_v26  ;;  %v1496_v32 = vpack.c.bf16 %v1438_v29, %v1436_v28  ;;  %vm1188_vm1 = vcmp.gt.f32.partialorder %v6237_v52, 0.0 }
 0x219   : > { %v5104_v35 = vpop.eup %5103  ;;  %5115 = vpow2.f32 %v1271_v27  ;;  %vm1190_vm2 = vcmp.gt.f32.partialorder %v6247_v26, 0.0  ;;  %vm1189_vm3 = vcmp.gt.f32.partialorder %v6241_v23, 0.0 }
 0x21a   : > { %v5106_v10 = vpop.eup %5105  ;;  %5117 = vpow2.f32 %v1273_v31  ;;  %v1062_v21 = vpop.f32.mrb[20].mxu0  ;;  %1779 = vmatprep.mubr.bf16.mxu1 %v1496_v32  ;;  %v4097_v49 = vadd.f32 -1.0, %v5104_v35 }
 0x21b   : > { %v5108_v44 = vpop.eup %5107  ;;  %v4098_v46 = vadd.f32 -1.0, %v5106_v10  ;;  %v6259_v47 = vadd.f32 %v1062_v21, %v6152_v37  ;;  %v1064_v48 = vpop.f32.mrb[21].mxu0  ;;  %1780 = vmatmul.mubr.bf16.gmra.mrb[8].mxu1 %v1495_v42 }
 0x21c   : > { %v5110_v45 = vpop.eup %5109  ;;  %v6263_v5 = vadd.f32 %v1064_v48, %v6156_v38  ;;  %v1066_v17 = vpop.f32.mrb[22].mxu0  ;;  %v4099_v50 = vadd.f32 -1.0, %v5108_v44  ;;  %v1439_v6 = vsel %vm1183_vm12, %v6207_v43, %v4097_v49 }
 0x21d   : > { %v4100_v51 = vadd.f32 -1.0, %v5110_v45  ;;  %v1275_v53 = vmul.f32 1.442695, %v6259_v47  ;;  %v6267_v56 = vadd.f32 %v1066_v17, %v6152_v37  ;;  %v1068_v58 = vpop.f32.mrb[23].mxu0  ;;  %v1440_v0 = vsel %vm1184_vm13, %v6211_v40, %v4098_v46 }
 0x21e   : > { %v1277_v60 = vmul.f32 1.442695, %v6263_v5  ;;  %v6273_v61 = vadd.f32 %v1068_v58, %v6156_v38  ;;  %v1441_v54 = vsel %vm1185_vm15, %v6215_v55, %v4099_v50  ;;  %vm1191_vm4 = vcmp.gt.f32.partialorder %v6259_v47, 0.0 }
 0x21f   : > { %5119 = vpow2.f32 %v1275_v53  ;;  %v1279_v63 = vmul.f32 1.442695, %v6267_v56  ;;  %v1442_v1 = vsel %vm1186_vm14, %v6221_v59, %v4100_v51  ;;  %v1497_v40 = vpack.c.bf16 %v1441_v54, %v1439_v6 }
 0x220   : > { %5121 = vpow2.f32 %v1277_v60  ;;  %v1281_v2 = vmul.f32 1.442695, %v6273_v61  ;;  %v1498_v3 = vpack.c.bf16 %v1442_v1, %v1440_v0  ;;  %vm1192_vm5 = vcmp.gt.f32.partialorder %v6263_v5, 0.0 }
 0x221   : > { %v5112_v4 = vpop.eup %5111  ;;  %5123 = vpow2.f32 %v1279_v63  ;;  %vm1194_vm6 = vcmp.gt.f32.partialorder %v6273_v61, 0.0  ;;  %vm1193_vm7 = vcmp.gt.f32.partialorder %v6267_v56, 0.0 }
 0x222   : > { %v5114_v7 = vpop.eup %5113  ;;  %5125 = vpow2.f32 %v1281_v2  ;;  %v1072_v62 = vpop.f32.mrb[24].mxu0  ;;  %1789 = vmatprep.mubr.bf16.mxu1 %v1498_v3  ;;  %v4101_v14 = vadd.f32 -1.0, %v5112_v4 }
 0x223   : > { %v5116_v59 = vpop.eup %5115  ;;  %v4102_v8 = vadd.f32 -1.0, %v5114_v7  ;;  %v6285_v9 = vadd.f32 %v1072_v62, %v6152_v37  ;;  %v1074_v11 = vpop.f32.mrb[25].mxu0  ;;  %1790 = vmatmul.mubr.bf16.gmra.mrb[12].mxu1 %v1497_v40 }
 0x224   : > { %v5118_v13 = vpop.eup %5117  ;;  %v6289_v15 = vadd.f32 %v1074_v11, %v6156_v38  ;;  %v1076_v43 = vpop.f32.mrb[26].mxu0  ;;  %v4103_v55 = vadd.f32 -1.0, %v5116_v59  ;;  %v1443_v31 = vsel %vm1187_vm0, %v6233_v12, %v4101_v14 }
 0x225   : > { %v4104_v16 = vadd.f32 -1.0, %v5118_v13  ;;  %v1283_v57 = vmul.f32 1.442695, %v6285_v9  ;;  %v6293_v18 = vadd.f32 %v1076_v43, %v6152_v37  ;;  %v1078_v19 = vpop.f32.mrb[27].mxu0  ;;  %v1444_v25 = vsel %vm1188_vm1, %v6237_v52, %v4102_v8 }
 0x226   : > { %v1285_v20 = vmul.f32 1.442695, %v6289_v15  ;;  %v6299_v22 = vadd.f32 %v1078_v19, %v6156_v38  ;;  %v1445_v32 = vsel %vm1189_vm3, %v6241_v23, %v4103_v55  ;;  %vm1195_vm8 = vcmp.gt.f32.partialorder %v6285_v9, 0.0 }
 0x227   : > { %5127 = vpow2.f32 %v1283_v57  ;;  %v1287_v24 = vmul.f32 1.442695, %v6293_v18  ;;  %v1446_v27 = vsel %vm1190_vm2, %v6247_v26, %v4104_v16  ;;  %v1499_v52 = vpack.c.bf16 %v1445_v32, %v1443_v31 }
 0x228   : > { %5129 = vpow2.f32 %v1285_v20  ;;  %v1289_v28 = vmul.f32 1.442695, %v6299_v22  ;;  %v1500_v29 = vpack.c.bf16 %v1446_v27, %v1444_v25  ;;  %vm1196_vm9 = vcmp.gt.f32.partialorder %v6289_v15, 0.0 }
 0x229   : > { %v5120_v30 = vpop.eup %5119  ;;  %5131 = vpow2.f32 %v1287_v24  ;;  %vm1198_vm10 = vcmp.gt.f32.partialorder %v6299_v22, 0.0  ;;  %vm1197_vm11 = vcmp.gt.f32.partialorder %v6293_v18, 0.0 }
 0x22a   : > { %v5122_v35 = vpop.eup %5121  ;;  %5133 = vpow2.f32 %v1289_v28  ;;  %v1082_v39 = vpop.f32.mrb[28].mxu0  ;;  %1799 = vmatprep.mubr.bf16.mxu1 %v1500_v29  ;;  %v4105_v44 = vadd.f32 -1.0, %v5120_v30 }
 0x22b   : > { %v5124_v26 = vpop.eup %5123  ;;  %v4106_v41 = vadd.f32 -1.0, %v5122_v35  ;;  %v6311_v10 = vadd.f32 %v1082_v39, %v6152_v37  ;;  %v1084_v21 = vpop.f32.mrb[29].mxu0  ;;  %1800 = vmatmul.mubr.bf16.gmra.mrb[16].mxu1 %v1499_v52 }
 0x22c   : > { %v5126_v42 = vpop.eup %5125  ;;  %v6315_v46 = vadd.f32 %v1084_v21, %v6156_v38  ;;  %v1086_v12 = vpop.f32.mrb[30].mxu0  ;;  %v4107_v23 = vadd.f32 -1.0, %v5124_v26  ;;  %v1447_v2 = vsel %vm1191_vm4, %v6259_v47, %v4105_v44 }
 0x22d   : > { %v4108_v48 = vadd.f32 -1.0, %v5126_v42  ;;  %v1291_v45 = vmul.f32 1.442695, %v6311_v10  ;;  %v6319_v49 = vadd.f32 %v1086_v12, %v6152_v37  ;;  %v1088_v17 = vpop.f32.mrb[31].mxu0  ;;  %v1448_v58 = vsel %vm1192_vm5, %v6263_v5, %v4106_v41 }
 0x22e   : > { %v1293_v50 = vmul.f32 1.442695, %v6315_v46  ;;  %v6325_v51 = vadd.f32 %v1088_v17, %v6156_v38  ;;  %v1449_v3 = vsel %vm1193_vm7, %v6267_v56, %v4107_v23  ;;  %vm1199_vm12 = vcmp.gt.f32.partialorder %v6311_v10, 0.0 }
 0x22f   : > { %5135 = vpow2.f32 %v1291_v45  ;;  %v1295_v53 = vmul.f32 1.442695, %v6319_v49  ;;  %v1450_v60 = vsel %vm1194_vm6, %v6273_v61, %v4108_v48  ;;  %v1501_v5 = vpack.c.bf16 %v1449_v3, %v1447_v2 }
 0x230   : > { %5137 = vpow2.f32 %v1293_v50  ;;  %v1297_v63 = vmul.f32 1.442695, %v6325_v51  ;;  %v1502_v0 = vpack.c.bf16 %v1450_v60, %v1448_v58  ;;  %vm1200_vm13 = vcmp.gt.f32.partialorder %v6315_v46, 0.0 }
 0x231   : > { %v5128_v1 = vpop.eup %5127  ;;  %5139 = vpow2.f32 %v1295_v53  ;;  %vm1202_vm14 = vcmp.gt.f32.partialorder %v6325_v51, 0.0  ;;  %vm1201_vm15 = vcmp.gt.f32.partialorder %v6319_v49, 0.0 }
 0x232   : > { %v5130_v4 = vpop.eup %5129  ;;  %5141 = vpow2.f32 %v1297_v63  ;;  %v1092_v6 = vpop.f32.mrb[32].mxu0  ;;  %1809 = vmatprep.mubr.bf16.mxu1 %v1502_v0  ;;  %v4109_v59 = vadd.f32 -1.0, %v5128_v1 }
 0x233   : > { %v5132_v61 = vpop.eup %5131  ;;  %v4110_v54 = vadd.f32 -1.0, %v5130_v4  ;;  %v6337_v7 = vadd.f32 %v1092_v6, %v6152_v37  ;;  %v1094_v62 = vpop.f32.mrb[33].mxu0  ;;  %1810 = vmatmul.mubr.bf16.gmra.mrb[20].mxu1 %v1501_v5 }
 0x234   : > { %v5134_v40 = vpop.eup %5133  ;;  %v6341_v8 = vadd.f32 %v1094_v62, %v6156_v38  ;;  %v1096_v47 = vpop.f32.mrb[34].mxu0  ;;  %v4111_v56 = vadd.f32 -1.0, %v5132_v61  ;;  %v1451_v28 = vsel %vm1195_vm8, %v6285_v9, %v4109_v59 }
 0x235   : > { %v4112_v11 = vadd.f32 -1.0, %v5134_v40  ;;  %v1299_v13 = vmul.f32 1.442695, %v6337_v7  ;;  %v6345_v14 = vadd.f32 %v1096_v47, %v6152_v37  ;;  %v1098_v43 = vpop.f32.mrb[35].mxu0  ;;  %v1452_v19 = vsel %vm1196_vm9, %v6289_v15, %v4110_v54 }
 0x236   : > { %v1301_v55 = vmul.f32 1.442695, %v6341_v8  ;;  %v6351_v16 = vadd.f32 %v1098_v43, %v6156_v38  ;;  %v1453_v29 = vsel %vm1197_vm11, %v6293_v18, %v4111_v56  ;;  %vm1203_vm0 = vcmp.gt.f32.partialorder %v6337_v7, 0.0 }
 0x237   : > { %5143 = vpow2.f32 %v1299_v13  ;;  %v1303_v57 = vmul.f32 1.442695, %v6345_v14  ;;  %v1454_v20 = vsel %vm1198_vm10, %v6299_v22, %v4112_v11  ;;  %v1503_v15 = vpack.c.bf16 %v1453_v29, %v1451_v28 }
 0x238   : > { %5145 = vpow2.f32 %v1301_v55  ;;  %v1305_v24 = vmul.f32 1.442695, %v6351_v16  ;;  %v1504_v25 = vpack.c.bf16 %v1454_v20, %v1452_v19  ;;  %vm1204_vm1 = vcmp.gt.f32.partialorder %v6341_v8, 0.0 }
 0x239   : > { %v5136_v27 = vpop.eup %5135  ;;  %5147 = vpow2.f32 %v1303_v57  ;;  %vm1206_vm2 = vcmp.gt.f32.partialorder %v6351_v16, 0.0  ;;  %vm1205_vm3 = vcmp.gt.f32.partialorder %v6345_v14, 0.0 }
 0x23a   : > { %v5138_v30 = vpop.eup %5137  ;;  %5149 = vpow2.f32 %v1305_v24  ;;  %v1102_v31 = vpop.f32.mrb[36].mxu0  ;;  %1819 = vmatprep.mubr.bf16.mxu1 %v1504_v25  ;;  %v4113_v26 = vadd.f32 -1.0, %v5136_v27 }
 0x23b   : > { %v5140_v22 = vpop.eup %5139  ;;  %v4114_v32 = vadd.f32 -1.0, %v5138_v30  ;;  %v6363_v35 = vadd.f32 %v1102_v31, %v6152_v37  ;;  %v1104_v39 = vpop.f32.mrb[37].mxu0  ;;  %1820 = vmatmul.mubr.bf16.gmra.mrb[24].mxu1 %v1503_v15 }
 0x23c   : > { %v5142_v52 = vpop.eup %5141  ;;  %v6367_v41 = vadd.f32 %v1104_v39, %v6156_v38  ;;  %v1106_v9 = vpop.f32.mrb[38].mxu0  ;;  %v4115_v18 = vadd.f32 -1.0, %v5140_v22  ;;  %v1455_v63 = vsel %vm1199_vm12, %v6311_v10, %v4113_v26 }
 0x23d   : > { %v4116_v21 = vadd.f32 -1.0, %v5142_v52  ;;  %v1307_v42 = vmul.f32 1.442695, %v6363_v35  ;;  %v6371_v44 = vadd.f32 %v1106_v9, %v6152_v37  ;;  %v1108_v12 = vpop.f32.mrb[39].mxu0  ;;  %v1456_v17 = vsel %vm1200_vm13, %v6315_v46, %v4114_v32 }
 0x23e   : > { %v1309_v23 = vmul.f32 1.442695, %v6367_v41  ;;  %v6377_v48 = vadd.f32 %v1108_v12, %v6156_v38  ;;  %v1457_v0 = vsel %vm1201_vm15, %v6319_v49, %v4115_v18  ;;  %vm1207_vm4 = vcmp.gt.f32.partialorder %v6363_v35, 0.0 }
 0x23f   : > { %5151 = vpow2.f32 %v1307_v42  ;;  %v1311_v45 = vmul.f32 1.442695, %v6371_v44  ;;  %v1458_v50 = vsel %vm1202_vm14, %v6325_v51, %v4116_v21  ;;  %v1505_v46 = vpack.c.bf16 %v1457_v0, %v1455_v63 }
 0x240   : > { %5153 = vpow2.f32 %v1309_v23  ;;  %v1313_v53 = vmul.f32 1.442695, %v6377_v48  ;;  %v1506_v58 = vpack.c.bf16 %v1458_v50, %v1456_v17  ;;  %vm1208_vm5 = vcmp.gt.f32.partialorder %v6367_v41, 0.0 }
 0x241   : > { %v5144_v60 = vpop.eup %5143  ;;  %5155 = vpow2.f32 %v1311_v45  ;;  %vm1210_vm6 = vcmp.gt.f32.partialorder %v6377_v48, 0.0  ;;  %vm1209_vm7 = vcmp.gt.f32.partialorder %v6371_v44, 0.0 }
 0x242   : > { %v5146_v1 = vpop.eup %5145  ;;  %5157 = vpow2.f32 %v1313_v53  ;;  %v1112_v2 = vpop.f32.mrb[40].mxu0  ;;  %1829 = vmatprep.mubr.bf16.mxu1 %v1506_v58  ;;  %v4117_v61 = vadd.f32 -1.0, %v5144_v60 }
 0x243   : > { %v5148_v51 = vpop.eup %5147  ;;  %v4118_v3 = vadd.f32 -1.0, %v5146_v1  ;;  %v6389_v4 = vadd.f32 %v1112_v2, %v6152_v37  ;;  %v1114_v6 = vpop.f32.mrb[41].mxu0  ;;  %1830 = vmatmul.mubr.bf16.gmra.mrb[28].mxu1 %v1505_v46 }
 0x244   : > { %v5150_v5 = vpop.eup %5149  ;;  %v6393_v54 = vadd.f32 %v1114_v6, %v6156_v38  ;;  %v1116_v10 = vpop.f32.mrb[42].mxu0  ;;  %v4119_v49 = vadd.f32 -1.0, %v5148_v51  ;;  %v1459_v24 = vsel %vm1203_vm0, %v6337_v7, %v4117_v61 }
 0x245   : > { %v4120_v62 = vadd.f32 -1.0, %v5150_v5  ;;  %v1315_v40 = vmul.f32 1.442695, %v6389_v4  ;;  %v6397_v59 = vadd.f32 %v1116_v10, %v6152_v37  ;;  %v1118_v47 = vpop.f32.mrb[43].mxu0  ;;  %v1460_v43 = vsel %vm1204_vm1, %v6341_v8, %v4118_v3 }
 0x246   : > { %v1317_v56 = vmul.f32 1.442695, %v6393_v54  ;;  %v6403_v11 = vadd.f32 %v1118_v47, %v6156_v38  ;;  %v1461_v25 = vsel %vm1205_vm3, %v6345_v14, %v4119_v49  ;;  %vm1211_vm8 = vcmp.gt.f32.partialorder %v6389_v4, 0.0 }
 0x247   : > { %5159 = vpow2.f32 %v1315_v40  ;;  %v1319_v13 = vmul.f32 1.442695, %v6397_v59  ;;  %v1462_v55 = vsel %vm1206_vm2, %v6351_v16, %v4120_v62  ;;  %v1507_v8 = vpack.c.bf16 %v1461_v25, %v1459_v24 }
 0x248   : > { %5161 = vpow2.f32 %v1317_v56  ;;  %v1321_v57 = vmul.f32 1.442695, %v6403_v11  ;;  %v1508_v19 = vpack.c.bf16 %v1462_v55, %v1460_v43  ;;  %vm1212_vm9 = vcmp.gt.f32.partialorder %v6393_v54, 0.0 }
 0x249   : > { %v5152_v20 = vpop.eup %5151  ;;  %5163 = vpow2.f32 %v1319_v13  ;;  %vm1214_vm10 = vcmp.gt.f32.partialorder %v6403_v11, 0.0  ;;  %vm1213_vm11 = vcmp.gt.f32.partialorder %v6397_v59, 0.0 }
 0x24a   : > { %v5154_v27 = vpop.eup %5153  ;;  %5165 = vpow2.f32 %v1321_v57  ;;  %v1122_v28 = vpop.f32.mrb[44].mxu0  ;;  %1839 = vmatprep.mubr.bf16.mxu1 %v1508_v19  ;;  %v4121_v22 = vadd.f32 -1.0, %v5152_v20 }
 0x24b   : > { %v5156_v16 = vpop.eup %5155  ;;  %v4122_v29 = vadd.f32 -1.0, %v5154_v27  ;;  %v6415_v30 = vadd.f32 %v1122_v28, %v6152_v37  ;;  %v1124_v31 = vpop.f32.mrb[45].mxu0  ;;  %1840 = vmatmul.mubr.bf16.gmra.mrb[32].mxu1 %v1507_v8 }
 0x24c   : > { %v5158_v15 = vpop.eup %5157  ;;  %v6419_v32 = vadd.f32 %v1124_v31, %v6156_v38  ;;  %v1126_v7 = vpop.f32.mrb[46].mxu0  ;;  %v4123_v14 = vadd.f32 -1.0, %v5156_v16  ;;  %v1463_v53 = vsel %vm1207_vm4, %v6363_v35, %v4121_v22 }
 0x24d   : > { %v4124_v39 = vadd.f32 -1.0, %v5158_v15  ;;  %v1323_v52 = vmul.f32 1.442695, %v6415_v30  ;;  %v6423_v26 = vadd.f32 %v1126_v7, %v6152_v37  ;;  %v1128_v9 = vpop.f32.mrb[47].mxu0  ;;  %v1464_v12 = vsel %vm1208_vm5, %v6367_v41, %v4122_v29 }
 0x24e   : > { %v1325_v18 = vmul.f32 1.442695, %v6419_v32  ;;  %v6429_v21 = vadd.f32 %v1128_v9, %v6156_v38  ;;  %v1465_v58 = vsel %vm1209_vm7, %v6371_v44, %v4123_v14  ;;  %vm1215_vm12 = vcmp.gt.f32.partialorder %v6415_v30, 0.0 }
 0x24f   : > { %5167 = vpow2.f32 %v1323_v52  ;;  %v1327_v42 = vmul.f32 1.442695, %v6423_v26  ;;  %v1466_v23 = vsel %vm1210_vm6, %v6377_v48, %v4124_v39  ;;  %v1509_v41 = vpack.c.bf16 %v1465_v58, %v1463_v53 }
 0x250   : > { %5169 = vpow2.f32 %v1325_v18  ;;  %v1329_v45 = vmul.f32 1.442695, %v6429_v21  ;;  %v1510_v17 = vpack.c.bf16 %v1466_v23, %v1464_v12  ;;  %vm1216_vm13 = vcmp.gt.f32.partialorder %v6419_v32, 0.0 }
 0x251   : > { %v5160_v50 = vpop.eup %5159  ;;  %5171 = vpow2.f32 %v1327_v42  ;;  %vm1218_vm14 = vcmp.gt.f32.partialorder %v6429_v21, 0.0  ;;  %vm1217_vm15 = vcmp.gt.f32.partialorder %v6423_v26, 0.0 }
 0x252   : > { %v5162_v60 = vpop.eup %5161  ;;  %5173 = vpow2.f32 %v1329_v45  ;;  %v1132_v63 = vpop.f32.mrb[48].mxu0  ;;  %1849 = vmatprep.mubr.bf16.mxu1 %v1510_v17  ;;  %v4125_v51 = vadd.f32 -1.0, %v5160_v50 }
 0x253   : > { %v5164_v48 = vpop.eup %5163  ;;  %v4126_v0 = vadd.f32 -1.0, %v5162_v60  ;;  %v6441_v1 = vadd.f32 %v1132_v63, %v6152_v37  ;;  %v1134_v2 = vpop.f32.mrb[49].mxu0  ;;  %1850 = vmatmul.mubr.bf16.gmra.mrb[36].mxu1 %v1509_v41 }
 0x254   : > { %v5166_v46 = vpop.eup %5165  ;;  %v6445_v3 = vadd.f32 %v1134_v2, %v6156_v38  ;;  %v1136_v35 = vpop.f32.mrb[50].mxu0  ;;  %v4127_v44 = vadd.f32 -1.0, %v5164_v48  ;;  %v1467_v57 = vsel %vm1211_vm8, %v6389_v4, %v4125_v51 }
 0x255   : > { %v4128_v6 = vadd.f32 -1.0, %v5166_v46  ;;  %v1331_v5 = vmul.f32 1.442695, %v6441_v1  ;;  %v6449_v61 = vadd.f32 %v1136_v35, %v6152_v37  ;;  %v1138_v10 = vpop.f32.mrb[51].mxu0  ;;  %v1468_v47 = vsel %vm1212_vm9, %v6393_v54, %v4126_v0 }
 0x256   : > { %v1333_v49 = vmul.f32 1.442695, %v6445_v3  ;;  %v6455_v62 = vadd.f32 %v1138_v10, %v6156_v38  ;;  %v1469_v19 = vsel %vm1213_vm11, %v6397_v59, %v4127_v44  ;;  %vm1219_vm0 = vcmp.gt.f32.partialorder %v6441_v1, 0.0 }
 0x257   : > { %5175 = vpow2.f32 %v1331_v5  ;;  %v1335_v40 = vmul.f32 1.442695, %v6449_v61  ;;  %v1470_v56 = vsel %vm1214_vm10, %v6403_v11, %v4128_v6  ;;  %v1511_v54 = vpack.c.bf16 %v1469_v19, %v1467_v57 }
 0x258   : > { %5177 = vpow2.f32 %v1333_v49  ;;  %v1337_v13 = vmul.f32 1.442695, %v6455_v62  ;;  %v1512_v43 = vpack.c.bf16 %v1470_v56, %v1468_v47  ;;  %vm1220_vm1 = vcmp.gt.f32.partialorder %v6445_v3, 0.0 }
 0x259   : > { %v5168_v55 = vpop.eup %5167  ;;  %5179 = vpow2.f32 %v1335_v40  ;;  %vm1222_vm2 = vcmp.gt.f32.partialorder %v6455_v62, 0.0  ;;  %vm1221_vm3 = vcmp.gt.f32.partialorder %v6449_v61, 0.0 }
 0x25a   : > { %v5170_v20 = vpop.eup %5169  ;;  %5181 = vpow2.f32 %v1337_v13  ;;  %v1142_v24 = vpop.f32.mrb[52].mxu0  ;;  %1859 = vmatprep.mubr.bf16.mxu1 %v1512_v43  ;;  %v4129_v16 = vadd.f32 -1.0, %v5168_v55 }
 0x25b   : > { %v5172_v11 = vpop.eup %5171  ;;  %v4130_v25 = vadd.f32 -1.0, %v5170_v20  ;;  %v6467_v27 = vadd.f32 %v1142_v24, %v6152_v37  ;;  %v1144_v28 = vpop.f32.mrb[53].mxu0  ;;  %1860 = vmatmul.mubr.bf16.gmra.mrb[40].mxu1 %v1511_v54 }
 0x25c   : > { %v5174_v8 = vpop.eup %5173  ;;  %v6471_v29 = vadd.f32 %v1144_v28, %v6156_v38  ;;  %v1146_v4 = vpop.f32.mrb[54].mxu0  ;;  %v4131_v59 = vadd.f32 -1.0, %v5172_v11  ;;  %v1471_v45 = vsel %vm1215_vm12, %v6415_v30, %v4129_v16 }
 0x25d   : > { %v4132_v31 = vadd.f32 -1.0, %v5174_v8  ;;  %v1339_v15 = vmul.f32 1.442695, %v6467_v27  ;;  %v6475_v22 = vadd.f32 %v1146_v4, %v6152_v37  ;;  %v1148_v7 = vpop.f32.mrb[55].mxu0  ;;  %v1472_v9 = vsel %vm1216_vm13, %v6419_v32, %v4130_v25 }
 0x25e   : > { %v1341_v14 = vmul.f32 1.442695, %v6471_v29  ;;  %v6481_v39 = vadd.f32 %v1148_v7, %v6156_v38  ;;  %v1473_v17 = vsel %vm1217_vm15, %v6423_v26, %v4131_v59  ;;  %vm1223_vm4 = vcmp.gt.f32.partialorder %v6467_v27, 0.0 }
 0x25f   : > { %5183 = vpow2.f32 %v1339_v15  ;;  %v1343_v52 = vmul.f32 1.442695, %v6475_v22  ;;  %v1474_v18 = vsel %vm1218_vm14, %v6429_v21, %v4132_v31  ;;  %v1513_v32 = vpack.c.bf16 %v1473_v17, %v1471_v45 }
 0x260   : > { %5185 = vpow2.f32 %v1341_v14  ;;  %v1345_v42 = vmul.f32 1.442695, %v6481_v39  ;;  %v1514_v12 = vpack.c.bf16 %v1474_v18, %v1472_v9  ;;  %vm1224_vm5 = vcmp.gt.f32.partialorder %v6471_v29, 0.0 }
 0x261   : > { %v5176_v23 = vpop.eup %5175  ;;  %5187 = vpow2.f32 %v1343_v52  ;;  %vm1226_vm6 = vcmp.gt.f32.partialorder %v6481_v39, 0.0  ;;  %vm1225_vm7 = vcmp.gt.f32.partialorder %v6475_v22, 0.0 }
 0x262   : > { %v5178_v50 = vpop.eup %5177  ;;  %5189 = vpow2.f32 %v1345_v42  ;;  %v1152_v53 = vpop.f32.mrb[56].mxu0  ;;  %1869 = vmatprep.mubr.bf16.mxu1 %v1514_v12  ;;  %v4133_v48 = vadd.f32 -1.0, %v5176_v23 }
 0x263   : > { %v5180_v21 = vpop.eup %5179  ;;  %v4134_v58 = vadd.f32 -1.0, %v5178_v50  ;;  %v6493_v60 = vadd.f32 %v1152_v53, %v6152_v37  ;;  %v1154_v63 = vpop.f32.mrb[57].mxu0  ;;  %1870 = vmatmul.mubr.bf16.gmra.mrb[44].mxu1 %v1513_v32  ;;  %v5029_v50 = vld [vmem:[#allocation8 + $0x78] sm:$0xff]  }
 0x264   : > { %v5182_v41 = vpop.eup %5181  ;;  %v6497_v0 = vadd.f32 %v1154_v63, %v6156_v38  ;;  %v1156_v30 = vpop.f32.mrb[58].mxu0  ;;  %v4135_v26 = vadd.f32 -1.0, %v5180_v21  ;;  %v1475_v13 = vsel %vm1219_vm0, %v6441_v1, %v4133_v48  ;;  %v5030_v32 = vld [vmem:[#allocation8 + $0x38] sm:$0xff]   ;;  %4399 = vmatprep.subr.bf16.mxu0 %v5029_v50 }
 0x265   : > { %v4136_v2 = vadd.f32 -1.0, %v5182_v41  ;;  %v1347_v46 = vmul.f32 1.442695, %v6493_v60  ;;  %v6501_v51 = vadd.f32 %v1156_v30, %v6152_v37  ;;  %v1158_v35 = vpop.f32.mrb[59].mxu0  ;;  %v1476_v10 = vsel %vm1220_vm1, %v6445_v3, %v4134_v58  ;;  %4400 = vmatpush3.bf16.msra.mxu0 %v5030_v32 }
 0x266   : > { %v1349_v44 = vmul.f32 1.442695, %v6497_v0  ;;  %v6507_v6 = vadd.f32 %v1158_v35, %v6156_v38  ;;  %v1477_v43 = vsel %vm1221_vm3, %v6449_v61, %v4135_v26  ;;  %vm1227_vm8 = vcmp.gt.f32.partialorder %v6493_v60, 0.0 }
 0x267   : > { %5191 = vpow2.f32 %v1347_v46  ;;  %v1351_v5 = vmul.f32 1.442695, %v6501_v51  ;;  %v1478_v49 = vsel %vm1222_vm2, %v6455_v62, %v4136_v2  ;;  %v1515_v3 = vpack.c.bf16 %v1477_v43, %v1475_v13 }
 0x268   : > { %5193 = vpow2.f32 %v1349_v44  ;;  %v1353_v40 = vmul.f32 1.442695, %v6507_v6  ;;  %v1516_v47 = vpack.c.bf16 %v1478_v49, %v1476_v10  ;;  %vm1229_vm9 = vcmp.gt.f32.partialorder %v6501_v51, 0.0 }
 0x269   : > { %v5184_v56 = vpop.eup %5183  ;;  %5195 = vpow2.f32 %v1351_v5  ;;  %vm1228_vm10 = vcmp.gt.f32.partialorder %v6497_v0, 0.0  ;;  %vm1230_vm11 = vcmp.gt.f32.partialorder %v6507_v6, 0.0 }
 0x26a   : > { %v5186_v55 = vpop.eup %5185  ;;  %5197 = vpow2.f32 %v1353_v40  ;;  %v1162_v57 = vpop.f32.mrb[60].mxu0  ;;  %1879 = vmatprep.mubr.bf16.mxu1 %v1516_v47  ;;  %v4137_v11 = vadd.f32 -1.0, %v5184_v56  ;;  %v1555_v40 = vld [vmem:[%s7237_s4] sm:$0x3] }
 0x26b   : > { %v5188_v62 = vpop.eup %5187  ;;  %v4138_v19 = vadd.f32 -1.0, %v5186_v55  ;;  %v6519_v20 = vadd.f32 %v1162_v57, %v6152_v37  ;;  %v1164_v24 = vpop.f32.mrb[61].mxu0  ;;  %1880 = vmatmul.mubr.bf16.gmra.mrb[48].mxu1 %v1515_v3  ;;  %v6555_v47 = vrot.slane %v1555_v40, %v650_v34  ;;  %v6559_v56 = vrot.slane %v1555_v40, %v654_v36 }
 0x26c   : > { %v5190_v54 = vpop.eup %5189  ;;  %v6523_v25 = vadd.f32 %v1164_v24, %v6156_v38  ;;  %v1166_v1 = vpop.f32.mrb[62].mxu0  ;;  %v4139_v61 = vadd.f32 -1.0, %v5188_v62  ;;  %v1479_v18 = vsel %vm1223_vm4, %v6467_v27, %v4137_v11  ;;  %v5031_v24 = vld [vmem:[#allocation10 + $0x40] sm:$0xff]  }
 0x26d   : > { %v4140_v28 = vadd.f32 -1.0, %v5190_v54  ;;  %v1355_v8 = vmul.f32 1.442695, %v6519_v20  ;;  %v1167_v16 = vadd.f32 %v1166_v1, %v6152_v37  ;;  %v1168_v4 = vpop.f32.mrb[63].mxu0  ;;  %v1480_v7 = vsel %vm1224_vm5, %v6471_v29, %v4138_v19  ;;  %v5032_v54 = vld [vmem:[#allocation10] sm:$0xff]   ;;  %4497 = vmatprep.subr.bf16.mxu1 %v5031_v24 }
 0x26e   : > { %v1357_v59 = vmul.f32 1.442695, %v6523_v25  ;;  %v1169_v31 = vadd.f32 %v1168_v4, %v6156_v38  ;;  %v1481_v42 = vsel %vm1225_vm7, %v6475_v22, %v4139_v61  ;;  %vm1231_vm12 = vcmp.gt.f32.partialorder %v6519_v20, 0.0  ;;  %4498 = vmatpush3.bf16.msra.mxu1 %v5032_v54  ;;  %v5040_v24 = vld [vmem:[#allocation10 + $0x20] sm:$0xff]  }
 0x26f   : > { %5199 = vpow2.f32 %v1355_v8  ;;  %v1359_v15 = vmul.f32 1.442695, %v1167_v16  ;;  %v1482_v14 = vsel %vm1226_vm6, %v6481_v39, %v4140_v28  ;;  %v1517_v29 = vpack.c.bf16 %v1481_v42, %v1479_v18 }
 0x270   : > { %5201 = vpow2.f32 %v1357_v59  ;;  %v1361_v52 = vmul.f32 1.442695, %v1169_v31  ;;  %v1518_v37 = vpack.c.bf16 %v1482_v14, %v1480_v7  ;;  %vm1233_vm13 = vcmp.gt.f32.partialorder %v1167_v16, 0.0 }
 0x271   : > { %v5192_v9 = vpop.eup %5191  ;;  %5203 = vpow2.f32 %v1359_v15  ;;  %vm1232_vm14 = vcmp.gt.f32.partialorder %v6523_v25, 0.0  ;;  %vm1234_vm15 = vcmp.gt.f32.partialorder %v1169_v31, 0.0  ;;  %v5034_v15 = vld [vmem:[#allocation10 + $0x8] sm:$0xff]  }
 0x272   : > { %v5194_v38 = vpop.eup %5193  ;;  %v4141_v12 = vadd.f32 -1.0, %v5192_v9  ;;  %5205 = vpow2.f32 %v1361_v52  ;;  %1889 = vmatprep.mubr.bf16.mxu1 %v1518_v37 }
 0x273   : > { %v5196_v23 = vpop.eup %5195  ;;  %v4142_v39 = vadd.f32 -1.0, %v5194_v38  ;;  %1890 = vmatmul.mubr.bf16.gmra.mrb[52].mxu1 %v1517_v29 }
 0x274   : > { %v5198_v45 = vpop.eup %5197  ;;  %v4143_v17 = vadd.f32 -1.0, %v5196_v23  ;;  %v1483_v27 = vsel %vm1227_vm8, %v6493_v60, %v4141_v12 }
 0x275   : > { %v4144_v53 = vadd.f32 -1.0, %v5198_v45  ;;  %v1484_v21 = vsel %vm1228_vm10, %v6497_v0, %v4142_v39 }
 0x276   : > { %v1485_v22 = vsel %vm1229_vm9, %v6501_v51, %v4143_v17 }
 0x277   : > { %v1486_v58 = vsel %vm1230_vm11, %v6507_v6, %v4144_v53  ;;  %v1519_v63 = vpack.c.bf16 %v1485_v22, %v1483_v27 }
 0x278   : > { %v1520_v41 = vpack.c.bf16 %v1486_v58, %v1484_v21  ;;  %v5035_v58 = vld [vmem:[#allocation10 + $0x50] sm:$0xff]  }
 0x279   : > { %v5200_v48 = vpop.eup %5199 }
 0x27a   : > { %v5202_v30 = vpop.eup %5201  ;;  %v4145_v26 = vadd.f32 -1.0, %v5200_v48  ;;  %1899 = vmatprep.mubr.bf16.mxu1 %v1520_v41 }
 0x27b   : > { %v5204_v2 = vpop.eup %5203  ;;  %v4146_v46 = vadd.f32 -1.0, %v5202_v30  ;;  %1900 = vmatmul.mubr.bf16.gmra.mrb[56].mxu1 %v1519_v63 }
 0x27c   : > { %v5206_v35 = vpop.eup %5205  ;;  %v4147_v44 = vadd.f32 -1.0, %v5204_v2  ;;  %v1487_v0 = vsel %vm1231_vm12, %v6519_v20, %v4145_v26  ;;  %v5036_v26 = vld [vmem:[#allocation10 + $0x10] sm:$0xff]   ;;  %v5037_v2 = vld [vmem:[#allocation10 + $0x58] sm:$0xff]  }
 0x27d   : > { %v4148_v60 = vadd.f32 -1.0, %v5206_v35  ;;  %v1488_v6 = vsel %vm1232_vm14, %v6523_v25, %v4146_v46 }
 0x27e   : > { %v1489_v51 = vsel %vm1233_vm13, %v1167_v16, %v4147_v44 }
 0x27f   : > { %v1490_v5 = vsel %vm1234_vm15, %v1169_v31, %v4148_v60  ;;  %v1521_v10 = vpack.c.bf16 %v1489_v51, %v1487_v0  ;;  %v5033_v31 = vld [vmem:[#allocation10 + $0x48] sm:$0xff]   ;;  %v5038_v60 = vld [vmem:[#allocation10 + $0x18] sm:$0xff]  }
 0x280   : > { %v1522_v49 = vpack.c.bf16 %v1490_v5, %v1488_v6  ;;  %4499 = vmatprep.subr.bf16.mxu1 %v5033_v31  ;;  %v5039_v5 = vld [vmem:[#allocation10 + $0x60] sm:$0xff]  }
 0x281   : > { %4500 = vmatpush3.bf16.msra.mxu1 %v5034_v15 }
 0x282   : > { %1909 = vmatprep.mubr.bf16.mxu1 %v1522_v49  ;;  %4501 = vmatprep.subr.bf16.mxu1 %v5035_v58 }
 0x283   : > { %1910 = vmatmul.mubr.bf16.gmra.mrb[60].mxu1 %v1521_v10 }
 0x285   : > { %4502 = vmatpush3.bf16.msra.mxu1 %v5036_v26 }
 0x286   : > { %4503 = vmatprep.subr.bf16.mxu1 %v5037_v2 }
 0x289   : > { %4504 = vmatpush3.bf16.msra.mxu1 %v5038_v60 }
 0x28a   : > { %4505 = vmatprep.subr.bf16.mxu1 %v5039_v5 }
 0x28d   : > { %4506 = vmatpush3.bf16.msra.mxu1 %v5040_v24 }
 0x2de   : > { %v1761_v13 = vpop.f32.mrb[0].mxu1 }
 0x2df   : > { %v1762_v43 = vadd.f32 %v1761_v13, %v6555_v47  ;;  %v1763_v55 = vpop.f32.mrb[1].mxu1 }
 0x2e0   : > { %v6563_v57 = vadd.f32 %v1763_v55, %v6559_v56  ;;  %v1765_v3 = vpop.f32.mrb[2].mxu1 }
 0x2e1   : > { %v1984_v62 = vmul.f32 1.442695, %v1762_v43  ;;  %v1766_v19 = vadd.f32 %v1765_v3, %v6555_v47  ;;  %v1767_v20 = vpop.f32.mrb[3].mxu1  ;;  %vm1920_vm0 = vcmp.gt.f32.partialorder %v1762_v43, 0.0 }
 0x2e2   : > { %v1986_v34 = vmul.f32 1.442695, %v6563_v57  ;;  %v6568_v33 = vadd.f32 %v1767_v20, %v6559_v56  ;;  %vm1921_vm2 = vcmp.gt.f32.partialorder %v6563_v57, 0.0 }
 0x2e3   : > { %5207 = vpow2.f32 %v1984_v62  ;;  %v1988_v36 = vmul.f32 1.442695, %v1766_v19  ;;  %vm1922_vm1 = vcmp.gt.f32.partialorder %v1766_v19, 0.0 }
 0x2e4   : > { %5209 = vpow2.f32 %v1986_v34  ;;  %v1990_v11 = vmul.f32 1.442695, %v6568_v33  ;;  %vm1923_vm3 = vcmp.gt.f32.partialorder %v6568_v33, 0.0 }
 0x2e5   : > { %5211 = vpow2.f32 %v1988_v36 }
 0x2e6   : > { %5213 = vpow2.f32 %v1990_v11  ;;  %v1771_v25 = vpop.f32.mrb[4].mxu1 }
 0x2e7   : > { %v6572_v1 = vadd.f32 %v1771_v25, %v6555_v47  ;;  %v1773_v61 = vpop.f32.mrb[5].mxu1  ;;  %v5041_v25 = vld [vmem:[#allocation10 + $0x68] sm:$0xff]  }
 0x2e8   : > { %v6575_v28 = vadd.f32 %v1773_v61, %v6559_v56  ;;  %v1775_v8 = vpop.f32.mrb[6].mxu1  ;;  %4507 = vmatprep.subr.bf16.mxu1 %v5041_v25 }
 0x2e9   : > { %v1992_v16 = vmul.f32 1.442695, %v6572_v1  ;;  %v6579_v4 = vadd.f32 %v1775_v8, %v6555_v47  ;;  %v1777_v59 = vpop.f32.mrb[7].mxu1  ;;  %vm1924_vm4 = vcmp.gt.f32.partialorder %v6572_v1, 0.0 }
 0x2ea   : > { %v1994_v7 = vmul.f32 1.442695, %v6575_v28  ;;  %v6583_v14 = vadd.f32 %v1777_v59, %v6559_v56  ;;  %vm1925_vm5 = vcmp.gt.f32.partialorder %v6575_v28, 0.0 }
 0x2eb   : > { %5215 = vpow2.f32 %v1992_v16  ;;  %v1996_v52 = vmul.f32 1.442695, %v6579_v4  ;;  %vm1926_vm7 = vcmp.gt.f32.partialorder %v6579_v4, 0.0 }
 0x2ec   : > { %5217 = vpow2.f32 %v1994_v7  ;;  %v1998_v37 = vmul.f32 1.442695, %v6583_v14  ;;  %vm1927_vm6 = vcmp.gt.f32.partialorder %v6583_v14, 0.0 }
 0x2ed   : > { %v5208_v9 = vpop.eup %5207  ;;  %5219 = vpow2.f32 %v1996_v52  ;;  %v5042_v52 = vld [vmem:[#allocation10 + $0x28] sm:$0xff]  }
 0x2ee   : > { %v5210_v18 = vpop.eup %5209  ;;  %v4181_v42 = vadd.f32 -1.0, %v5208_v9  ;;  %5221 = vpow2.f32 %v1998_v37  ;;  %v1781_v38 = vpop.f32.mrb[8].mxu1  ;;  %4508 = vmatpush3.bf16.msra.mxu1 %v5042_v52 }
 0x2ef   : > { %v5212_v12 = vpop.eup %5211  ;;  %v6588_v29 = vadd.f32 %v1781_v38, %v6555_v47  ;;  %v1783_v23 = vpop.f32.mrb[9].mxu1  ;;  %v4182_v53 = vadd.f32 -1.0, %v5210_v18 }
 0x2f0   : > { %v5214_v39 = vpop.eup %5213  ;;  %v4183_v45 = vadd.f32 -1.0, %v5212_v12  ;;  %v6591_v17 = vadd.f32 %v1783_v23, %v6559_v56  ;;  %v1785_v50 = vpop.f32.mrb[10].mxu1  ;;  %v2176_v63 = vsel %vm1920_vm0, %v1762_v43, %v4181_v42 }
 0x2f1   : > { %v4184_v32 = vadd.f32 -1.0, %v5214_v39  ;;  %v2000_v27 = vmul.f32 1.442695, %v6588_v29  ;;  %v6595_v22 = vadd.f32 %v1785_v50, %v6555_v47  ;;  %v1787_v21 = vpop.f32.mrb[11].mxu1  ;;  %v2177_v51 = vsel %vm1921_vm2, %v6563_v57, %v4182_v53 }
 0x2f2   : > { %v2178_v41 = vsel %vm1922_vm1, %v1766_v19, %v4183_v45  ;;  %v2002_v48 = vmul.f32 1.442695, %v6591_v17  ;;  %v6599_v30 = vadd.f32 %v1787_v21, %v6559_v56  ;;  %vm1928_vm8 = vcmp.gt.f32.partialorder %v6588_v29, 0.0 }
 0x2f3   : > { %v2240_v46 = vpack.c.bf16 %v2178_v41, %v2176_v63  ;;  %5223 = vpow2.f32 %v2000_v27  ;;  %v2004_v35 = vmul.f32 1.442695, %v6595_v22  ;;  %v2179_v6 = vsel %vm1923_vm3, %v6568_v33, %v4184_v32  ;;  %v5044_v32 = vld [vmem:[#allocation10 + $0x30] sm:$0xff]  }
 0x2f4   : > { %5225 = vpow2.f32 %v2002_v48  ;;  %v2006_v44 = vmul.f32 1.442695, %v6599_v30  ;;  %v2241_v40 = vpack.c.bf16 %v2179_v6, %v2177_v51  ;;  %v5045_v48 = vld [vmem:[#allocation10 + $0x78] sm:$0xff]   ;;  %vm1929_vm9 = vcmp.gt.f32.partialorder %v6591_v17, 0.0 }
 0x2f5   : > { %v5216_v0 = vpop.eup %5215  ;;  %5227 = vpow2.f32 %v2004_v35  ;;  %vm1931_vm10 = vcmp.gt.f32.partialorder %v6599_v30, 0.0  ;;  %vm1930_vm11 = vcmp.gt.f32.partialorder %v6595_v22, 0.0  ;;  %v5046_v51 = vld [vmem:[#allocation10 + $0x38] sm:$0xff]  }
 0x2f6   : > { %v5218_v10 = vpop.eup %5217  ;;  %5229 = vpow2.f32 %v2006_v44  ;;  %v1791_v49 = vpop.f32.mrb[12].mxu1  ;;  %v4185_v19 = vadd.f32 -1.0, %v5216_v0  ;;  %2439 = vmatprep.mubr.bf16.mxu0 %v2241_v40 }
 0x2f7   : > { %v5220_v13 = vpop.eup %5219  ;;  %v4186_v43 = vadd.f32 -1.0, %v5218_v10  ;;  %v6608_v55 = vadd.f32 %v1791_v49, %v6555_v47  ;;  %v1793_v3 = vpop.f32.mrb[13].mxu1  ;;  %2440 = vmatmul.mubr.bf16.vlgmr.msra.gmra.mrb[64].mxu0 %v2240_v46 }
 0x2f8   : > { %v5222_v62 = vpop.eup %5221  ;;  %v6612_v57 = vadd.f32 %v1793_v3, %v6559_v56  ;;  %v1795_v20 = vpop.f32.mrb[14].mxu1  ;;  %v4187_v54 = vadd.f32 -1.0, %v5220_v13  ;;  %v2180_v9 = vsel %vm1924_vm4, %v6572_v1, %v4185_v19 }
 0x2f9   : > { %v4188_v34 = vadd.f32 -1.0, %v5222_v62  ;;  %v2008_v33 = vmul.f32 1.442695, %v6608_v55  ;;  %v6616_v36 = vadd.f32 %v1795_v20, %v6555_v47  ;;  %v1797_v11 = vpop.f32.mrb[15].mxu1  ;;  %v2181_v59 = vsel %vm1925_vm5, %v6575_v28, %v4186_v43  ;;  %v5043_v28 = vld [vmem:[#allocation10 + $0x70] sm:$0xff]  }
 0x2fa   : > { %v2010_v61 = vmul.f32 1.442695, %v6612_v57  ;;  %v6622_v8 = vadd.f32 %v1797_v11, %v6559_v56  ;;  %v2182_v18 = vsel %vm1926_vm7, %v6579_v4, %v4187_v54  ;;  %4509 = vmatprep.subr.bf16.mxu1 %v5043_v28  ;;  %vm1932_vm12 = vcmp.gt.f32.partialorder %v6608_v55, 0.0 }
 0x2fb   : > { %5231 = vpow2.f32 %v2008_v33  ;;  %v2012_v16 = vmul.f32 1.442695, %v6616_v36  ;;  %v2183_v31 = vsel %vm1927_vm6, %v6583_v14, %v4188_v34  ;;  %v2242_v38 = vpack.c.bf16 %v2182_v18, %v2180_v9  ;;  %4510 = vmatpush3.bf16.msra.mxu1 %v5044_v32 }
 0x2fc   : > { %5233 = vpow2.f32 %v2010_v61  ;;  %v2014_v15 = vmul.f32 1.442695, %v6622_v8  ;;  %v2243_v7 = vpack.c.bf16 %v2183_v31, %v2181_v59  ;;  %4511 = vmatprep.subr.bf16.mxu1 %v5045_v48  ;;  %vm1933_vm13 = vcmp.gt.f32.partialorder %v6612_v57, 0.0 }
 0x2fd   : > { %v5224_v37 = vpop.eup %5223  ;;  %5235 = vpow2.f32 %v2012_v16  ;;  %vm1935_vm14 = vcmp.gt.f32.partialorder %v6622_v8, 0.0  ;;  %vm1934_vm15 = vcmp.gt.f32.partialorder %v6616_v36, 0.0 }
 0x2fe   : > { %v5226_v42 = vpop.eup %5225  ;;  %5237 = vpow2.f32 %v2014_v15  ;;  %v1801_v14 = vpop.f32.mrb[16].mxu1  ;;  %2447 = vmatprep.mubr.bf16.mxu0 %v2243_v7  ;;  %v4189_v53 = vadd.f32 -1.0, %v5224_v37 }
 0x2ff   : > { %v5228_v12 = vpop.eup %5227  ;;  %v4190_v23 = vadd.f32 -1.0, %v5226_v42  ;;  %v6634_v39 = vadd.f32 %v1801_v14, %v6555_v47  ;;  %v1803_v45 = vpop.f32.mrb[17].mxu1  ;;  %2448 = vmatmul.mubr.bf16.gmra.mrb[68].mxu0 %v2242_v38  ;;  %4512 = vmatpush3.bf16.msra.mxu1 %v5046_v51 }
 0x300   : > { %v5230_v50 = vpop.eup %5229  ;;  %v6638_v1 = vadd.f32 %v1803_v45, %v6559_v56  ;;  %v1805_v4 = vpop.f32.mrb[18].mxu1  ;;  %v4191_v27 = vadd.f32 -1.0, %v5228_v12  ;;  %v2184_v5 = vsel %vm1928_vm8, %v6588_v29, %v4189_v53 }
 0x301   : > { %v4192_v21 = vadd.f32 -1.0, %v5230_v50  ;;  %v2016_v58 = vmul.f32 1.442695, %v6634_v39  ;;  %v6642_v63 = vadd.f32 %v1805_v4, %v6555_v47  ;;  %v1807_v41 = vpop.f32.mrb[19].mxu1  ;;  %v2185_v35 = vsel %vm1929_vm9, %v6591_v17, %v4190_v23 }
 0x302   : > { %v2018_v26 = vmul.f32 1.442695, %v6638_v1  ;;  %v6648_v2 = vadd.f32 %v1807_v41, %v6559_v56  ;;  %v2186_v10 = vsel %vm1930_vm11, %v6595_v22, %v4191_v27  ;;  %vm1936_vm0 = vcmp.gt.f32.partialorder %v6634_v39, 0.0 }
 0x303   : > { %5239 = vpow2.f32 %v2016_v58  ;;  %v2020_v46 = vmul.f32 1.442695, %v6642_v63  ;;  %v2187_v44 = vsel %vm1931_vm10, %v6599_v30, %v4192_v21  ;;  %v2244_v49 = vpack.c.bf16 %v2186_v10, %v2184_v5 }
 0x304   : > { %5241 = vpow2.f32 %v2018_v26  ;;  %v2022_v60 = vmul.f32 1.442695, %v6648_v2  ;;  %v2245_v0 = vpack.c.bf16 %v2187_v44, %v2185_v35  ;;  %vm1937_vm1 = vcmp.gt.f32.partialorder %v6638_v1, 0.0 }
 0x305   : > { %v5232_v6 = vpop.eup %5231  ;;  %5243 = vpow2.f32 %v2020_v46  ;;  %vm1939_vm2 = vcmp.gt.f32.partialorder %v6648_v2, 0.0  ;;  %vm1938_vm3 = vcmp.gt.f32.partialorder %v6642_v63, 0.0 }
 0x306   : > { %v5234_v17 = vpop.eup %5233  ;;  %5245 = vpow2.f32 %v2022_v60  ;;  %v1811_v30 = vpop.f32.mrb[20].mxu1  ;;  %2455 = vmatprep.mubr.bf16.mxu0 %v2245_v0  ;;  %v4193_v19 = vadd.f32 -1.0, %v5232_v6 }
 0x307   : > { %v5236_v40 = vpop.eup %5235  ;;  %v4194_v13 = vadd.f32 -1.0, %v5234_v17  ;;  %v6660_v43 = vadd.f32 %v1811_v30, %v6555_v47  ;;  %v1813_v3 = vpop.f32.mrb[21].mxu1  ;;  %2456 = vmatmul.mubr.bf16.gmra.mrb[72].mxu0 %v2244_v49 }
 0x308   : > { %v5238_v62 = vpop.eup %5237  ;;  %v6664_v29 = vadd.f32 %v1813_v3, %v6559_v56  ;;  %v1815_v22 = vpop.f32.mrb[22].mxu1  ;;  %v4195_v20 = vadd.f32 -1.0, %v5236_v40  ;;  %v2188_v52 = vsel %vm1932_vm12, %v6608_v55, %v4193_v19 }
 0x309   : > { %v4196_v24 = vadd.f32 -1.0, %v5238_v62  ;;  %v2024_v54 = vmul.f32 1.442695, %v6660_v43  ;;  %v6668_v34 = vadd.f32 %v1815_v22, %v6555_v47  ;;  %v1817_v33 = vpop.f32.mrb[23].mxu1  ;;  %v2189_v16 = vsel %vm1933_vm13, %v6612_v57, %v4194_v13 }
 0x30a   : > { %v2026_v11 = vmul.f32 1.442695, %v6664_v29  ;;  %v6674_v25 = vadd.f32 %v1817_v33, %v6559_v56  ;;  %v2190_v37 = vsel %vm1934_vm15, %v6616_v36, %v4195_v20  ;;  %vm1940_vm4 = vcmp.gt.f32.partialorder %v6660_v43, 0.0 }
 0x30b   : > { %5247 = vpow2.f32 %v2024_v54  ;;  %v2028_v61 = vmul.f32 1.442695, %v6668_v34  ;;  %v2191_v59 = vsel %vm1935_vm14, %v6622_v8, %v4196_v24  ;;  %v2246_v57 = vpack.c.bf16 %v2190_v37, %v2188_v52 }
 0x30c   : > { %5249 = vpow2.f32 %v2026_v11  ;;  %v2030_v31 = vmul.f32 1.442695, %v6674_v25  ;;  %v2247_v15 = vpack.c.bf16 %v2191_v59, %v2189_v16  ;;  %vm1941_vm5 = vcmp.gt.f32.partialorder %v6664_v29, 0.0 }
 0x30d   : > { %v5240_v7 = vpop.eup %5239  ;;  %5251 = vpow2.f32 %v2028_v61  ;;  %vm1943_vm6 = vcmp.gt.f32.partialorder %v6674_v25, 0.0  ;;  %vm1942_vm7 = vcmp.gt.f32.partialorder %v6668_v34, 0.0 }
 0x30e   : > { %v5242_v9 = vpop.eup %5241  ;;  %5253 = vpow2.f32 %v2030_v31  ;;  %v1821_v18 = vpop.f32.mrb[24].mxu1  ;;  %2463 = vmatprep.mubr.bf16.mxu0 %v2247_v15  ;;  %v4197_v12 = vadd.f32 -1.0, %v5240_v7 }
 0x30f   : > { %v5244_v8 = vpop.eup %5243  ;;  %v4198_v28 = vadd.f32 -1.0, %v5242_v9  ;;  %v6686_v42 = vadd.f32 %v1821_v18, %v6555_v47  ;;  %v1823_v14 = vpop.f32.mrb[25].mxu1  ;;  %2464 = vmatmul.mubr.bf16.gmra.mrb[76].mxu0 %v2246_v57 }
 0x310   : > { %v5246_v38 = vpop.eup %5245  ;;  %v6690_v23 = vadd.f32 %v1823_v14, %v6559_v56  ;;  %v1825_v55 = vpop.f32.mrb[26].mxu1  ;;  %v4199_v36 = vadd.f32 -1.0, %v5244_v8  ;;  %v2192_v35 = vsel %vm1936_vm0, %v6634_v39, %v4197_v12 }
 0x311   : > { %v4200_v45 = vadd.f32 -1.0, %v5246_v38  ;;  %v2032_v50 = vmul.f32 1.442695, %v6686_v42  ;;  %v6694_v53 = vadd.f32 %v1825_v55, %v6555_v47  ;;  %v1827_v4 = vpop.f32.mrb[27].mxu1  ;;  %v2193_v58 = vsel %vm1937_vm1, %v6638_v1, %v4198_v28 }
 0x312   : > { %v2034_v32 = vmul.f32 1.442695, %v6690_v23  ;;  %v6700_v27 = vadd.f32 %v1827_v4, %v6559_v56  ;;  %v2194_v44 = vsel %vm1938_vm3, %v6642_v63, %v4199_v36  ;;  %vm1944_vm8 = vcmp.gt.f32.partialorder %v6686_v42, 0.0 }
 0x313   : > { %5255 = vpow2.f32 %v2032_v50  ;;  %v2036_v21 = vmul.f32 1.442695, %v6694_v53  ;;  %v2195_v41 = vsel %vm1939_vm2, %v6648_v2, %v4200_v45  ;;  %v2248_v1 = vpack.c.bf16 %v2194_v44, %v2192_v35 }
 0x314   : > { %5257 = vpow2.f32 %v2034_v32  ;;  %v2038_v48 = vmul.f32 1.442695, %v6700_v27  ;;  %v2249_v26 = vpack.c.bf16 %v2195_v41, %v2193_v58  ;;  %vm1945_vm9 = vcmp.gt.f32.partialorder %v6690_v23, 0.0 }
 0x315   : > { %v5248_v46 = vpop.eup %5247  ;;  %5259 = vpow2.f32 %v2036_v21  ;;  %vm1947_vm10 = vcmp.gt.f32.partialorder %v6700_v27, 0.0  ;;  %vm1946_vm11 = vcmp.gt.f32.partialorder %v6694_v53, 0.0 }
 0x316   : > { %v5250_v60 = vpop.eup %5249  ;;  %5261 = vpow2.f32 %v2038_v48  ;;  %v1831_v0 = vpop.f32.mrb[28].mxu1  ;;  %2471 = vmatprep.mubr.bf16.mxu0 %v2249_v26  ;;  %v4201_v17 = vadd.f32 -1.0, %v5248_v46 }
 0x317   : > { %v5252_v2 = vpop.eup %5251  ;;  %v4202_v51 = vadd.f32 -1.0, %v5250_v60  ;;  %v6712_v6 = vadd.f32 %v1831_v0, %v6555_v47  ;;  %v1833_v5 = vpop.f32.mrb[29].mxu1  ;;  %2472 = vmatmul.mubr.bf16.gmra.mrb[80].mxu0 %v2248_v1 }
 0x318   : > { %v5254_v10 = vpop.eup %5253  ;;  %v6716_v30 = vadd.f32 %v1833_v5, %v6559_v56  ;;  %v1835_v39 = vpop.f32.mrb[30].mxu1  ;;  %v4203_v63 = vadd.f32 -1.0, %v5252_v2  ;;  %v2196_v61 = vsel %vm1940_vm4, %v6660_v43, %v4201_v17 }
 0x319   : > { %v4204_v49 = vadd.f32 -1.0, %v5254_v10  ;;  %v2040_v40 = vmul.f32 1.442695, %v6712_v6  ;;  %v6720_v13 = vadd.f32 %v1835_v39, %v6555_v47  ;;  %v1837_v3 = vpop.f32.mrb[31].mxu1  ;;  %v2197_v20 = vsel %vm1941_vm5, %v6664_v29, %v4202_v51 }
 0x31a   : > { %v2042_v62 = vmul.f32 1.442695, %v6716_v30  ;;  %v6726_v19 = vadd.f32 %v1837_v3, %v6559_v56  ;;  %v2198_v16 = vsel %vm1942_vm7, %v6668_v34, %v4203_v63  ;;  %vm1948_vm12 = vcmp.gt.f32.partialorder %v6712_v6, 0.0 }
 0x31b   : > { %5263 = vpow2.f32 %v2040_v40  ;;  %v2044_v22 = vmul.f32 1.442695, %v6720_v13  ;;  %v2199_v24 = vsel %vm1943_vm6, %v6674_v25, %v4204_v49  ;;  %v2250_v29 = vpack.c.bf16 %v2198_v16, %v2196_v61 }
 0x31c   : > { %5265 = vpow2.f32 %v2042_v62  ;;  %v2046_v54 = vmul.f32 1.442695, %v6726_v19  ;;  %v2251_v33 = vpack.c.bf16 %v2199_v24, %v2197_v20  ;;  %vm1949_vm13 = vcmp.gt.f32.partialorder %v6716_v30, 0.0 }
 0x31d   : > { %v5256_v11 = vpop.eup %5255  ;;  %5267 = vpow2.f32 %v2044_v22  ;;  %vm1951_vm14 = vcmp.gt.f32.partialorder %v6726_v19, 0.0  ;;  %vm1950_vm15 = vcmp.gt.f32.partialorder %v6720_v13, 0.0 }
 0x31e   : > { %v5258_v59 = vpop.eup %5257  ;;  %5269 = vpow2.f32 %v2046_v54  ;;  %v1841_v31 = vpop.f32.mrb[32].mxu1  ;;  %2479 = vmatprep.mubr.bf16.mxu0 %v2251_v33  ;;  %v4205_v9 = vadd.f32 -1.0, %v5256_v11 }
 0x31f   : > { %v5260_v25 = vpop.eup %5259  ;;  %v4206_v15 = vadd.f32 -1.0, %v5258_v59  ;;  %v6738_v7 = vadd.f32 %v1841_v31, %v6555_v47  ;;  %v1843_v52 = vpop.f32.mrb[33].mxu1  ;;  %2480 = vmatmul.mubr.bf16.gmra.mrb[84].mxu0 %v2250_v29 }
 0x320   : > { %v5262_v37 = vpop.eup %5261  ;;  %v6742_v18 = vadd.f32 %v1843_v52, %v6559_v56  ;;  %v1845_v43 = vpop.f32.mrb[34].mxu1  ;;  %v4207_v34 = vadd.f32 -1.0, %v5260_v25  ;;  %v2200_v21 = vsel %vm1944_vm8, %v6686_v42, %v4205_v9 }
 0x321   : > { %v4208_v57 = vadd.f32 -1.0, %v5262_v37  ;;  %v2048_v8 = vmul.f32 1.442695, %v6738_v7  ;;  %v6746_v28 = vadd.f32 %v1845_v43, %v6555_v47  ;;  %v1847_v14 = vpop.f32.mrb[35].mxu1  ;;  %v2201_v36 = vsel %vm1945_vm9, %v6690_v23, %v4206_v15 }
 0x322   : > { %v2050_v38 = vmul.f32 1.442695, %v6742_v18  ;;  %v6752_v12 = vadd.f32 %v1847_v14, %v6559_v56  ;;  %v2202_v58 = vsel %vm1946_vm11, %v6694_v53, %v4207_v34  ;;  %vm1952_vm0 = vcmp.gt.f32.partialorder %v6738_v7, 0.0 }
 0x323   : > { %5271 = vpow2.f32 %v2048_v8  ;;  %v2052_v55 = vmul.f32 1.442695, %v6746_v28  ;;  %v2203_v45 = vsel %vm1947_vm10, %v6700_v27, %v4208_v57  ;;  %v2252_v23 = vpack.c.bf16 %v2202_v58, %v2200_v21 }
 0x324   : > { %5273 = vpow2.f32 %v2050_v38  ;;  %v2054_v50 = vmul.f32 1.442695, %v6752_v12  ;;  %v2253_v4 = vpack.c.bf16 %v2203_v45, %v2201_v36  ;;  %vm1953_vm1 = vcmp.gt.f32.partialorder %v6742_v18, 0.0 }
 0x325   : > { %v5264_v32 = vpop.eup %5263  ;;  %5275 = vpow2.f32 %v2052_v55  ;;  %vm1955_vm2 = vcmp.gt.f32.partialorder %v6752_v12, 0.0  ;;  %vm1954_vm3 = vcmp.gt.f32.partialorder %v6746_v28, 0.0 }
 0x326   : > { %v5266_v41 = vpop.eup %5265  ;;  %5277 = vpow2.f32 %v2054_v50  ;;  %v1851_v48 = vpop.f32.mrb[36].mxu1  ;;  %2487 = vmatprep.mubr.bf16.mxu0 %v2253_v4  ;;  %v4209_v60 = vadd.f32 -1.0, %v5264_v32 }
 0x327   : > { %v5268_v27 = vpop.eup %5267  ;;  %v4210_v26 = vadd.f32 -1.0, %v5266_v41  ;;  %v6764_v46 = vadd.f32 %v1851_v48, %v6555_v47  ;;  %v1853_v35 = vpop.f32.mrb[37].mxu1  ;;  %2488 = vmatmul.mubr.bf16.gmra.mrb[88].mxu0 %v2252_v23 }
 0x328   : > { %v5270_v44 = vpop.eup %5269  ;;  %v6768_v0 = vadd.f32 %v1853_v35, %v6559_v56  ;;  %v1855_v42 = vpop.f32.mrb[38].mxu1  ;;  %v4211_v53 = vadd.f32 -1.0, %v5268_v27  ;;  %v2204_v22 = vsel %vm1948_vm12, %v6712_v6, %v4209_v60 }
 0x329   : > { %v4212_v1 = vadd.f32 -1.0, %v5270_v44  ;;  %v2056_v2 = vmul.f32 1.442695, %v6764_v46  ;;  %v6772_v51 = vadd.f32 %v1855_v42, %v6555_v47  ;;  %v1857_v5 = vpop.f32.mrb[39].mxu1  ;;  %v2205_v63 = vsel %vm1949_vm13, %v6716_v30, %v4210_v26 }
 0x32a   : > { %v2058_v10 = vmul.f32 1.442695, %v6768_v0  ;;  %v6778_v17 = vadd.f32 %v1857_v5, %v6559_v56  ;;  %v2206_v20 = vsel %vm1950_vm15, %v6720_v13, %v4211_v53  ;;  %vm1956_vm4 = vcmp.gt.f32.partialorder %v6764_v46, 0.0 }
 0x32b   : > { %5279 = vpow2.f32 %v2056_v2  ;;  %v2060_v39 = vmul.f32 1.442695, %v6772_v51  ;;  %v2207_v49 = vsel %vm1951_vm14, %v6726_v19, %v4212_v1  ;;  %v2254_v30 = vpack.c.bf16 %v2206_v20, %v2204_v22 }
 0x32c   : > { %5281 = vpow2.f32 %v2058_v10  ;;  %v2062_v40 = vmul.f32 1.442695, %v6778_v17  ;;  %v2255_v3 = vpack.c.bf16 %v2207_v49, %v2205_v63  ;;  %vm1957_vm5 = vcmp.gt.f32.partialorder %v6768_v0, 0.0 }
 0x32d   : > { %v5272_v62 = vpop.eup %5271  ;;  %5283 = vpow2.f32 %v2060_v39  ;;  %vm1959_vm6 = vcmp.gt.f32.partialorder %v6778_v17, 0.0  ;;  %vm1958_vm7 = vcmp.gt.f32.partialorder %v6772_v51, 0.0 }
 0x32e   : > { %v5274_v24 = vpop.eup %5273  ;;  %5285 = vpow2.f32 %v2062_v40  ;;  %v1861_v54 = vpop.f32.mrb[40].mxu1  ;;  %2495 = vmatprep.mubr.bf16.mxu0 %v2255_v3  ;;  %v4213_v59 = vadd.f32 -1.0, %v5272_v62 }
 0x32f   : > { %v5276_v19 = vpop.eup %5275  ;;  %v4214_v33 = vadd.f32 -1.0, %v5274_v24  ;;  %v6790_v11 = vadd.f32 %v1861_v54, %v6555_v47  ;;  %v1863_v61 = vpop.f32.mrb[41].mxu1  ;;  %2496 = vmatmul.mubr.bf16.gmra.mrb[92].mxu0 %v2254_v30 }
 0x330   : > { %v5278_v16 = vpop.eup %5277  ;;  %v6794_v31 = vadd.f32 %v1863_v61, %v6559_v56  ;;  %v1865_v6 = vpop.f32.mrb[42].mxu1  ;;  %v4215_v13 = vadd.f32 -1.0, %v5276_v19  ;;  %v2208_v55 = vsel %vm1952_vm0, %v6738_v7, %v4213_v59 }
 0x331   : > { %v4216_v29 = vadd.f32 -1.0, %v5278_v16  ;;  %v2064_v25 = vmul.f32 1.442695, %v6790_v11  ;;  %v6798_v15 = vadd.f32 %v1865_v6, %v6555_v47  ;;  %v1867_v52 = vpop.f32.mrb[43].mxu1  ;;  %v2209_v34 = vsel %vm1953_vm1, %v6742_v18, %v4214_v33 }
 0x332   : > { %v2066_v37 = vmul.f32 1.442695, %v6794_v31  ;;  %v6804_v9 = vadd.f32 %v1867_v52, %v6559_v56  ;;  %v2210_v36 = vsel %vm1954_vm3, %v6746_v28, %v4215_v13  ;;  %vm1960_vm8 = vcmp.gt.f32.partialorder %v6790_v11, 0.0 }
 0x333   : > { %5287 = vpow2.f32 %v2064_v25  ;;  %v2068_v43 = vmul.f32 1.442695, %v6798_v15  ;;  %v2211_v57 = vsel %vm1955_vm2, %v6752_v12, %v4216_v29  ;;  %v2256_v18 = vpack.c.bf16 %v2210_v36, %v2208_v55 }
 0x334   : > { %5289 = vpow2.f32 %v2066_v37  ;;  %v2070_v8 = vmul.f32 1.442695, %v6804_v9  ;;  %v2257_v14 = vpack.c.bf16 %v2211_v57, %v2209_v34  ;;  %vm1961_vm9 = vcmp.gt.f32.partialorder %v6794_v31, 0.0 }
 0x335   : > { %v5280_v38 = vpop.eup %5279  ;;  %5291 = vpow2.f32 %v2068_v43  ;;  %vm1963_vm10 = vcmp.gt.f32.partialorder %v6804_v9, 0.0  ;;  %vm1962_vm11 = vcmp.gt.f32.partialorder %v6798_v15, 0.0 }
 0x336   : > { %v5282_v45 = vpop.eup %5281  ;;  %5293 = vpow2.f32 %v2070_v8  ;;  %v1871_v50 = vpop.f32.mrb[44].mxu1  ;;  %2503 = vmatprep.mubr.bf16.mxu0 %v2257_v14  ;;  %v4217_v41 = vadd.f32 -1.0, %v5280_v38 }
 0x337   : > { %v5284_v12 = vpop.eup %5283  ;;  %v4218_v4 = vadd.f32 -1.0, %v5282_v45  ;;  %v6816_v32 = vadd.f32 %v1871_v50, %v6555_v47  ;;  %v1873_v21 = vpop.f32.mrb[45].mxu1  ;;  %2504 = vmatmul.mubr.bf16.gmra.mrb[96].mxu0 %v2256_v18 }
 0x338   : > { %v5286_v58 = vpop.eup %5285  ;;  %v6820_v48 = vadd.f32 %v1873_v21, %v6559_v56  ;;  %v1875_v7 = vpop.f32.mrb[46].mxu1  ;;  %v4219_v28 = vadd.f32 -1.0, %v5284_v12  ;;  %v2212_v39 = vsel %vm1956_vm4, %v6764_v46, %v4217_v41 }
 0x339   : > { %v4220_v23 = vadd.f32 -1.0, %v5286_v58  ;;  %v2072_v27 = vmul.f32 1.442695, %v6816_v32  ;;  %v6824_v26 = vadd.f32 %v1875_v7, %v6555_v47  ;;  %v1877_v35 = vpop.f32.mrb[47].mxu1  ;;  %v2213_v53 = vsel %vm1957_vm5, %v6768_v0, %v4218_v4 }
 0x33a   : > { %v2074_v44 = vmul.f32 1.442695, %v6820_v48  ;;  %v6830_v60 = vadd.f32 %v1877_v35, %v6559_v56  ;;  %v2214_v63 = vsel %vm1958_vm7, %v6772_v51, %v4219_v28  ;;  %vm1964_vm12 = vcmp.gt.f32.partialorder %v6816_v32, 0.0 }
 0x33b   : > { %5295 = vpow2.f32 %v2072_v27  ;;  %v2076_v42 = vmul.f32 1.442695, %v6824_v26  ;;  %v2215_v1 = vsel %vm1959_vm6, %v6778_v17, %v4220_v23  ;;  %v2258_v0 = vpack.c.bf16 %v2214_v63, %v2212_v39 }
 0x33c   : > { %5297 = vpow2.f32 %v2074_v44  ;;  %v2078_v2 = vmul.f32 1.442695, %v6830_v60  ;;  %v2259_v5 = vpack.c.bf16 %v2215_v1, %v2213_v53  ;;  %vm1965_vm13 = vcmp.gt.f32.partialorder %v6820_v48, 0.0 }
 0x33d   : > { %v5288_v10 = vpop.eup %5287  ;;  %5299 = vpow2.f32 %v2076_v42  ;;  %vm1967_vm14 = vcmp.gt.f32.partialorder %v6830_v60, 0.0  ;;  %vm1966_vm15 = vcmp.gt.f32.partialorder %v6824_v26, 0.0 }
 0x33e   : > { %v5290_v49 = vpop.eup %5289  ;;  %5301 = vpow2.f32 %v2078_v2  ;;  %v1881_v40 = vpop.f32.mrb[48].mxu1  ;;  %2511 = vmatprep.mubr.bf16.mxu0 %v2259_v5  ;;  %v4221_v24 = vadd.f32 -1.0, %v5288_v10 }
 0x33f   : > { %v5292_v17 = vpop.eup %5291  ;;  %v4222_v3 = vadd.f32 -1.0, %v5290_v49  ;;  %v6842_v62 = vadd.f32 %v1881_v40, %v6555_v47  ;;  %v1883_v22 = vpop.f32.mrb[49].mxu1  ;;  %2512 = vmatmul.mubr.bf16.gmra.mrb[100].mxu0 %v2258_v0 }
 0x340   : > { %v5294_v20 = vpop.eup %5293  ;;  %v6846_v54 = vadd.f32 %v1883_v22, %v6559_v56  ;;  %v1885_v46 = vpop.f32.mrb[50].mxu1  ;;  %v4223_v51 = vadd.f32 -1.0, %v5292_v17  ;;  %v2216_v43 = vsel %vm1960_vm8, %v6790_v11, %v4221_v24 }
 0x341   : > { %v4224_v30 = vadd.f32 -1.0, %v5294_v20  ;;  %v2080_v19 = vmul.f32 1.442695, %v6842_v62  ;;  %v6850_v33 = vadd.f32 %v1885_v46, %v6555_v47  ;;  %v1887_v61 = vpop.f32.mrb[51].mxu1  ;;  %v2217_v13 = vsel %vm1961_vm9, %v6794_v31, %v4222_v3 }
 0x342   : > { %v2082_v16 = vmul.f32 1.442695, %v6846_v54  ;;  %v6856_v59 = vadd.f32 %v1887_v61, %v6559_v56  ;;  %v2218_v34 = vsel %vm1962_vm11, %v6798_v15, %v4223_v51  ;;  %vm1968_vm0 = vcmp.gt.f32.partialorder %v6842_v62, 0.0 }
 0x343   : > { %5303 = vpow2.f32 %v2080_v19  ;;  %v2084_v6 = vmul.f32 1.442695, %v6850_v33  ;;  %v2219_v29 = vsel %vm1963_vm10, %v6804_v9, %v4224_v30  ;;  %v2260_v31 = vpack.c.bf16 %v2218_v34, %v2216_v43 }
 0x344   : > { %5305 = vpow2.f32 %v2082_v16  ;;  %v2086_v25 = vmul.f32 1.442695, %v6856_v59  ;;  %v2261_v52 = vpack.c.bf16 %v2219_v29, %v2217_v13  ;;  %vm1969_vm1 = vcmp.gt.f32.partialorder %v6846_v54, 0.0 }
 0x345   : > { %v5296_v37 = vpop.eup %5295  ;;  %5307 = vpow2.f32 %v2084_v6  ;;  %vm1971_vm2 = vcmp.gt.f32.partialorder %v6856_v59, 0.0  ;;  %vm1970_vm3 = vcmp.gt.f32.partialorder %v6850_v33, 0.0 }
 0x346   : > { %v5298_v57 = vpop.eup %5297  ;;  %5309 = vpow2.f32 %v2086_v25  ;;  %v1891_v8 = vpop.f32.mrb[52].mxu1  ;;  %2519 = vmatprep.mubr.bf16.mxu0 %v2261_v52  ;;  %v4225_v45 = vadd.f32 -1.0, %v5296_v37 }
 0x347   : > { %v5300_v9 = vpop.eup %5299  ;;  %v4226_v14 = vadd.f32 -1.0, %v5298_v57  ;;  %v6868_v38 = vadd.f32 %v1891_v8, %v6555_v47  ;;  %v1893_v55 = vpop.f32.mrb[53].mxu1  ;;  %2520 = vmatmul.mubr.bf16.gmra.mrb[104].mxu0 %v2260_v31 }
 0x348   : > { %v5302_v36 = vpop.eup %5301  ;;  %v6872_v50 = vadd.f32 %v1893_v55, %v6559_v56  ;;  %v1895_v11 = vpop.f32.mrb[54].mxu1  ;;  %v4227_v15 = vadd.f32 -1.0, %v5300_v9  ;;  %v2220_v42 = vsel %vm1964_vm12, %v6816_v32, %v4225_v45 }
 0x349   : > { %v4228_v18 = vadd.f32 -1.0, %v5302_v36  ;;  %v2088_v12 = vmul.f32 1.442695, %v6868_v38  ;;  %v6876_v4 = vadd.f32 %v1895_v11, %v6555_v47  ;;  %v1897_v21 = vpop.f32.mrb[55].mxu1  ;;  %v2221_v28 = vsel %vm1965_vm13, %v6820_v48, %v4226_v14 }
 0x34a   : > { %v2090_v58 = vmul.f32 1.442695, %v6872_v50  ;;  %v6882_v41 = vadd.f32 %v1897_v21, %v6559_v56  ;;  %v2222_v53 = vsel %vm1966_vm15, %v6824_v26, %v4227_v15  ;;  %vm1972_vm4 = vcmp.gt.f32.partialorder %v6868_v38, 0.0 }
 0x34b   : > { %5311 = vpow2.f32 %v2088_v12  ;;  %v2092_v7 = vmul.f32 1.442695, %v6876_v4  ;;  %v2223_v23 = vsel %vm1967_vm14, %v6830_v60, %v4228_v18  ;;  %v2262_v48 = vpack.c.bf16 %v2222_v53, %v2220_v42 }
 0x34c   : > { %5313 = vpow2.f32 %v2090_v58  ;;  %v2094_v27 = vmul.f32 1.442695, %v6882_v41  ;;  %v2263_v35 = vpack.c.bf16 %v2223_v23, %v2221_v28  ;;  %vm1973_vm5 = vcmp.gt.f32.partialorder %v6872_v50, 0.0 }
 0x34d   : > { %v5304_v44 = vpop.eup %5303  ;;  %5315 = vpow2.f32 %v2092_v7  ;;  %vm1975_vm6 = vcmp.gt.f32.partialorder %v6882_v41, 0.0  ;;  %vm1974_vm7 = vcmp.gt.f32.partialorder %v6876_v4, 0.0 }
 0x34e   : > { %v5306_v1 = vpop.eup %5305  ;;  %5317 = vpow2.f32 %v2094_v27  ;;  %v1901_v2 = vpop.f32.mrb[56].mxu1  ;;  %2527 = vmatprep.mubr.bf16.mxu0 %v2263_v35  ;;  %v4229_v49 = vadd.f32 -1.0, %v5304_v44 }
 0x34f   : > { %v5308_v60 = vpop.eup %5307  ;;  %v4230_v5 = vadd.f32 -1.0, %v5306_v1  ;;  %v6894_v10 = vadd.f32 %v1901_v2, %v6555_v47  ;;  %v1903_v39 = vpop.f32.mrb[57].mxu1  ;;  %2528 = vmatmul.mubr.bf16.gmra.mrb[108].mxu0 %v2262_v48 }
 0x350   : > { %v5310_v63 = vpop.eup %5309  ;;  %v6898_v40 = vadd.f32 %v1903_v39, %v6559_v56  ;;  %v1905_v32 = vpop.f32.mrb[58].mxu1  ;;  %v4231_v26 = vadd.f32 -1.0, %v5308_v60  ;;  %v2224_v6 = vsel %vm1968_vm0, %v6842_v62, %v4229_v49 }
 0x351   : > { %v4232_v0 = vadd.f32 -1.0, %v5310_v63  ;;  %v2096_v17 = vmul.f32 1.442695, %v6894_v10  ;;  %v6902_v3 = vadd.f32 %v1905_v32, %v6555_v47  ;;  %v1907_v22 = vpop.f32.mrb[59].mxu1  ;;  %v2225_v51 = vsel %vm1969_vm1, %v6846_v54, %v4230_v5 }
 0x352   : > { %v2098_v20 = vmul.f32 1.442695, %v6898_v40  ;;  %v6908_v24 = vadd.f32 %v1907_v22, %v6559_v56  ;;  %v2226_v13 = vsel %vm1970_vm3, %v6850_v33, %v4231_v26  ;;  %vm1976_vm8 = vcmp.gt.f32.partialorder %v6894_v10, 0.0 }
 0x353   : > { %5319 = vpow2.f32 %v2096_v17  ;;  %v2100_v46 = vmul.f32 1.442695, %v6902_v3  ;;  %v2227_v30 = vsel %vm1971_vm2, %v6856_v59, %v4232_v0  ;;  %v2264_v54 = vpack.c.bf16 %v2226_v13, %v2224_v6 }
 0x354   : > { %5321 = vpow2.f32 %v2098_v20  ;;  %v2102_v19 = vmul.f32 1.442695, %v6908_v24  ;;  %v2265_v61 = vpack.c.bf16 %v2227_v30, %v2225_v51  ;;  %vm1978_vm9 = vcmp.gt.f32.partialorder %v6902_v3, 0.0 }
 0x355   : > { %v5312_v16 = vpop.eup %5311  ;;  %5323 = vpow2.f32 %v2100_v46  ;;  %vm1977_vm10 = vcmp.gt.f32.partialorder %v6898_v40, 0.0  ;;  %vm1979_vm11 = vcmp.gt.f32.partialorder %v6908_v24, 0.0 }
 0x356   : > { %v5314_v29 = vpop.eup %5313  ;;  %5325 = vpow2.f32 %v2102_v19  ;;  %v1911_v25 = vpop.f32.mrb[60].mxu1  ;;  %2535 = vmatprep.mubr.bf16.mxu0 %v2265_v61  ;;  %v4233_v57 = vadd.f32 -1.0, %v5312_v16  ;;  %v5063_v61 = vld [vmem:[#allocation11] sm:$0xff]   ;;  %v5064_v16 = vld [vmem:[#allocation11 + $0x8] sm:$0xff]  }
 0x357   : > { %v5316_v59 = vpop.eup %5315  ;;  %v4234_v52 = vadd.f32 -1.0, %v5314_v29  ;;  %v6920_v37 = vadd.f32 %v1911_v25, %v6555_v47  ;;  %v1913_v43 = vpop.f32.mrb[61].mxu1  ;;  %2536 = vmatmul.mubr.bf16.gmra.mrb[112].mxu0 %v2264_v54  ;;  %4657 = vmatprep.subr.bf16.mxu0 %v5063_v61  ;;  %v5047_v25 = vld [vmem:[%s6093_s10 + $0x8] ss:$12 sps:$4 sm:$0xff]  }
 0x358   : > { %v5318_v34 = vpop.eup %5317  ;;  %v1914_v8 = vadd.f32 %v1913_v43, %v6559_v56  ;;  %v1915_v62 = vpop.f32.mrb[62].mxu1  ;;  %v4235_v31 = vadd.f32 -1.0, %v5316_v59  ;;  %v2228_v58 = vsel %vm1972_vm4, %v6868_v38, %v4233_v57  ;;  %4658 = vmatpush3.bf16.msra.mxu0 %v5063_v61  ;;  %v5065_v54 = vld [vmem:[#allocation11 + $0x10] sm:$0xff]  }
 0x359   : > { %v4236_v33 = vadd.f32 -1.0, %v5318_v34  ;;  %v2104_v9 = vmul.f32 1.442695, %v6920_v37  ;;  %v1916_v14 = vadd.f32 %v1915_v62, %v6555_v47  ;;  %v1917_v55 = vpop.f32.mrb[63].mxu1  ;;  %v2229_v15 = vsel %vm1973_vm5, %v6872_v50, %v4234_v52  ;;  %4659 = vmatprep.subr.bf16.mxu0 %v5064_v16 }
 0x35a   : > { %v2106_v36 = vmul.f32 1.442695, %v1914_v8  ;;  %v1918_v45 = vadd.f32 %v1917_v55, %v6559_v56  ;;  %v2230_v7 = vsel %vm1974_vm7, %v6876_v4, %v4235_v31  ;;  %vm1980_vm12 = vcmp.gt.f32.partialorder %v6920_v37, 0.0 }
 0x35b   : > { %5327 = vpow2.f32 %v2104_v9  ;;  %v2108_v11 = vmul.f32 1.442695, %v1916_v14  ;;  %v2231_v18 = vsel %vm1975_vm6, %v6882_v41, %v4236_v33  ;;  %v2266_v50 = vpack.c.bf16 %v2230_v7, %v2228_v58  ;;  %v5048_v33 = vld [vmem:[%s6093_s10 + $0x20] ss:$12 sps:$4 sm:$0xff]  }
 0x35c   : > { %5329 = vpow2.f32 %v2106_v36  ;;  %v2110_v12 = vmul.f32 1.442695, %v1918_v45  ;;  %v2267_v21 = vpack.c.bf16 %v2231_v18, %v2229_v15  ;;  %vm1982_vm13 = vcmp.gt.f32.partialorder %v1916_v14, 0.0  ;;  %4660 = vmatpush3.bf16.msra.mxu0 %v5064_v16 }
 0x35d   : > { %v5320_v47 = vpop.eup %5319  ;;  %5331 = vpow2.f32 %v2108_v11  ;;  %vm1981_vm14 = vcmp.gt.f32.partialorder %v1914_v8, 0.0  ;;  %vm1983_vm15 = vcmp.gt.f32.partialorder %v1918_v45, 0.0  ;;  %4661 = vmatprep.subr.bf16.mxu0 %v5065_v54 }
 0x35e   : > { %v5322_v56 = vpop.eup %5321  ;;  %v4237_v28 = vadd.f32 -1.0, %v5320_v47  ;;  %5333 = vpow2.f32 %v2110_v12  ;;  %2543 = vmatprep.mubr.bf16.mxu0 %v2267_v21  ;;  %v5049_v21 = vld [vmem:[%s6093_s10 + $0x38] ss:$12 sps:$4 sm:$0xff]  }
 0x35f   : > { %v5324_v23 = vpop.eup %5323  ;;  %v4238_v41 = vadd.f32 -1.0, %v5322_v56  ;;  %2544 = vmatmul.mubr.bf16.gmra.mrb[116].mxu0 %v2266_v50 }
 0x360   : > { %v5326_v27 = vpop.eup %5325  ;;  %v4239_v35 = vadd.f32 -1.0, %v5324_v23  ;;  %v2232_v38 = vsel %vm1976_vm8, %v6894_v10, %v4237_v28  ;;  %4662 = vmatpush3.bf16.msra.mxu0 %v5065_v54 }
 0x361   : > { %v4240_v44 = vadd.f32 -1.0, %v5326_v27  ;;  %v2233_v42 = vsel %vm1977_vm10, %v6898_v40, %v4238_v41 }
 0x362   : > { %v2234_v4 = vsel %vm1978_vm9, %v6902_v3, %v4239_v35  ;;  %v5050_v35 = vld [vmem:[%s6093_s10 + $0x50] ss:$12 sps:$4 sm:$0xff]  }
 0x363   : > { %v2235_v53 = vsel %vm1979_vm11, %v6908_v24, %v4240_v44  ;;  %v2268_v1 = vpack.c.bf16 %v2234_v4, %v2232_v38  ;;  %v6950_v24 = vld [vmem:[%s7279_s1] ss:$0 sm:$0xff] }
 0x364   : > { %v2269_v2 = vpack.c.bf16 %v2235_v53, %v2233_v42 }
 0x365   : > { %v5328_v48 = vpop.eup %5327 }
 0x366   : > { %v5330_v60 = vpop.eup %5329  ;;  %v4241_v5 = vadd.f32 -1.0, %v5328_v48  ;;  %2551 = vmatprep.mubr.bf16.mxu0 %v2269_v2 }
 0x367   : > { %v5332_v39 = vpop.eup %5331  ;;  %v4242_v63 = vadd.f32 -1.0, %v5330_v60  ;;  %2552 = vmatmul.mubr.bf16.gmra.mrb[120].mxu0 %v2268_v1 }
 0x368   : > { %v5334_v49 = vpop.eup %5333  ;;  %v4243_v32 = vadd.f32 -1.0, %v5332_v39  ;;  %v2236_v40 = vsel %vm1980_vm12, %v6920_v37, %v4241_v5  ;;  %v5051_v5 = vld [vmem:[%s6093_s10 + $0x68] ss:$12 sps:$4 sm:$0xff]  }
 0x369   : > { %v4244_v10 = vadd.f32 -1.0, %v5334_v49  ;;  %v2237_v0 = vsel %vm1981_vm14, %v1914_v8, %v4242_v63 }
 0x36a   : > { %v2238_v26 = vsel %vm1982_vm13, %v1916_v14, %v4243_v32 }
 0x36b   : > { %v2239_v17 = vsel %vm1983_vm15, %v1918_v45, %v4244_v10  ;;  %v2270_v3 = vpack.c.bf16 %v2238_v26, %v2236_v40 }
 0x36c   : > { %v2271_v22 = vpack.c.bf16 %v2239_v17, %v2237_v0 }
 0x36e   : > { %2559 = vmatprep.mubr.bf16.mxu0 %v2271_v22 }
 0x36f   : > { %2560 = vmatmul.mubr.bf16.gmra.mrb[124].mxu0 %v2270_v3  ;;  %v5052_v3 = vld [vmem:[%s6093_s10 + $0x80] ss:$12 sps:$4 sm:$0xff]  }
 0x3ca   : > { %v4401_v20 = vpop.f32.mrb[64].mxu0 }
 0x3cb   : > { %v4402_v46 = vpop.f32.mrb[65].mxu0 }
 0x3cc   : > { %v4403_v51 = vadd.f32 %v4402_v46, %v4401_v20  ;;  %v4404_v30 = vpop.f32.mrb[66].mxu0 }
 0x3cd   : > { %v4405_v19 = vpop.f32.mrb[67].mxu0 }
 0x3ce   : > { %v2442_v6 = vadd.f32 %v4403_v51, %v6950_v24  ;;  %v4406_v13 = vadd.f32 %v4405_v19, %v4404_v30 }
 0x3d0   : > { %3793 = vst [vmem:[%s6953_s3 + $0x8] sm:$0xff] %v2442_v6  ;;  %v2445_v29 = vadd.f32 %v4406_v13, %v6950_v24  ;;  %v5053_v13 = vld [vmem:[%s6093_s10 + $0x98] ss:$12 sps:$4 sm:$0xff]  }
 0x3d2   : > { %3795 = vst [vmem:[%s6953_s3 + $0x18] sm:$0xff] %v2445_v29  ;;  %v4407_v59 = vpop.f32.mrb[68].mxu0  ;;  %v2568_v52 = vpack.c.bf16 %v2445_v29, %v2442_v6 }
 0x3d3   : > { %v4408_v37 = vpop.f32.mrb[69].mxu0 }
 0x3d4   : > { %v4409_v43 = vadd.f32 %v4408_v37, %v4407_v59  ;;  %v4410_v34 = vpop.f32.mrb[70].mxu0  ;;  %2847 = vmatprep.mubr.bf16.mxu1 %v2568_v52 }
 0x3d5   : > { %v4411_v57 = vpop.f32.mrb[71].mxu0  ;;  %2848 = vmatmul.mubr.bf16.vlgmr.msra.gmra.mrb[64].mxu1 %v5047_v25 }
 0x3d6   : > { %v2450_v8 = vadd.f32 %v4409_v43, %v6950_v24  ;;  %v4412_v62 = vadd.f32 %v4411_v57, %v4410_v34 }
 0x3d8   : > { %3797 = vst [vmem:[%s6953_s3 + $0x28] sm:$0xff] %v2450_v8  ;;  %v2453_v31 = vadd.f32 %v4412_v62, %v6950_v24 }
 0x3da   : > { %3799 = vst [vmem:[%s6953_s3 + $0x38] sm:$0xff] %v2453_v31  ;;  %v4413_v9 = vpop.f32.mrb[72].mxu0  ;;  %v2569_v14 = vpack.c.bf16 %v2453_v31, %v2450_v8  ;;  %v5054_v8 = vld [vmem:[%s6093_s10 + $0xb0] ss:$12 sps:$4 sm:$0xff]  }
 0x3db   : > { %v4414_v55 = vpop.f32.mrb[73].mxu0 }
 0x3dc   : > { %v4415_v36 = vadd.f32 %v4414_v55, %v4413_v9  ;;  %v4416_v45 = vpop.f32.mrb[74].mxu0  ;;  %2855 = vmatprep.mubr.bf16.mxu1 %v2569_v14 }
 0x3dd   : > { %v4417_v11 = vpop.f32.mrb[75].mxu0  ;;  %2856 = vmatmul.mubr.bf16.gmra.mrb[68].mxu1 %v5048_v33 }
 0x3de   : > { %v2458_v15 = vadd.f32 %v4415_v36, %v6950_v24  ;;  %v4418_v18 = vadd.f32 %v4417_v11, %v4416_v45 }
 0x3e0   : > { %3801 = vst [vmem:[%s6953_s3 + $0x48] sm:$0xff] %v2458_v15  ;;  %v2461_v12 = vadd.f32 %v4418_v18, %v6950_v24 }
 0x3e2   : > { %3803 = vst [vmem:[%s6953_s3 + $0x58] sm:$0xff] %v2461_v12  ;;  %v4419_v47 = vpop.f32.mrb[76].mxu0  ;;  %v2570_v58 = vpack.c.bf16 %v2461_v12, %v2458_v15  ;;  %v5055_v15 = vld [vmem:[%s6093_s10 + $0xc8] ss:$12 sps:$4 sm:$0xff]  }
 0x3e3   : > { %v4420_v7 = vpop.f32.mrb[77].mxu0 }
 0x3e4   : > { %v4421_v56 = vadd.f32 %v4420_v7, %v4419_v47  ;;  %v4422_v28 = vpop.f32.mrb[78].mxu0  ;;  %2863 = vmatprep.mubr.bf16.mxu1 %v2570_v58 }
 0x3e5   : > { %v4423_v50 = vpop.f32.mrb[79].mxu0  ;;  %2864 = vmatmul.mubr.bf16.gmra.mrb[72].mxu1 %v5049_v21 }
 0x3e6   : > { %v2466_v23 = vadd.f32 %v4421_v56, %v6950_v24  ;;  %v4424_v41 = vadd.f32 %v4423_v50, %v4422_v28 }
 0x3e8   : > { %3805 = vst [vmem:[%s6953_s3 + $0x68] sm:$0xff] %v2466_v23  ;;  %v2469_v27 = vadd.f32 %v4424_v41, %v6950_v24 }
 0x3ea   : > { %3807 = vst [vmem:[%s6953_s3 + $0x78] sm:$0xff] %v2469_v27  ;;  %v4425_v44 = vpop.f32.mrb[80].mxu0  ;;  %v2571_v38 = vpack.c.bf16 %v2469_v27, %v2466_v23  ;;  %v5056_v23 = vld [vmem:[%s6093_s10 + $0xe0] ss:$12 sps:$4 sm:$0xff]  }
 0x3eb   : > { %v4426_v4 = vpop.f32.mrb[81].mxu0 }
 0x3ec   : > { %v4427_v42 = vadd.f32 %v4426_v4, %v4425_v44  ;;  %v4428_v53 = vpop.f32.mrb[82].mxu0  ;;  %2871 = vmatprep.mubr.bf16.mxu1 %v2571_v38 }
 0x3ed   : > { %v4429_v1 = vpop.f32.mrb[83].mxu0  ;;  %2872 = vmatmul.mubr.bf16.gmra.mrb[76].mxu1 %v5050_v35 }
 0x3ee   : > { %v2474_v2 = vadd.f32 %v4427_v42, %v6950_v24  ;;  %v4430_v48 = vadd.f32 %v4429_v1, %v4428_v53 }
 0x3f0   : > { %3809 = vst [vmem:[%s6953_s3 + $0x88] sm:$0xff] %v2474_v2  ;;  %v2477_v60 = vadd.f32 %v4430_v48, %v6950_v24 }
 0x3f2   : > { %3811 = vst [vmem:[%s6953_s3 + $0x98] sm:$0xff] %v2477_v60  ;;  %v4431_v39 = vpop.f32.mrb[84].mxu0  ;;  %v2572_v63 = vpack.c.bf16 %v2477_v60, %v2474_v2  ;;  %v5057_v2 = vld [vmem:[%s6093_s10 + $0xf8] ss:$12 sps:$4 sm:$0xff]  }
 0x3f3   : > { %v4432_v49 = vpop.f32.mrb[85].mxu0 }
 0x3f4   : > { %v4433_v32 = vadd.f32 %v4432_v49, %v4431_v39  ;;  %v4434_v10 = vpop.f32.mrb[86].mxu0  ;;  %2879 = vmatprep.mubr.bf16.mxu1 %v2572_v63 }
 0x3f5   : > { %v4435_v40 = vpop.f32.mrb[87].mxu0  ;;  %2880 = vmatmul.mubr.bf16.gmra.mrb[80].mxu1 %v5051_v5 }
 0x3f6   : > { %v2482_v26 = vadd.f32 %v4433_v32, %v6950_v24  ;;  %v4436_v0 = vadd.f32 %v4435_v40, %v4434_v10 }
 0x3f8   : > { %3813 = vst [vmem:[%s6953_s3 + $0xa8] sm:$0xff] %v2482_v26  ;;  %v2485_v17 = vadd.f32 %v4436_v0, %v6950_v24 }
 0x3fa   : > { %3815 = vst [vmem:[%s6953_s3 + $0xb8] sm:$0xff] %v2485_v17  ;;  %v4437_v22 = vpop.f32.mrb[88].mxu0  ;;  %v2573_v20 = vpack.c.bf16 %v2485_v17, %v2482_v26  ;;  %v5058_v26 = vld [vmem:[%s6093_s10 + $0x110] ss:$12 sps:$4 sm:$0xff]  }
 0x3fb   : > { %v4438_v46 = vpop.f32.mrb[89].mxu0 }
 0x3fc   : > { %v4439_v51 = vadd.f32 %v4438_v46, %v4437_v22  ;;  %v4440_v30 = vpop.f32.mrb[90].mxu0  ;;  %2887 = vmatprep.mubr.bf16.mxu1 %v2573_v20 }
 0x3fd   : > { %v4441_v19 = vpop.f32.mrb[91].mxu0  ;;  %2888 = vmatmul.mubr.bf16.gmra.mrb[84].mxu1 %v5052_v3 }
 0x3fe   : > { %v2490_v61 = vadd.f32 %v4439_v51, %v6950_v24  ;;  %v4442_v16 = vadd.f32 %v4441_v19, %v4440_v30 }
 0x400   : > { %3817 = vst [vmem:[%s6953_s3 + $0xc8] sm:$0xff] %v2490_v61  ;;  %v2493_v6 = vadd.f32 %v4442_v16, %v6950_v24 }
 0x402   : > { %3819 = vst [vmem:[%s6953_s3 + $0xd8] sm:$0xff] %v2493_v6  ;;  %v4443_v29 = vpop.f32.mrb[92].mxu0  ;;  %v2574_v25 = vpack.c.bf16 %v2493_v6, %v2490_v61  ;;  %v5059_v61 = vld [vmem:[%s6093_s10 + $0x128] ss:$12 sps:$4 sm:$0xff]  }
 0x403   : > { %v4444_v54 = vpop.f32.mrb[93].mxu0 }
 0x404   : > { %v4445_v59 = vadd.f32 %v4444_v54, %v4443_v29  ;;  %v4446_v52 = vpop.f32.mrb[94].mxu0  ;;  %2895 = vmatprep.mubr.bf16.mxu1 %v2574_v25 }
 0x405   : > { %v4447_v37 = vpop.f32.mrb[95].mxu0  ;;  %2896 = vmatmul.mubr.bf16.gmra.mrb[88].mxu1 %v5053_v13 }
 0x406   : > { %v2498_v43 = vadd.f32 %v4445_v59, %v6950_v24  ;;  %v4448_v34 = vadd.f32 %v4447_v37, %v4446_v52  ;;  %v5066_v59 = vld [vmem:[#allocation11 + $0x18] sm:$0xff]  }
 0x407   : > { %4663 = vmatprep.subr.bf16.mxu0 %v5066_v59 }
 0x408   : > { %3821 = vst [vmem:[%s6953_s3 + $0xe8] sm:$0xff] %v2498_v43  ;;  %v2501_v57 = vadd.f32 %v4448_v34, %v6950_v24  ;;  %4664 = vmatpush3.bf16.msra.mxu0 %v5066_v59  ;;  %v5060_v34 = vld [vmem:[%s6093_s10 + $0x140] ss:$12 sps:$4 sm:$0xff]  }
 0x40a   : > { %3823 = vst [vmem:[%s6953_s3 + $0xf8] sm:$0xff] %v2501_v57  ;;  %v4449_v62 = vpop.f32.mrb[96].mxu0  ;;  %v2575_v31 = vpack.c.bf16 %v2501_v57, %v2498_v43  ;;  %v5067_v57 = vld [vmem:[#allocation11 + $0x20] sm:$0xff]  }
 0x40b   : > { %v4450_v33 = vpop.f32.mrb[97].mxu0  ;;  %4665 = vmatprep.subr.bf16.mxu0 %v5067_v57 }
 0x40c   : > { %v4451_v9 = vadd.f32 %v4450_v33, %v4449_v62  ;;  %v4452_v14 = vpop.f32.mrb[98].mxu0  ;;  %2903 = vmatprep.mubr.bf16.mxu1 %v2575_v31  ;;  %4666 = vmatpush3.bf16.msra.mxu0 %v5067_v57 }
 0x40d   : > { %v4453_v55 = vpop.f32.mrb[99].mxu0  ;;  %2904 = vmatmul.mubr.bf16.gmra.mrb[92].mxu1 %v5054_v8 }
 0x40e   : > { %v2506_v36 = vadd.f32 %v4451_v9, %v6950_v24  ;;  %v4454_v45 = vadd.f32 %v4453_v55, %v4452_v14  ;;  %v5068_v55 = vld [vmem:[#allocation11 + $0x28] sm:$0xff]  }
 0x40f   : > { %4667 = vmatprep.subr.bf16.mxu0 %v5068_v55 }
 0x410   : > { %3825 = vst [vmem:[%s6953_s3 + $0x108] sm:$0xff] %v2506_v36  ;;  %v2509_v11 = vadd.f32 %v4454_v45, %v6950_v24  ;;  %4668 = vmatpush3.bf16.msra.mxu0 %v5068_v55 }
 0x412   : > { %3827 = vst [vmem:[%s6953_s3 + $0x118] sm:$0xff] %v2509_v11  ;;  %v4455_v18 = vpop.f32.mrb[100].mxu0  ;;  %v2576_v12 = vpack.c.bf16 %v2509_v11, %v2506_v36 }
 0x413   : > { %v4456_v21 = vpop.f32.mrb[101].mxu0 }
 0x414   : > { %v4457_v47 = vadd.f32 %v4456_v21, %v4455_v18  ;;  %v4458_v58 = vpop.f32.mrb[102].mxu0  ;;  %2911 = vmatprep.mubr.bf16.mxu1 %v2576_v12  ;;  %v5069_v18 = vld [vmem:[#allocation11 + $0x30] sm:$0xff]  }
 0x415   : > { %v4459_v7 = vpop.f32.mrb[103].mxu0  ;;  %2912 = vmatmul.mubr.bf16.gmra.mrb[96].mxu1 %v5055_v15  ;;  %v5061_v15 = vld [vmem:[%s6093_s10 + $0x158] ss:$12 sps:$4 sm:$0xff]   ;;  %4669 = vmatprep.subr.bf16.mxu0 %v5069_v18 }
 0x416   : > { %v2514_v56 = vadd.f32 %v4457_v47, %v6950_v24  ;;  %v4460_v28 = vadd.f32 %v4459_v7, %v4458_v58  ;;  %4670 = vmatpush3.bf16.msra.mxu0 %v5069_v18 }
 0x418   : > { %3829 = vst [vmem:[%s6953_s3 + $0x128] sm:$0xff] %v2514_v56  ;;  %v2517_v50 = vadd.f32 %v4460_v28, %v6950_v24  ;;  %v5070_v28 = vld [vmem:[#allocation11 + $0x38] sm:$0xff]  }
 0x419   : > { %4671 = vmatprep.subr.bf16.mxu0 %v5070_v28 }
 0x41a   : > { %3831 = vst [vmem:[%s6953_s3 + $0x138] sm:$0xff] %v2517_v50  ;;  %v4461_v41 = vpop.f32.mrb[104].mxu0  ;;  %v2577_v27 = vpack.c.bf16 %v2517_v50, %v2514_v56  ;;  %4672 = vmatpush3.bf16.msra.mxu0 %v5070_v28 }
 0x41b   : > { %v4462_v35 = vpop.f32.mrb[105].mxu0 }
 0x41c   : > { %v4463_v44 = vadd.f32 %v4462_v35, %v4461_v41  ;;  %v4464_v38 = vpop.f32.mrb[106].mxu0  ;;  %2919 = vmatprep.mubr.bf16.mxu1 %v2577_v27  ;;  %v5062_v27 = vld [vmem:[%s6093_s10 + $0x170] ss:$12 sps:$4 sm:$0xff]   ;;  %s5665_s10 = sshll.u32 %s5754_s20, 4  ;;  %s5666_s10 = int_to_ptr.vmem [resolvable:$false] %s5665_s10 }
 0x41d   : > { %v4465_v4 = vpop.f32.mrb[107].mxu0  ;;  %2920 = vmatmul.mubr.bf16.gmra.mrb[100].mxu1 %v5056_v23  ;;  %p5668_p11 = scmp.lt.s32.totalorder %s7186_s18, %s5666_s10 }
 0x41e   : > { %v2522_v42 = vadd.f32 %v4463_v44, %v6950_v24  ;;  %v4466_v53 = vadd.f32 %v4465_v4, %v4464_v38  ;;  %v7037_v38 = vld [vmem:[%s7280_s17] ss:$0 sm:$0xff]  ;;  %s5661_s17 = scalar_lea.vmem %s7186_s18, 8192 }
 0x41f   : > { %p5662_p0 = scmp.ne.s32.totalorder %s7186_s18, %s5661_s17 }
 0x420   : > { %3833 = vst [vmem:[%s6953_s3 + $0x148] sm:$0xff] %v2522_v42  ;;  %v2525_v1 = vadd.f32 %v4466_v53, %v6950_v24 }
 0x421   : > { %p5663_p10 = pnand %p5662_p0, %p7284_p4 }
 0x422   : > { %3835 = vst [vmem:[%s6953_s3 + $0x158] sm:$0xff] %v2525_v1  ;;  %v4467_v48 = vpop.f32.mrb[108].mxu0  ;;  %v2578_v60 = vpack.c.bf16 %v2525_v1, %v2522_v42 }
 0x423   : > { %v4468_v5 = vpop.f32.mrb[109].mxu0  ;;  %p5664_p1 = pneg %p5663_p10 }
 0x424   : > { %v4469_v39 = vadd.f32 %v4468_v5, %v4467_v48  ;;  %v4470_v63 = vpop.f32.mrb[110].mxu0  ;;  %2927 = vmatprep.mubr.bf16.mxu1 %v2578_v60 }
 0x425   : > { %v4471_v49 = vpop.f32.mrb[111].mxu0  ;;  %2928 = vmatmul.mubr.bf16.gmra.mrb[104].mxu1 %v5057_v2 }
 0x426   : > { %v2530_v32 = vadd.f32 %v4469_v39, %v6950_v24  ;;  %v4472_v10 = vadd.f32 %v4471_v49, %v4470_v63 }
 0x428   : > { %3837 = vst [vmem:[%s6953_s3 + $0x168] sm:$0xff] %v2530_v32  ;;  %v2533_v40 = vadd.f32 %v4472_v10, %v6950_v24 }
 0x42a   : > { %3839 = vst [vmem:[%s6953_s3 + $0x178] sm:$0xff] %v2533_v40  ;;  %v4473_v0 = vpop.f32.mrb[112].mxu0  ;;  %v2579_v17 = vpack.c.bf16 %v2533_v40, %v2530_v32 }
 0x42b   : > { %v4474_v3 = vpop.f32.mrb[113].mxu0 }
 0x42c   : > { %v4475_v22 = vadd.f32 %v4474_v3, %v4473_v0  ;;  %v4476_v20 = vpop.f32.mrb[114].mxu0  ;;  %2935 = vmatprep.mubr.bf16.mxu1 %v2579_v17 }
 0x42d   : > { %v4477_v46 = vpop.f32.mrb[115].mxu0  ;;  %2936 = vmatmul.mubr.bf16.gmra.mrb[108].mxu1 %v5058_v26 }
 0x42e   : > { %v2538_v51 = vadd.f32 %v4475_v22, %v6950_v24  ;;  %v4478_v30 = vadd.f32 %v4477_v46, %v4476_v20 }
 0x430   : > { %3841 = vst [vmem:[%s6953_s3 + $0x188] sm:$0xff] %v2538_v51  ;;  %v2541_v19 = vadd.f32 %v4478_v30, %v6950_v24 }
 0x432   : > { %3843 = vst [vmem:[%s6953_s3 + $0x198] sm:$0xff] %v2541_v19  ;;  %v4479_v16 = vpop.f32.mrb[116].mxu0  ;;  %v2580_v6 = vpack.c.bf16 %v2541_v19, %v2538_v51  ;;  %v5071_v19 = vld [vmem:[#allocation13] sm:$0xff]  }
 0x433   : > { %v4480_v13 = vpop.f32.mrb[117].mxu0  ;;  %4705 = vmatprep.subr.bf16.mxu1 %v5071_v19 }
 0x434   : > { %v4481_v29 = vadd.f32 %v4480_v13, %v4479_v16  ;;  %v4482_v25 = vpop.f32.mrb[118].mxu0  ;;  %2943 = vmatprep.mubr.bf16.mxu1 %v2580_v6  ;;  %4706 = vmatpush3.bf16.msra.mxu1 %v5071_v19 }
 0x435   : > { %v4483_v54 = vpop.f32.mrb[119].mxu0  ;;  %2944 = vmatmul.mubr.bf16.gmra.mrb[112].mxu1 %v5059_v61  ;;  %v5072_v61 = vld [vmem:[#allocation13 + $0x8] sm:$0xff]  }
 0x436   : > { %v2546_v52 = vadd.f32 %v4481_v29, %v6950_v24  ;;  %v4484_v37 = vadd.f32 %v4483_v54, %v4482_v25  ;;  %4707 = vmatprep.subr.bf16.mxu1 %v5072_v61 }
 0x438   : > { %3845 = vst [vmem:[%s6953_s3 + $0x1a8] sm:$0xff] %v2546_v52  ;;  %v2549_v43 = vadd.f32 %v4484_v37, %v6950_v24  ;;  %v5073_v37 = vld [vmem:[#allocation13 + $0x10] sm:$0xff]   ;;  %4708 = vmatpush3.bf16.msra.mxu1 %v5072_v61 }
 0x439   : > { %4709 = vmatprep.subr.bf16.mxu1 %v5073_v37 }
 0x43a   : > { %3847 = vst [vmem:[%s6953_s3 + $0x1b8] sm:$0xff] %v2549_v43  ;;  %v4485_v8 = vpop.f32.mrb[120].mxu0  ;;  %v2581_v62 = vpack.c.bf16 %v2549_v43, %v2546_v52 }
 0x43b   : > { %v4486_v31 = vpop.f32.mrb[121].mxu0 }
 0x43c   : > { %v4487_v33 = vadd.f32 %v4486_v31, %v4485_v8  ;;  %v4488_v9 = vpop.f32.mrb[122].mxu0  ;;  %2951 = vmatprep.mubr.bf16.mxu1 %v2581_v62  ;;  %4710 = vmatpush3.bf16.msra.mxu1 %v5073_v37 }
 0x43d   : > { %v4489_v14 = vpop.f32.mrb[123].mxu0  ;;  %2952 = vmatmul.mubr.bf16.gmra.mrb[116].mxu1 %v5060_v34 }
 0x43e   : > { %v2554_v36 = vadd.f32 %v4487_v33, %v6950_v24  ;;  %v4490_v45 = vadd.f32 %v4489_v14, %v4488_v9 }
 0x440   : > { %3849 = vst [vmem:[%s6953_s3 + $0x1c8] sm:$0xff] %v2554_v36  ;;  %v2557_v11 = vadd.f32 %v4490_v45, %v6950_v24 }
 0x442   : > { %3851 = vst [vmem:[%s6953_s3 + $0x1d8] sm:$0xff] %v2557_v11  ;;  %v4491_v12 = vpop.f32.mrb[124].mxu0  ;;  %v2582_v21 = vpack.c.bf16 %v2557_v11, %v2554_v36 }
 0x443   : > { %v4492_v47 = vpop.f32.mrb[125].mxu0 }
 0x444   : > { %v4493_v58 = vadd.f32 %v4492_v47, %v4491_v12  ;;  %v4494_v7 = vpop.f32.mrb[126].mxu0  ;;  %2959 = vmatprep.mubr.bf16.mxu1 %v2582_v21 }
 0x445   : > { %v4495_v56 = vpop.f32.mrb[127].mxu0  ;;  %2960 = vmatmul.mubr.bf16.gmra.mrb[120].mxu1 %v5061_v15 }
 0x446   : > { %v2562_v50 = vadd.f32 %v4493_v58, %v6950_v24  ;;  %v4496_v23 = vadd.f32 %v4495_v56, %v4494_v7 }
 0x448   : > { %3853 = vst [vmem:[%s6953_s3 + $0x1e8] sm:$0xff] %v2562_v50  ;;  %v2565_v41 = vadd.f32 %v4496_v23, %v6950_v24 }
 0x44a   : > { %3855 = vst [vmem:[%s6953_s3 + $0x1f8] sm:$0xff] %v2565_v41  ;;  %v2583_v35 = vpack.c.bf16 %v2565_v41, %v2562_v50 }
 0x44c   : > { %2967 = vmatprep.mubr.bf16.mxu1 %v2583_v35 }
 0x44d   : > { %2968 = vmatmul.mubr.bf16.gmra.mrb[124].mxu1 %v5062_v27 }
 0x4a8   : > { %v4513_v44 = vpop.f32.mrb[64].mxu1 }
 0x4a9   : > { %v4514_v4 = vpop.f32.mrb[65].mxu1 }
 0x4aa   : > { %v4515_v42 = vadd.f32 %v4514_v4, %v4513_v44  ;;  %v4516_v53 = vpop.f32.mrb[66].mxu1 }
 0x4ab   : > { %v4517_v1 = vpop.f32.mrb[67].mxu1 }
 0x4ac   : > { %v2850_v2 = vadd.f32 %v4515_v42, %v7037_v38  ;;  %v4518_v48 = vadd.f32 %v4517_v1, %v4516_v53 }
 0x4ae   : > { %v3008_v24 = vmul.f32 1.442695, %v2850_v2  ;;  %v2853_v60 = vadd.f32 %v4518_v48, %v7037_v38  ;;  %vm2976_vm0 = vcmp.gt.f32.partialorder %v2850_v2, 0.0 }
 0x4b0   : > { %5335 = vpow2.f32 %v3008_v24  ;;  %v3010_v5 = vmul.f32 1.442695, %v2853_v60  ;;  %v4519_v39 = vpop.f32.mrb[68].mxu1  ;;  %vm2977_vm1 = vcmp.gt.f32.partialorder %v2853_v60, 0.0 }
 0x4b1   : > { %v4520_v63 = vpop.f32.mrb[69].mxu1 }
 0x4b2   : > { %5337 = vpow2.f32 %v3010_v5  ;;  %v4521_v49 = vadd.f32 %v4520_v63, %v4519_v39  ;;  %v4522_v32 = vpop.f32.mrb[70].mxu1 }
 0x4b3   : > { %v4523_v10 = vpop.f32.mrb[71].mxu1 }
 0x4b4   : > { %v2858_v40 = vadd.f32 %v4521_v49, %v7037_v38  ;;  %v4524_v26 = vadd.f32 %v4523_v10, %v4522_v32 }
 0x4b6   : > { %v3012_v0 = vmul.f32 1.442695, %v2858_v40  ;;  %v2861_v17 = vadd.f32 %v4524_v26, %v7037_v38  ;;  %vm2978_vm2 = vcmp.gt.f32.partialorder %v2858_v40, 0.0 }
 0x4b8   : > { %5339 = vpow2.f32 %v3012_v0  ;;  %v3014_v3 = vmul.f32 1.442695, %v2861_v17  ;;  %v4525_v22 = vpop.f32.mrb[72].mxu1  ;;  %vm2979_vm3 = vcmp.gt.f32.partialorder %v2861_v17, 0.0 }
 0x4b9   : > { %v4526_v20 = vpop.f32.mrb[73].mxu1 }
 0x4ba   : > { %v5336_v46 = vpop.eup %5335  ;;  %5341 = vpow2.f32 %v3014_v3  ;;  %v4527_v51 = vadd.f32 %v4526_v20, %v4525_v22  ;;  %v4528_v30 = vpop.f32.mrb[74].mxu1 }
 0x4bb   : > { %v4529_v16 = vpop.f32.mrb[75].mxu1  ;;  %v4295_v6 = vadd.f32 -1.0, %v5336_v46 }
 0x4bc   : > { %v5338_v13 = vpop.eup %5337  ;;  %v2866_v29 = vadd.f32 %v4527_v51, %v7037_v38  ;;  %v4530_v25 = vadd.f32 %v4529_v16, %v4528_v30 }
 0x4bd   : > { %v4296_v54 = vadd.f32 -1.0, %v5338_v13  ;;  %v3104_v43 = vsel %vm2976_vm0, %v2850_v2, %v4295_v6 }
 0x4be   : > { %v3016_v59 = vmul.f32 1.442695, %v2866_v29  ;;  %v2869_v52 = vadd.f32 %v4530_v25, %v7037_v38  ;;  %vm2980_vm4 = vcmp.gt.f32.partialorder %v2866_v29, 0.0 }
 0x4bf   : > { %v3105_v34 = vsel %vm2977_vm1, %v2853_v60, %v4296_v54 }
 0x4c0   : > { %5343 = vpow2.f32 %v3016_v59  ;;  %v3018_v57 = vmul.f32 1.442695, %v2869_v52  ;;  %v4531_v8 = vpop.f32.mrb[76].mxu1  ;;  %v3136_v62 = vpack.c.bf16 %v3105_v34, %v3104_v43  ;;  %vm2981_vm5 = vcmp.gt.f32.partialorder %v2869_v52, 0.0 }
 0x4c1   : > { %v4532_v31 = vpop.f32.mrb[77].mxu1 }
 0x4c2   : > { %v5340_v33 = vpop.eup %5339  ;;  %5345 = vpow2.f32 %v3018_v57  ;;  %v4533_v9 = vadd.f32 %v4532_v31, %v4531_v8  ;;  %v4534_v14 = vpop.f32.mrb[78].mxu1  ;;  %4673 = vmatprep.mubr.bf16.mxu0 %v3136_v62 }
 0x4c3   : > { %v4297_v55 = vadd.f32 -1.0, %v5340_v33  ;;  %v4535_v36 = vpop.f32.mrb[79].mxu1 }
 0x4c4   : > { %v5342_v45 = vpop.eup %5341  ;;  %v2874_v11 = vadd.f32 %v4533_v9, %v7037_v38  ;;  %v4536_v15 = vadd.f32 %v4535_v36, %v4534_v14 }
 0x4c5   : > { %v4298_v18 = vadd.f32 -1.0, %v5342_v45  ;;  %v3106_v47 = vsel %vm2978_vm2, %v2858_v40, %v4297_v55 }
 0x4c6   : > { %v3020_v12 = vmul.f32 1.442695, %v2874_v11  ;;  %v2877_v21 = vadd.f32 %v4536_v15, %v7037_v38  ;;  %vm2982_vm6 = vcmp.gt.f32.partialorder %v2874_v11, 0.0 }
 0x4c7   : > { %v3107_v58 = vsel %vm2979_vm3, %v2861_v17, %v4298_v18 }
 0x4c8   : > { %v3137_v7 = vpack.c.bf16 %v3107_v58, %v3106_v47  ;;  %5347 = vpow2.f32 %v3020_v12  ;;  %v3022_v56 = vmul.f32 1.442695, %v2877_v21  ;;  %v4537_v28 = vpop.f32.mrb[80].mxu1  ;;  %vm2983_vm7 = vcmp.gt.f32.partialorder %v2877_v21, 0.0 }
 0x4c9   : > { %v4538_v50 = vpop.f32.mrb[81].mxu1 }
 0x4ca   : > { %v5344_v23 = vpop.eup %5343  ;;  %5349 = vpow2.f32 %v3022_v56  ;;  %v4539_v41 = vadd.f32 %v4538_v50, %v4537_v28  ;;  %v4540_v27 = vpop.f32.mrb[82].mxu1  ;;  %4674 = vmatmul.mubr.bf16.vlgmr.msra.gmra.mrb[128].mxu0 %v3137_v7 }
 0x4cb   : > { %v4541_v35 = vpop.f32.mrb[83].mxu1  ;;  %v4299_v44 = vadd.f32 -1.0, %v5344_v23 }
 0x4cc   : > { %v5346_v4 = vpop.eup %5345  ;;  %v2882_v42 = vadd.f32 %v4539_v41, %v7037_v38  ;;  %v4542_v53 = vadd.f32 %v4541_v35, %v4540_v27 }
 0x4cd   : > { %v4300_v1 = vadd.f32 -1.0, %v5346_v4  ;;  %v3108_v24 = vsel %vm2980_vm4, %v2866_v29, %v4299_v44 }
 0x4ce   : > { %v3024_v2 = vmul.f32 1.442695, %v2882_v42  ;;  %v2885_v48 = vadd.f32 %v4542_v53, %v7037_v38  ;;  %vm2984_vm8 = vcmp.gt.f32.partialorder %v2882_v42, 0.0 }
 0x4cf   : > { %v3109_v60 = vsel %vm2981_vm5, %v2869_v52, %v4300_v1 }
 0x4d0   : > { %5351 = vpow2.f32 %v3024_v2  ;;  %v3026_v5 = vmul.f32 1.442695, %v2885_v48  ;;  %v4543_v39 = vpop.f32.mrb[84].mxu1  ;;  %v3138_v63 = vpack.c.bf16 %v3109_v60, %v3108_v24  ;;  %vm2985_vm9 = vcmp.gt.f32.partialorder %v2885_v48, 0.0 }
 0x4d1   : > { %v4544_v49 = vpop.f32.mrb[85].mxu1 }
 0x4d2   : > { %v5348_v32 = vpop.eup %5347  ;;  %5353 = vpow2.f32 %v3026_v5  ;;  %v4545_v10 = vadd.f32 %v4544_v49, %v4543_v39  ;;  %v4546_v40 = vpop.f32.mrb[86].mxu1  ;;  %4677 = vmatprep.mubr.bf16.mxu0 %v3138_v63 }
 0x4d3   : > { %v4547_v26 = vpop.f32.mrb[87].mxu1  ;;  %v4301_v0 = vadd.f32 -1.0, %v5348_v32 }
 0x4d4   : > { %v5350_v17 = vpop.eup %5349  ;;  %v2890_v3 = vadd.f32 %v4545_v10, %v7037_v38  ;;  %v4548_v22 = vadd.f32 %v4547_v26, %v4546_v40 }
 0x4d5   : > { %v4302_v20 = vadd.f32 -1.0, %v5350_v17  ;;  %v3110_v30 = vsel %vm2982_vm6, %v2874_v11, %v4301_v0 }
 0x4d6   : > { %v3028_v46 = vmul.f32 1.442695, %v2890_v3  ;;  %v2893_v51 = vadd.f32 %v4548_v22, %v7037_v38  ;;  %vm2986_vm10 = vcmp.gt.f32.partialorder %v2890_v3, 0.0 }
 0x4d7   : > { %v3111_v19 = vsel %vm2983_vm7, %v2877_v21, %v4302_v20 }
 0x4d8   : > { %5355 = vpow2.f32 %v3028_v46  ;;  %v3030_v61 = vmul.f32 1.442695, %v2893_v51  ;;  %v4549_v16 = vpop.f32.mrb[88].mxu1  ;;  %v3139_v6 = vpack.c.bf16 %v3111_v19, %v3110_v30  ;;  %vm2987_vm11 = vcmp.gt.f32.partialorder %v2893_v51, 0.0 }
 0x4d9   : > { %v4550_v13 = vpop.f32.mrb[89].mxu1 }
 0x4da   : > { %v5352_v29 = vpop.eup %5351  ;;  %5357 = vpow2.f32 %v3030_v61  ;;  %v4551_v25 = vadd.f32 %v4550_v13, %v4549_v16  ;;  %v4552_v54 = vpop.f32.mrb[90].mxu1  ;;  %4678 = vmatmul.mubr.bf16.gmra.mrb[132].mxu0 %v3139_v6 }
 0x4db   : > { %v4553_v59 = vpop.f32.mrb[91].mxu1  ;;  %v4303_v52 = vadd.f32 -1.0, %v5352_v29 }
 0x4dc   : > { %v5354_v37 = vpop.eup %5353  ;;  %v2898_v43 = vadd.f32 %v4551_v25, %v7037_v38  ;;  %v4554_v34 = vadd.f32 %v4553_v59, %v4552_v54 }
 0x4dd   : > { %v4304_v57 = vadd.f32 -1.0, %v5354_v37  ;;  %v3112_v31 = vsel %vm2984_vm8, %v2882_v42, %v4303_v52 }
 0x4de   : > { %v3032_v8 = vmul.f32 1.442695, %v2898_v43  ;;  %v2901_v62 = vadd.f32 %v4554_v34, %v7037_v38  ;;  %vm2988_vm12 = vcmp.gt.f32.partialorder %v2898_v43, 0.0 }
 0x4df   : > { %v3113_v33 = vsel %vm2985_vm9, %v2885_v48, %v4304_v57 }
 0x4e0   : > { %5359 = vpow2.f32 %v3032_v8  ;;  %v3034_v9 = vmul.f32 1.442695, %v2901_v62  ;;  %v4555_v14 = vpop.f32.mrb[92].mxu1  ;;  %v3140_v55 = vpack.c.bf16 %v3113_v33, %v3112_v31  ;;  %vm2989_vm13 = vcmp.gt.f32.partialorder %v2901_v62, 0.0 }
 0x4e1   : > { %v4556_v36 = vpop.f32.mrb[93].mxu1 }
 0x4e2   : > { %v5356_v45 = vpop.eup %5355  ;;  %5361 = vpow2.f32 %v3034_v9  ;;  %v4557_v11 = vadd.f32 %v4556_v36, %v4555_v14  ;;  %v4558_v15 = vpop.f32.mrb[94].mxu1  ;;  %4681 = vmatprep.mubr.bf16.mxu0 %v3140_v55 }
 0x4e3   : > { %v4559_v18 = vpop.f32.mrb[95].mxu1  ;;  %v4305_v12 = vadd.f32 -1.0, %v5356_v45 }
 0x4e4   : > { %v5358_v21 = vpop.eup %5357  ;;  %v2906_v47 = vadd.f32 %v4557_v11, %v7037_v38  ;;  %v4560_v58 = vadd.f32 %v4559_v18, %v4558_v15 }
 0x4e5   : > { %v4306_v7 = vadd.f32 -1.0, %v5358_v21  ;;  %v3114_v50 = vsel %vm2986_vm10, %v2890_v3, %v4305_v12 }
 0x4e6   : > { %v3036_v56 = vmul.f32 1.442695, %v2906_v47  ;;  %v2909_v28 = vadd.f32 %v4560_v58, %v7037_v38  ;;  %vm2990_vm14 = vcmp.gt.f32.partialorder %v2906_v47, 0.0 }
 0x4e7   : > { %v3115_v23 = vsel %vm2987_vm11, %v2893_v51, %v4306_v7 }
 0x4e8   : > { %5363 = vpow2.f32 %v3036_v56  ;;  %v3038_v41 = vmul.f32 1.442695, %v2909_v28  ;;  %v4561_v27 = vpop.f32.mrb[96].mxu1  ;;  %v3141_v35 = vpack.c.bf16 %v3115_v23, %v3114_v50  ;;  %vm2991_vm15 = vcmp.gt.f32.partialorder %v2909_v28, 0.0 }
 0x4e9   : > { %v4562_v44 = vpop.f32.mrb[97].mxu1 }
 0x4ea   : > { %v5360_v4 = vpop.eup %5359  ;;  %5365 = vpow2.f32 %v3038_v41  ;;  %v4563_v42 = vadd.f32 %v4562_v44, %v4561_v27  ;;  %v4564_v53 = vpop.f32.mrb[98].mxu1  ;;  %4682 = vmatmul.mubr.bf16.gmra.mrb[136].mxu0 %v3141_v35 }
 0x4eb   : > { %v4565_v1 = vpop.f32.mrb[99].mxu1  ;;  %v4307_v2 = vadd.f32 -1.0, %v5360_v4 }
 0x4ec   : > { %v5362_v48 = vpop.eup %5361  ;;  %v2914_v24 = vadd.f32 %v4563_v42, %v7037_v38  ;;  %v4566_v60 = vadd.f32 %v4565_v1, %v4564_v53 }
 0x4ed   : > { %v4308_v5 = vadd.f32 -1.0, %v5362_v48  ;;  %v3116_v49 = vsel %vm2988_vm12, %v2898_v43, %v4307_v2 }
 0x4ee   : > { %v3040_v39 = vmul.f32 1.442695, %v2914_v24  ;;  %v2917_v63 = vadd.f32 %v4566_v60, %v7037_v38  ;;  %vm2992_vm0 = vcmp.gt.f32.partialorder %v2914_v24, 0.0 }
 0x4ef   : > { %v3117_v32 = vsel %vm2989_vm13, %v2901_v62, %v4308_v5 }
 0x4f0   : > { %5367 = vpow2.f32 %v3040_v39  ;;  %v3042_v10 = vmul.f32 1.442695, %v2917_v63  ;;  %v4567_v40 = vpop.f32.mrb[100].mxu1  ;;  %v3142_v26 = vpack.c.bf16 %v3117_v32, %v3116_v49  ;;  %vm2993_vm1 = vcmp.gt.f32.partialorder %v2917_v63, 0.0 }
 0x4f1   : > { %v4568_v0 = vpop.f32.mrb[101].mxu1 }
 0x4f2   : > { %v5364_v17 = vpop.eup %5363  ;;  %5369 = vpow2.f32 %v3042_v10  ;;  %v4569_v3 = vadd.f32 %v4568_v0, %v4567_v40  ;;  %v4570_v22 = vpop.f32.mrb[102].mxu1  ;;  %4685 = vmatprep.mubr.bf16.mxu0 %v3142_v26 }
 0x4f3   : > { %v4571_v20 = vpop.f32.mrb[103].mxu1  ;;  %v4309_v46 = vadd.f32 -1.0, %v5364_v17 }
 0x4f4   : > { %v5366_v51 = vpop.eup %5365  ;;  %v2922_v30 = vadd.f32 %v4569_v3, %v7037_v38  ;;  %v4572_v19 = vadd.f32 %v4571_v20, %v4570_v22 }
 0x4f5   : > { %v4310_v61 = vadd.f32 -1.0, %v5366_v51  ;;  %v3118_v13 = vsel %vm2990_vm14, %v2906_v47, %v4309_v46 }
 0x4f6   : > { %v3044_v16 = vmul.f32 1.442695, %v2922_v30  ;;  %v2925_v6 = vadd.f32 %v4572_v19, %v7037_v38  ;;  %vm2994_vm2 = vcmp.gt.f32.partialorder %v2922_v30, 0.0 }
 0x4f7   : > { %v3119_v29 = vsel %vm2991_vm15, %v2909_v28, %v4310_v61 }
 0x4f8   : > { %5371 = vpow2.f32 %v3044_v16  ;;  %v3046_v25 = vmul.f32 1.442695, %v2925_v6  ;;  %v4573_v54 = vpop.f32.mrb[104].mxu1  ;;  %v3143_v59 = vpack.c.bf16 %v3119_v29, %v3118_v13  ;;  %vm2995_vm3 = vcmp.gt.f32.partialorder %v2925_v6, 0.0 }
 0x4f9   : > { %v4574_v52 = vpop.f32.mrb[105].mxu1 }
 0x4fa   : > { %v5368_v37 = vpop.eup %5367  ;;  %5373 = vpow2.f32 %v3046_v25  ;;  %v4575_v43 = vadd.f32 %v4574_v52, %v4573_v54  ;;  %v4576_v34 = vpop.f32.mrb[106].mxu1  ;;  %4686 = vmatmul.mubr.bf16.gmra.mrb[140].mxu0 %v3143_v59 }
 0x4fb   : > { %v4577_v57 = vpop.f32.mrb[107].mxu1  ;;  %v4311_v8 = vadd.f32 -1.0, %v5368_v37 }
 0x4fc   : > { %v5370_v62 = vpop.eup %5369  ;;  %v2930_v31 = vadd.f32 %v4575_v43, %v7037_v38  ;;  %v4578_v33 = vadd.f32 %v4577_v57, %v4576_v34 }
 0x4fd   : > { %v4312_v9 = vadd.f32 -1.0, %v5370_v62  ;;  %v3120_v36 = vsel %vm2992_vm0, %v2914_v24, %v4311_v8 }
 0x4fe   : > { %v3048_v14 = vmul.f32 1.442695, %v2930_v31  ;;  %v2933_v55 = vadd.f32 %v4578_v33, %v7037_v38  ;;  %vm2996_vm4 = vcmp.gt.f32.partialorder %v2930_v31, 0.0 }
 0x4ff   : > { %v3121_v45 = vsel %vm2993_vm1, %v2917_v63, %v4312_v9 }
 0x500   : > { %5375 = vpow2.f32 %v3048_v14  ;;  %v3050_v11 = vmul.f32 1.442695, %v2933_v55  ;;  %v4579_v15 = vpop.f32.mrb[108].mxu1  ;;  %v3144_v18 = vpack.c.bf16 %v3121_v45, %v3120_v36  ;;  %vm2997_vm5 = vcmp.gt.f32.partialorder %v2933_v55, 0.0 }
 0x501   : > { %v4580_v12 = vpop.f32.mrb[109].mxu1 }
 0x502   : > { %v5372_v21 = vpop.eup %5371  ;;  %5377 = vpow2.f32 %v3050_v11  ;;  %v4581_v47 = vadd.f32 %v4580_v12, %v4579_v15  ;;  %v4582_v58 = vpop.f32.mrb[110].mxu1  ;;  %4689 = vmatprep.mubr.bf16.mxu0 %v3144_v18 }
 0x503   : > { %v4583_v7 = vpop.f32.mrb[111].mxu1  ;;  %v4313_v56 = vadd.f32 -1.0, %v5372_v21 }
 0x504   : > { %v5374_v28 = vpop.eup %5373  ;;  %v2938_v50 = vadd.f32 %v4581_v47, %v7037_v38  ;;  %v4584_v23 = vadd.f32 %v4583_v7, %v4582_v58 }
 0x505   : > { %v4314_v41 = vadd.f32 -1.0, %v5374_v28  ;;  %v3122_v44 = vsel %vm2994_vm2, %v2922_v30, %v4313_v56  ;;  %v5074_v28 = vld [vmem:[#allocation13 + $0x18] sm:$0xff]  }
 0x506   : > { %v3052_v27 = vmul.f32 1.442695, %v2938_v50  ;;  %v2941_v35 = vadd.f32 %v4584_v23, %v7037_v38  ;;  %vm2998_vm6 = vcmp.gt.f32.partialorder %v2938_v50, 0.0  ;;  %4711 = vmatprep.subr.bf16.mxu1 %v5074_v28 }
 0x507   : > { %v3123_v4 = vsel %vm2995_vm3, %v2925_v6, %v4314_v41  ;;  %4712 = vmatpush3.bf16.msra.mxu1 %v5074_v28 }
 0x508   : > { %5379 = vpow2.f32 %v3052_v27  ;;  %v3054_v42 = vmul.f32 1.442695, %v2941_v35  ;;  %v4585_v53 = vpop.f32.mrb[112].mxu1  ;;  %v3145_v1 = vpack.c.bf16 %v3123_v4, %v3122_v44  ;;  %vm2999_vm7 = vcmp.gt.f32.partialorder %v2941_v35, 0.0 }
 0x509   : > { %v4586_v2 = vpop.f32.mrb[113].mxu1 }
 0x50a   : > { %v5376_v48 = vpop.eup %5375  ;;  %5381 = vpow2.f32 %v3054_v42  ;;  %v4587_v24 = vadd.f32 %v4586_v2, %v4585_v53  ;;  %v4588_v60 = vpop.f32.mrb[114].mxu1  ;;  %4690 = vmatmul.mubr.bf16.gmra.mrb[144].mxu0 %v3145_v1  ;;  %v5075_v1 = vld [vmem:[#allocation13 + $0x20] sm:$0xff]  }
 0x50b   : > { %v4589_v5 = vpop.f32.mrb[115].mxu1  ;;  %v4315_v39 = vadd.f32 -1.0, %v5376_v48  ;;  %4713 = vmatprep.subr.bf16.mxu1 %v5075_v1 }
 0x50c   : > { %v5378_v63 = vpop.eup %5377  ;;  %v2946_v49 = vadd.f32 %v4587_v24, %v7037_v38  ;;  %v4590_v32 = vadd.f32 %v4589_v5, %v4588_v60  ;;  %4714 = vmatpush3.bf16.msra.mxu1 %v5075_v1 }
 0x50d   : > { %v4316_v10 = vadd.f32 -1.0, %v5378_v63  ;;  %v3124_v0 = vsel %vm2996_vm4, %v2930_v31, %v4315_v39  ;;  %v5076_v63 = vld [vmem:[#allocation13 + $0x28] sm:$0xff]  }
 0x50e   : > { %v3056_v40 = vmul.f32 1.442695, %v2946_v49  ;;  %v2949_v26 = vadd.f32 %v4590_v32, %v7037_v38  ;;  %vm3000_vm8 = vcmp.gt.f32.partialorder %v2946_v49, 0.0  ;;  %4715 = vmatprep.subr.bf16.mxu1 %v5076_v63 }
 0x50f   : > { %v3125_v17 = vsel %vm2997_vm5, %v2933_v55, %v4316_v10 }
 0x510   : > { %5383 = vpow2.f32 %v3056_v40  ;;  %v3058_v3 = vmul.f32 1.442695, %v2949_v26  ;;  %v4591_v22 = vpop.f32.mrb[116].mxu1  ;;  %v3146_v20 = vpack.c.bf16 %v3125_v17, %v3124_v0  ;;  %vm3001_vm9 = vcmp.gt.f32.partialorder %v2949_v26, 0.0  ;;  %4716 = vmatpush3.bf16.msra.mxu1 %v5076_v63 }
 0x511   : > { %v4592_v46 = vpop.f32.mrb[117].mxu1 }
 0x512   : > { %v5380_v51 = vpop.eup %5379  ;;  %5385 = vpow2.f32 %v3058_v3  ;;  %v4593_v30 = vadd.f32 %v4592_v46, %v4591_v22  ;;  %v4594_v19 = vpop.f32.mrb[118].mxu1  ;;  %4693 = vmatprep.mubr.bf16.mxu0 %v3146_v20  ;;  %v5078_v3 = vld [vmem:[#allocation13 + $0x38] sm:$0xff]  }
 0x513   : > { %v4595_v61 = vpop.f32.mrb[119].mxu1  ;;  %v4317_v16 = vadd.f32 -1.0, %v5380_v51 }
 0x514   : > { %v5382_v6 = vpop.eup %5381  ;;  %v2954_v13 = vadd.f32 %v4593_v30, %v7037_v38  ;;  %v4596_v29 = vadd.f32 %v4595_v61, %v4594_v19 }
 0x515   : > { %v4318_v25 = vadd.f32 -1.0, %v5382_v6  ;;  %v3126_v52 = vsel %vm2998_vm6, %v2938_v50, %v4317_v16  ;;  %v7074_v16 = vld [vmem:[%s7281_s15] ss:$0 sm:$0xff]  ;;  %s5667_s15 = scalar_lea.vmem %s5666_s10, 16384 }
 0x516   : > { %v3060_v54 = vmul.f32 1.442695, %v2954_v13  ;;  %v2957_v59 = vadd.f32 %v4596_v29, %v7037_v38  ;;  %vm3002_vm10 = vcmp.gt.f32.partialorder %v2954_v13, 0.0  ;;  %p5669_p12 = scmp.lt.s32.totalorder %s5667_s15, %s5661_s17 }
 0x517   : > { %v3127_v37 = vsel %vm2999_vm7, %v2941_v35, %v4318_v25 }
 0x518   : > { %5387 = vpow2.f32 %v3060_v54  ;;  %v3062_v43 = vmul.f32 1.442695, %v2957_v59  ;;  %v4597_v34 = vpop.f32.mrb[120].mxu1  ;;  %v3147_v57 = vpack.c.bf16 %v3127_v37, %v3126_v52  ;;  %vm3003_vm11 = vcmp.gt.f32.partialorder %v2957_v59, 0.0  ;;  %p5670_p13 = por %p5669_p12, %p5668_p11 }
 0x519   : > { %v4598_v8 = vpop.f32.mrb[121].mxu1 }
 0x51a   : > { %v5384_v62 = vpop.eup %5383  ;;  %5389 = vpow2.f32 %v3062_v43  ;;  %v4599_v31 = vadd.f32 %v4598_v8, %v4597_v34  ;;  %v4600_v33 = vpop.f32.mrb[122].mxu1  ;;  %4694 = vmatmul.mubr.bf16.gmra.mrb[148].mxu0 %v3147_v57  ;;  %p5671_p7 = pnand %p5670_p13, %p5664_p1 }
 0x51b   : > { %v4601_v9 = vpop.f32.mrb[123].mxu1  ;;  %v4319_v14 = vadd.f32 -1.0, %v5384_v62 }
 0x51c   : > { %v5386_v55 = vpop.eup %5385  ;;  %v2962_v36 = vadd.f32 %v4599_v31, %v7037_v38  ;;  %v4602_v45 = vadd.f32 %v4601_v9, %v4600_v33 }
 0x51d   : > { %v4320_v11 = vadd.f32 -1.0, %v5386_v55  ;;  %v3128_v12 = vsel %vm3000_vm8, %v2946_v49, %v4319_v14 }
 0x51e   : > { %v3064_v15 = vmul.f32 1.442695, %v2962_v36  ;;  %v2965_v18 = vadd.f32 %v4602_v45, %v7037_v38  ;;  %vm3004_vm12 = vcmp.gt.f32.partialorder %v2962_v36, 0.0 }
 0x51f   : > { %v3129_v21 = vsel %vm3001_vm9, %v2949_v26, %v4320_v11  ;;  %v5077_v26 = vld [vmem:[#allocation13 + $0x30] sm:$0xff]  }
 0x520   : > { %5391 = vpow2.f32 %v3064_v15  ;;  %v3066_v47 = vmul.f32 1.442695, %v2965_v18  ;;  %v4603_v58 = vpop.f32.mrb[124].mxu1  ;;  %v3148_v7 = vpack.c.bf16 %v3129_v21, %v3128_v12  ;;  %vm3005_vm13 = vcmp.gt.f32.partialorder %v2965_v18, 0.0  ;;  %4717 = vmatprep.subr.bf16.mxu1 %v5077_v26 }
 0x521   : > { %v4604_v56 = vpop.f32.mrb[125].mxu1  ;;  %4718 = vmatpush3.bf16.msra.mxu1 %v5077_v26 }
 0x522   : > { %v5388_v50 = vpop.eup %5387  ;;  %5393 = vpow2.f32 %v3066_v47  ;;  %v4605_v23 = vadd.f32 %v4604_v56, %v4603_v58  ;;  %v4606_v41 = vpop.f32.mrb[126].mxu1  ;;  %4697 = vmatprep.mubr.bf16.mxu0 %v3148_v7  ;;  %4719 = vmatprep.subr.bf16.mxu1 %v5078_v3 }
 0x523   : > { %v4607_v27 = vpop.f32.mrb[127].mxu1  ;;  %v4321_v35 = vadd.f32 -1.0, %v5388_v50 }
 0x524   : > { %v5390_v44 = vpop.eup %5389  ;;  %v2970_v4 = vadd.f32 %v4605_v23, %v7037_v38  ;;  %v4608_v42 = vadd.f32 %v4607_v27, %v4606_v41 }
 0x525   : > { %v4322_v53 = vadd.f32 -1.0, %v5390_v44  ;;  %v3130_v24 = vsel %vm3002_vm10, %v2954_v13, %v4321_v35  ;;  %4720 = vmatpush3.bf16.msra.mxu1 %v5078_v3 }
 0x526   : > { %v3068_v2 = vmul.f32 1.442695, %v2970_v4  ;;  %v2973_v48 = vadd.f32 %v4608_v42, %v7037_v38  ;;  %vm3006_vm14 = vcmp.gt.f32.partialorder %v2970_v4, 0.0 }
 0x527   : > { %v3131_v60 = vsel %vm3003_vm11, %v2957_v59, %v4322_v53 }
 0x528   : > { %5395 = vpow2.f32 %v3068_v2  ;;  %v3070_v5 = vmul.f32 1.442695, %v2973_v48  ;;  %v3149_v39 = vpack.c.bf16 %v3131_v60, %v3130_v24  ;;  %vm3007_vm15 = vcmp.gt.f32.partialorder %v2973_v48, 0.0 }
 0x52a   : > { %v5392_v49 = vpop.eup %5391  ;;  %5397 = vpow2.f32 %v3070_v5  ;;  %4698 = vmatmul.mubr.bf16.gmra.mrb[152].mxu0 %v3149_v39 }
 0x52b   : > { %v4323_v32 = vadd.f32 -1.0, %v5392_v49 }
 0x52c   : > { %v5394_v10 = vpop.eup %5393 }
 0x52d   : > { %v4324_v40 = vadd.f32 -1.0, %v5394_v10  ;;  %v3132_v38 = vsel %vm3004_vm12, %v2962_v36, %v4323_v32 }
 0x52f   : > { %v3133_v0 = vsel %vm3005_vm13, %v2965_v18, %v4324_v40 }
 0x530   : > { %v3150_v17 = vpack.c.bf16 %v3133_v0, %v3132_v38 }
 0x532   : > { %v5396_v22 = vpop.eup %5395  ;;  %4701 = vmatprep.mubr.bf16.mxu0 %v3150_v17 }
 0x533   : > { %v4325_v20 = vadd.f32 -1.0, %v5396_v22 }
 0x534   : > { %v5398_v46 = vpop.eup %5397 }
 0x535   : > { %v4326_v51 = vadd.f32 -1.0, %v5398_v46  ;;  %v3134_v30 = vsel %vm3006_vm14, %v2970_v4, %v4325_v20 }
 0x537   : > { %v3135_v19 = vsel %vm3007_vm15, %v2973_v48, %v4326_v51 }
 0x538   : > { %v3151_v61 = vpack.c.bf16 %v3135_v19, %v3134_v30 }
 0x53a   : > { %4702 = vmatmul.mubr.bf16.gmra.mrb[156].mxu0 %v3151_v61 }
 0x59d   : > { %v4675_v6 = vpop.f32.mrb[128].mxu0 }
 0x59e   : > { %v3266_v13 = vadd.f32 %v4675_v6, %v7074_v16  ;;  %v3257_v29 = vpop.f32.mrb[129].mxu0 }
 0x59f   : > { %v3258_v25 = vadd.f32 %v7074_v16, %v3257_v29  ;;  %v4676_v54 = vpop.f32.mrb[130].mxu0 }
 0x5a0   : > { %v3420_v59 = vmul.f32 1.442695, %v3266_v13  ;;  %v3269_v52 = vadd.f32 %v4676_v54, %v7074_v16  ;;  %v3260_v37 = vpop.f32.mrb[131].mxu0  ;;  %vm3386_vm0 = vcmp.gt.f32.partialorder %v3266_v13, 0.0 }
 0x5a1   : > { %v3416_v43 = vmul.f32 1.442695, %v3258_v25  ;;  %v3261_v34 = vadd.f32 %v7074_v16, %v3260_v37  ;;  %vm3384_vm2 = vcmp.gt.f32.partialorder %v3258_v25, 0.0 }
 0x5a2   : > { %5399 = vpow2.f32 %v3420_v59  ;;  %v3422_v57 = vmul.f32 1.442695, %v3269_v52  ;;  %vm3387_vm1 = vcmp.gt.f32.partialorder %v3269_v52, 0.0 }
 0x5a3   : > { %5401 = vpow2.f32 %v3416_v43  ;;  %v3418_v8 = vmul.f32 1.442695, %v3261_v34  ;;  %vm3385_vm3 = vcmp.gt.f32.partialorder %v3261_v34, 0.0 }
 0x5a4   : > { %5403 = vpow2.f32 %v3422_v57 }
 0x5a5   : > { %5405 = vpow2.f32 %v3418_v8 }
 0x5ac   : > { %v5400_v62 = vpop.eup %5399 }
 0x5ad   : > { %v5402_v31 = vpop.eup %5401  ;;  %v4338_v33 = vadd.f32 -1.0, %v5400_v62  ;;  %v4679_v9 = vpop.f32.mrb[132].mxu0 }
 0x5ae   : > { %v5404_v14 = vpop.eup %5403  ;;  %v3282_v55 = vadd.f32 %v4679_v9, %v7074_v16  ;;  %v3273_v36 = vpop.f32.mrb[133].mxu0  ;;  %v4336_v12 = vadd.f32 -1.0, %v5402_v31 }
 0x5af   : > { %v5406_v45 = vpop.eup %5405  ;;  %v4339_v11 = vadd.f32 -1.0, %v5404_v14  ;;  %v3274_v15 = vadd.f32 %v7074_v16, %v3273_v36  ;;  %v4680_v18 = vpop.f32.mrb[134].mxu0  ;;  %v3514_v56 = vsel %vm3386_vm0, %v3266_v13, %v4338_v33 }
 0x5b0   : > { %v4337_v21 = vadd.f32 -1.0, %v5406_v45  ;;  %v3428_v47 = vmul.f32 1.442695, %v3282_v55  ;;  %v3285_v58 = vadd.f32 %v4680_v18, %v7074_v16  ;;  %v3276_v7 = vpop.f32.mrb[135].mxu0  ;;  %v3512_v44 = vsel %vm3384_vm2, %v3258_v25, %v4336_v12 }
 0x5b1   : > { %v3515_v28 = vsel %vm3387_vm1, %v3269_v52, %v4339_v11  ;;  %v3424_v50 = vmul.f32 1.442695, %v3274_v15  ;;  %v3277_v23 = vadd.f32 %v7074_v16, %v3276_v7  ;;  %vm3390_vm4 = vcmp.gt.f32.partialorder %v3282_v55, 0.0 }
 0x5b2   : > { %v3545_v41 = vpack.c.bf16 %v3515_v28, %v3514_v56  ;;  %5407 = vpow2.f32 %v3428_v47  ;;  %v3430_v27 = vmul.f32 1.442695, %v3285_v58  ;;  %v3513_v4 = vsel %vm3385_vm3, %v3261_v34, %v4337_v21 }
 0x5b3   : > { %5409 = vpow2.f32 %v3424_v50  ;;  %v3426_v35 = vmul.f32 1.442695, %v3277_v23  ;;  %v3544_v42 = vpack.c.bf16 %v3513_v4, %v3512_v44  ;;  %vm3388_vm5 = vcmp.gt.f32.partialorder %v3274_v15, 0.0 }
 0x5b4   : > { %5411 = vpow2.f32 %v3430_v27  ;;  %vm3389_vm6 = vcmp.gt.f32.partialorder %v3277_v23, 0.0  ;;  %vm3391_vm7 = vcmp.gt.f32.partialorder %v3285_v58, 0.0 }
 0x5b5   : > { %5413 = vpow2.f32 %v3426_v35  ;;  %4721 = vmatprep.mubr.bf16.mxu1 %v3544_v42 }
 0x5b6   : > { %4722 = vmatmul.mubr.bf16.vlgmr.msra.gmra.mrb[128].mxu1 %v3545_v41 }
 0x5bc   : > { %v5408_v53 = vpop.eup %5407 }
 0x5bd   : > { %v5410_v1 = vpop.eup %5409  ;;  %v4683_v2 = vpop.f32.mrb[136].mxu0  ;;  %v4342_v63 = vadd.f32 -1.0, %v5408_v53 }
 0x5be   : > { %v5412_v48 = vpop.eup %5411  ;;  %v4340_v24 = vadd.f32 -1.0, %v5410_v1  ;;  %v3298_v60 = vadd.f32 %v4683_v2, %v7074_v16  ;;  %v3289_v5 = vpop.f32.mrb[137].mxu0 }
 0x5bf   : > { %v5414_v39 = vpop.eup %5413  ;;  %v3290_v49 = vadd.f32 %v7074_v16, %v3289_v5  ;;  %v4684_v32 = vpop.f32.mrb[138].mxu0  ;;  %v4343_v10 = vadd.f32 -1.0, %v5412_v48  ;;  %v3518_v19 = vsel %vm3390_vm4, %v3282_v55, %v4342_v63 }
 0x5c0   : > { %v4341_v40 = vadd.f32 -1.0, %v5414_v39  ;;  %v3436_v26 = vmul.f32 1.442695, %v3298_v60  ;;  %v3301_v38 = vadd.f32 %v4684_v32, %v7074_v16  ;;  %v3292_v0 = vpop.f32.mrb[139].mxu0  ;;  %v3516_v20 = vsel %vm3388_vm5, %v3274_v15, %v4340_v24 }
 0x5c1   : > { %v3432_v17 = vmul.f32 1.442695, %v3290_v49  ;;  %v3293_v3 = vadd.f32 %v7074_v16, %v3292_v0  ;;  %v3519_v61 = vsel %vm3391_vm7, %v3285_v58, %v4343_v10  ;;  %vm3394_vm8 = vcmp.gt.f32.partialorder %v3298_v60, 0.0 }
 0x5c2   : > { %5415 = vpow2.f32 %v3436_v26  ;;  %v3438_v22 = vmul.f32 1.442695, %v3301_v38  ;;  %v3517_v46 = vsel %vm3389_vm6, %v3277_v23, %v4341_v40  ;;  %v3547_v6 = vpack.c.bf16 %v3519_v61, %v3518_v19 }
 0x5c3   : > { %5417 = vpow2.f32 %v3432_v17  ;;  %v3434_v51 = vmul.f32 1.442695, %v3293_v3  ;;  %v3546_v30 = vpack.c.bf16 %v3517_v46, %v3516_v20  ;;  %vm3392_vm9 = vcmp.gt.f32.partialorder %v3290_v49, 0.0 }
 0x5c4   : > { %5419 = vpow2.f32 %v3438_v22  ;;  %vm3393_vm10 = vcmp.gt.f32.partialorder %v3293_v3, 0.0  ;;  %vm3395_vm11 = vcmp.gt.f32.partialorder %v3301_v38, 0.0 }
 0x5c5   : > { %5421 = vpow2.f32 %v3434_v51  ;;  %4725 = vmatprep.mubr.bf16.mxu1 %v3546_v30 }
 0x5c6   : > { %4726 = vmatmul.mubr.bf16.gmra.mrb[132].mxu1 %v3547_v6 }
 0x5cc   : > { %v5416_v13 = vpop.eup %5415 }
 0x5cd   : > { %v5418_v29 = vpop.eup %5417  ;;  %v4687_v25 = vpop.f32.mrb[140].mxu0  ;;  %v4346_v34 = vadd.f32 -1.0, %v5416_v13 }
 0x5ce   : > { %v5420_v54 = vpop.eup %5419  ;;  %v4344_v59 = vadd.f32 -1.0, %v5418_v29  ;;  %v3314_v52 = vadd.f32 %v4687_v25, %v7074_v16  ;;  %v3305_v37 = vpop.f32.mrb[141].mxu0 }
 0x5cf   : > { %v5422_v43 = vpop.eup %5421  ;;  %v3306_v57 = vadd.f32 %v7074_v16, %v3305_v37  ;;  %v4688_v8 = vpop.f32.mrb[142].mxu0  ;;  %v4347_v62 = vadd.f32 -1.0, %v5420_v54  ;;  %v3522_v21 = vsel %vm3394_vm8, %v3298_v60, %v4346_v34 }
 0x5d0   : > { %v4345_v31 = vadd.f32 -1.0, %v5422_v43  ;;  %v3444_v33 = vmul.f32 1.442695, %v3314_v52  ;;  %v3317_v9 = vadd.f32 %v4688_v8, %v7074_v16  ;;  %v3308_v14 = vpop.f32.mrb[143].mxu0  ;;  %v3520_v11 = vsel %vm3392_vm9, %v3290_v49, %v4344_v59 }
 0x5d1   : > { %v3440_v55 = vmul.f32 1.442695, %v3306_v57  ;;  %v3309_v36 = vadd.f32 %v7074_v16, %v3308_v14  ;;  %v3523_v47 = vsel %vm3395_vm11, %v3301_v38, %v4347_v62  ;;  %vm3398_vm12 = vcmp.gt.f32.partialorder %v3314_v52, 0.0 }
 0x5d2   : > { %5423 = vpow2.f32 %v3444_v33  ;;  %v3446_v45 = vmul.f32 1.442695, %v3317_v9  ;;  %v3521_v15 = vsel %vm3393_vm10, %v3293_v3, %v4345_v31  ;;  %v3549_v58 = vpack.c.bf16 %v3523_v47, %v3522_v21 }
 0x5d3   : > { %5425 = vpow2.f32 %v3440_v55  ;;  %v3442_v18 = vmul.f32 1.442695, %v3309_v36  ;;  %v3548_v12 = vpack.c.bf16 %v3521_v15, %v3520_v11  ;;  %vm3396_vm13 = vcmp.gt.f32.partialorder %v3306_v57, 0.0 }
 0x5d4   : > { %5427 = vpow2.f32 %v3446_v45  ;;  %vm3397_vm14 = vcmp.gt.f32.partialorder %v3309_v36, 0.0  ;;  %vm3399_vm15 = vcmp.gt.f32.partialorder %v3317_v9, 0.0 }
 0x5d5   : > { %5429 = vpow2.f32 %v3442_v18  ;;  %4729 = vmatprep.mubr.bf16.mxu1 %v3548_v12 }
 0x5d6   : > { %4730 = vmatmul.mubr.bf16.gmra.mrb[136].mxu1 %v3549_v58 }
 0x5dc   : > { %v5424_v7 = vpop.eup %5423 }
 0x5dd   : > { %v5426_v56 = vpop.eup %5425  ;;  %v4691_v28 = vpop.f32.mrb[144].mxu0  ;;  %v4350_v44 = vadd.f32 -1.0, %v5424_v7 }
 0x5de   : > { %v5428_v50 = vpop.eup %5427  ;;  %v4348_v23 = vadd.f32 -1.0, %v5426_v56  ;;  %v3330_v41 = vadd.f32 %v4691_v28, %v7074_v16  ;;  %v3321_v27 = vpop.f32.mrb[145].mxu0 }
 0x5df   : > { %v5430_v35 = vpop.eup %5429  ;;  %v3322_v4 = vadd.f32 %v7074_v16, %v3321_v27  ;;  %v4692_v42 = vpop.f32.mrb[146].mxu0  ;;  %v4351_v53 = vadd.f32 -1.0, %v5428_v50  ;;  %v3526_v40 = vsel %vm3398_vm12, %v3314_v52, %v4350_v44 }
 0x5e0   : > { %v4349_v1 = vadd.f32 -1.0, %v5430_v35  ;;  %v3452_v2 = vmul.f32 1.442695, %v3330_v41  ;;  %v3333_v48 = vadd.f32 %v4692_v42, %v7074_v16  ;;  %v3324_v24 = vpop.f32.mrb[147].mxu0  ;;  %v3524_v63 = vsel %vm3396_vm13, %v3306_v57, %v4348_v23 }
 0x5e1   : > { %v3448_v60 = vmul.f32 1.442695, %v3322_v4  ;;  %v3325_v5 = vadd.f32 %v7074_v16, %v3324_v24  ;;  %v3527_v26 = vsel %vm3399_vm15, %v3317_v9, %v4351_v53  ;;  %vm3402_vm0 = vcmp.gt.f32.partialorder %v3330_v41, 0.0 }
 0x5e2   : > { %5431 = vpow2.f32 %v3452_v2  ;;  %v3454_v39 = vmul.f32 1.442695, %v3333_v48  ;;  %v3525_v49 = vsel %vm3397_vm14, %v3309_v36, %v4349_v1  ;;  %v3551_v38 = vpack.c.bf16 %v3527_v26, %v3526_v40 }
 0x5e3   : > { %5433 = vpow2.f32 %v3448_v60  ;;  %v3450_v32 = vmul.f32 1.442695, %v3325_v5  ;;  %v3550_v10 = vpack.c.bf16 %v3525_v49, %v3524_v63  ;;  %vm3400_vm1 = vcmp.gt.f32.partialorder %v3322_v4, 0.0 }
 0x5e4   : > { %5435 = vpow2.f32 %v3454_v39  ;;  %vm3401_vm2 = vcmp.gt.f32.partialorder %v3325_v5, 0.0  ;;  %vm3403_vm3 = vcmp.gt.f32.partialorder %v3333_v48, 0.0 }
 0x5e5   : > { %5437 = vpow2.f32 %v3450_v32  ;;  %4733 = vmatprep.mubr.bf16.mxu1 %v3550_v10 }
 0x5e6   : > { %4734 = vmatmul.mubr.bf16.gmra.mrb[140].mxu1 %v3551_v38 }
 0x5ec   : > { %v5432_v0 = vpop.eup %5431 }
 0x5ed   : > { %v5434_v17 = vpop.eup %5433  ;;  %v4695_v3 = vpop.f32.mrb[148].mxu0  ;;  %v4354_v19 = vadd.f32 -1.0, %v5432_v0 }
 0x5ee   : > { %v5436_v22 = vpop.eup %5435  ;;  %v4352_v20 = vadd.f32 -1.0, %v5434_v17  ;;  %v3346_v46 = vadd.f32 %v4695_v3, %v7074_v16  ;;  %v3337_v51 = vpop.f32.mrb[149].mxu0 }
 0x5ef   : > { %v5438_v30 = vpop.eup %5437  ;;  %v3338_v61 = vadd.f32 %v7074_v16, %v3337_v51  ;;  %v4696_v6 = vpop.f32.mrb[150].mxu0  ;;  %v4355_v13 = vadd.f32 -1.0, %v5436_v22  ;;  %v3530_v31 = vsel %vm3402_vm0, %v3330_v41, %v4354_v19 }
 0x5f0   : > { %v4353_v29 = vadd.f32 -1.0, %v5438_v30  ;;  %v3460_v25 = vmul.f32 1.442695, %v3346_v46  ;;  %v3349_v54 = vadd.f32 %v4696_v6, %v7074_v16  ;;  %v3340_v59 = vpop.f32.mrb[151].mxu0  ;;  %v3528_v34 = vsel %vm3400_vm1, %v3322_v4, %v4352_v20 }
 0x5f1   : > { %v3456_v52 = vmul.f32 1.442695, %v3338_v61  ;;  %v3341_v37 = vadd.f32 %v7074_v16, %v3340_v59  ;;  %v3531_v33 = vsel %vm3403_vm3, %v3333_v48, %v4355_v13  ;;  %vm3406_vm4 = vcmp.gt.f32.partialorder %v3346_v46, 0.0 }
 0x5f2   : > { %5439 = vpow2.f32 %v3460_v25  ;;  %v3462_v43 = vmul.f32 1.442695, %v3349_v54  ;;  %v3529_v57 = vsel %vm3401_vm2, %v3325_v5, %v4353_v29  ;;  %v3553_v9 = vpack.c.bf16 %v3531_v33, %v3530_v31 }
 0x5f3   : > { %5441 = vpow2.f32 %v3456_v52  ;;  %v3458_v8 = vmul.f32 1.442695, %v3341_v37  ;;  %v3552_v62 = vpack.c.bf16 %v3529_v57, %v3528_v34  ;;  %vm3404_vm5 = vcmp.gt.f32.partialorder %v3338_v61, 0.0 }
 0x5f4   : > { %5443 = vpow2.f32 %v3462_v43  ;;  %vm3405_vm6 = vcmp.gt.f32.partialorder %v3341_v37, 0.0  ;;  %vm3407_vm7 = vcmp.gt.f32.partialorder %v3349_v54, 0.0 }
 0x5f5   : > { %5445 = vpow2.f32 %v3458_v8  ;;  %4737 = vmatprep.mubr.bf16.mxu1 %v3552_v62 }
 0x5f6   : > { %4738 = vmatmul.mubr.bf16.gmra.mrb[144].mxu1 %v3553_v9 }
 0x5fc   : > { %v5440_v14 = vpop.eup %5439 }
 0x5fd   : > { %v5442_v55 = vpop.eup %5441  ;;  %v4699_v36 = vpop.f32.mrb[152].mxu0  ;;  %v4358_v21 = vadd.f32 -1.0, %v5440_v14 }
 0x5fe   : > { %v5444_v45 = vpop.eup %5443  ;;  %v4356_v11 = vadd.f32 -1.0, %v5442_v55  ;;  %v3362_v15 = vadd.f32 %v4699_v36, %v7074_v16  ;;  %v3353_v18 = vpop.f32.mrb[153].mxu0  ;;  %v7117_v36 = vld [vmem:[%s7282_s29] ss:$0 sm:$0xff] }
 0x5ff   : > { %v5446_v12 = vpop.eup %5445  ;;  %v3354_v47 = vadd.f32 %v7074_v16, %v3353_v18  ;;  %v4700_v58 = vpop.f32.mrb[154].mxu0  ;;  %v4359_v7 = vadd.f32 -1.0, %v5444_v45  ;;  %v3534_v1 = vsel %vm3406_vm4, %v3346_v46, %v4358_v21 }
 0x600   : > { %v4357_v56 = vadd.f32 -1.0, %v5446_v12  ;;  %v3468_v28 = vmul.f32 1.442695, %v3362_v15  ;;  %v3365_v50 = vadd.f32 %v4700_v58, %v7074_v16  ;;  %v3356_v23 = vpop.f32.mrb[155].mxu0  ;;  %v3532_v44 = vsel %vm3404_vm5, %v3338_v61, %v4356_v11 }
 0x601   : > { %v3464_v41 = vmul.f32 1.442695, %v3354_v47  ;;  %v3357_v27 = vadd.f32 %v7074_v16, %v3356_v23  ;;  %v3535_v2 = vsel %vm3407_vm7, %v3349_v54, %v4359_v7  ;;  %vm3410_vm8 = vcmp.gt.f32.partialorder %v3362_v15, 0.0 }
 0x602   : > { %5447 = vpow2.f32 %v3468_v28  ;;  %v3470_v35 = vmul.f32 1.442695, %v3365_v50  ;;  %v3533_v4 = vsel %vm3405_vm6, %v3341_v37, %v4357_v56  ;;  %v3555_v48 = vpack.c.bf16 %v3535_v2, %v3534_v1 }
 0x603   : > { %5449 = vpow2.f32 %v3464_v41  ;;  %v3466_v42 = vmul.f32 1.442695, %v3357_v27  ;;  %v3554_v53 = vpack.c.bf16 %v3533_v4, %v3532_v44  ;;  %vm3408_vm9 = vcmp.gt.f32.partialorder %v3354_v47, 0.0 }
 0x604   : > { %5451 = vpow2.f32 %v3470_v35  ;;  %vm3409_vm10 = vcmp.gt.f32.partialorder %v3357_v27, 0.0  ;;  %vm3411_vm11 = vcmp.gt.f32.partialorder %v3365_v50, 0.0 }
 0x605   : > { %5453 = vpow2.f32 %v3466_v42  ;;  %4741 = vmatprep.mubr.bf16.mxu1 %v3554_v53 }
 0x606   : > { %4742 = vmatmul.mubr.bf16.gmra.mrb[148].mxu1 %v3555_v48 }
 0x60c   : > { %v5448_v24 = vpop.eup %5447 }
 0x60d   : > { %v5450_v60 = vpop.eup %5449  ;;  %v4703_v5 = vpop.f32.mrb[156].mxu0  ;;  %v4362_v40 = vadd.f32 -1.0, %v5448_v24 }
 0x60e   : > { %v5452_v39 = vpop.eup %5451  ;;  %v4360_v63 = vadd.f32 -1.0, %v5450_v60  ;;  %v3378_v49 = vadd.f32 %v4703_v5, %v7074_v16  ;;  %v3369_v32 = vpop.f32.mrb[157].mxu0 }
 0x60f   : > { %v5454_v10 = vpop.eup %5453  ;;  %v3370_v26 = vadd.f32 %v7074_v16, %v3369_v32  ;;  %v4704_v38 = vpop.f32.mrb[158].mxu0  ;;  %v4363_v0 = vadd.f32 -1.0, %v5452_v39  ;;  %v3538_v29 = vsel %vm3410_vm8, %v3362_v15, %v4362_v40 }
 0x610   : > { %v4361_v17 = vadd.f32 -1.0, %v5454_v10  ;;  %v3476_v3 = vmul.f32 1.442695, %v3378_v49  ;;  %v3381_v22 = vadd.f32 %v4704_v38, %v7074_v16  ;;  %v3372_v20 = vpop.f32.mrb[159].mxu0  ;;  %v3536_v19 = vsel %vm3408_vm9, %v3354_v47, %v4360_v63 }
 0x611   : > { %v3472_v46 = vmul.f32 1.442695, %v3370_v26  ;;  %v3373_v51 = vadd.f32 %v7074_v16, %v3372_v20  ;;  %v3539_v25 = vsel %vm3411_vm11, %v3365_v50, %v4363_v0  ;;  %vm3414_vm12 = vcmp.gt.f32.partialorder %v3378_v49, 0.0 }
 0x612   : > { %5455 = vpow2.f32 %v3476_v3  ;;  %v3478_v30 = vmul.f32 1.442695, %v3381_v22  ;;  %v3537_v61 = vsel %vm3409_vm10, %v3357_v27, %v4361_v17  ;;  %v3557_v54 = vpack.c.bf16 %v3539_v25, %v3538_v29 }
 0x613   : > { %5457 = vpow2.f32 %v3472_v46  ;;  %v3474_v6 = vmul.f32 1.442695, %v3373_v51  ;;  %v3556_v13 = vpack.c.bf16 %v3537_v61, %v3536_v19  ;;  %vm3415_vm13 = vcmp.gt.f32.partialorder %v3381_v22, 0.0 }
 0x614   : > { %5459 = vpow2.f32 %v3478_v30  ;;  %vm3412_vm14 = vcmp.gt.f32.partialorder %v3370_v26, 0.0  ;;  %vm3413_vm15 = vcmp.gt.f32.partialorder %v3373_v51, 0.0 }
 0x615   : > { %5461 = vpow2.f32 %v3474_v6  ;;  %4745 = vmatprep.mubr.bf16.mxu1 %v3556_v13 }
 0x616   : > { %4746 = vmatmul.mubr.bf16.gmra.mrb[152].mxu1 %v3557_v54 }
 0x61c   : > { %v5456_v59 = vpop.eup %5455 }
 0x61d   : > { %v5458_v52 = vpop.eup %5457  ;;  %v4366_v37 = vadd.f32 -1.0, %v5456_v59 }
 0x61e   : > { %v5460_v16 = vpop.eup %5459  ;;  %v4364_v43 = vadd.f32 -1.0, %v5458_v52 }
 0x61f   : > { %v5462_v34 = vpop.eup %5461  ;;  %v4367_v57 = vadd.f32 -1.0, %v5460_v16  ;;  %v3542_v62 = vsel %vm3414_vm12, %v3378_v49, %v4366_v37 }
 0x620   : > { %v4365_v8 = vadd.f32 -1.0, %v5462_v34  ;;  %v3540_v33 = vsel %vm3412_vm14, %v3370_v26, %v4364_v43 }
 0x621   : > { %v3543_v31 = vsel %vm3415_vm13, %v3381_v22, %v4367_v57 }
 0x622   : > { %v3541_v9 = vsel %vm3413_vm15, %v3373_v51, %v4365_v8  ;;  %v3559_v14 = vpack.c.bf16 %v3543_v31, %v3542_v62 }
 0x623   : > { %v3558_v55 = vpack.c.bf16 %v3541_v9, %v3540_v33 }
 0x625   : > { %4749 = vmatprep.mubr.bf16.mxu1 %v3558_v55 }
 0x626   : > { %4750 = vmatmul.mubr.bf16.gmra.mrb[156].mxu1 %v3559_v14 }
 0x689   : > { %v4723_v45 = vpop.f32.mrb[128].mxu1 }
 0x68a   : > { %v3674_v11 = vadd.f32 %v4723_v45, %v7117_v36  ;;  %v3665_v15 = vpop.f32.mrb[129].mxu1 }
 0x68b   : > { %v3666_v18 = vadd.f32 %v7117_v36, %v3665_v15  ;;  %v4724_v12 = vpop.f32.mrb[130].mxu1 }
 0x68c   : > { %3796 = vst [vmem:[%s6953_s3 + $0x20] sm:$0xff] %v3674_v11  ;;  %v3677_v21 = vadd.f32 %v4724_v12, %v7117_v36  ;;  %v3668_v47 = vpop.f32.mrb[131].mxu1 }
 0x68d   : > { %3792 = vst [vmem:[%s6953_s3] sm:$0xff] %v3666_v18  ;;  %v3669_v58 = vadd.f32 %v7117_v36, %v3668_v47 }
 0x68e   : > { %3798 = vst [vmem:[%s6953_s3 + $0x30] sm:$0xff] %v3677_v21 }
 0x68f   : > { %3794 = vst [vmem:[%s6953_s3 + $0x10] sm:$0xff] %v3669_v58 }
 0x699   : > { %v4727_v7 = vpop.f32.mrb[132].mxu1 }
 0x69a   : > { %v3690_v56 = vadd.f32 %v4727_v7, %v7117_v36  ;;  %v3681_v28 = vpop.f32.mrb[133].mxu1 }
 0x69b   : > { %v3682_v50 = vadd.f32 %v7117_v36, %v3681_v28  ;;  %v4728_v23 = vpop.f32.mrb[134].mxu1 }
 0x69c   : > { %3804 = vst [vmem:[%s6953_s3 + $0x60] sm:$0xff] %v3690_v56  ;;  %v3693_v41 = vadd.f32 %v4728_v23, %v7117_v36  ;;  %v3684_v27 = vpop.f32.mrb[135].mxu1 }
 0x69d   : > { %3800 = vst [vmem:[%s6953_s3 + $0x40] sm:$0xff] %v3682_v50  ;;  %v3685_v35 = vadd.f32 %v7117_v36, %v3684_v27 }
 0x69e   : > { %3806 = vst [vmem:[%s6953_s3 + $0x70] sm:$0xff] %v3693_v41 }
 0x69f   : > { %3802 = vst [vmem:[%s6953_s3 + $0x50] sm:$0xff] %v3685_v35 }
 0x6a9   : > { %v4731_v44 = vpop.f32.mrb[136].mxu1 }
 0x6aa   : > { %v3706_v4 = vadd.f32 %v4731_v44, %v7117_v36  ;;  %v3697_v42 = vpop.f32.mrb[137].mxu1 }
 0x6ab   : > { %v3698_v53 = vadd.f32 %v7117_v36, %v3697_v42  ;;  %v4732_v1 = vpop.f32.mrb[138].mxu1 }
 0x6ac   : > { %3812 = vst [vmem:[%s6953_s3 + $0xa0] sm:$0xff] %v3706_v4  ;;  %v3709_v2 = vadd.f32 %v4732_v1, %v7117_v36  ;;  %v3700_v48 = vpop.f32.mrb[139].mxu1 }
 0x6ad   : > { %3808 = vst [vmem:[%s6953_s3 + $0x80] sm:$0xff] %v3698_v53  ;;  %v3701_v24 = vadd.f32 %v7117_v36, %v3700_v48 }
 0x6ae   : > { %3814 = vst [vmem:[%s6953_s3 + $0xb0] sm:$0xff] %v3709_v2 }
 0x6af   : > { %3810 = vst [vmem:[%s6953_s3 + $0x90] sm:$0xff] %v3701_v24 }
 0x6b9   : > { %v4735_v60 = vpop.f32.mrb[140].mxu1 }
 0x6ba   : > { %v3722_v5 = vadd.f32 %v4735_v60, %v7117_v36  ;;  %v3713_v39 = vpop.f32.mrb[141].mxu1 }
 0x6bb   : > { %v3714_v63 = vadd.f32 %v7117_v36, %v3713_v39  ;;  %v4736_v49 = vpop.f32.mrb[142].mxu1 }
 0x6bc   : > { %3820 = vst [vmem:[%s6953_s3 + $0xe0] sm:$0xff] %v3722_v5  ;;  %v3725_v32 = vadd.f32 %v4736_v49, %v7117_v36  ;;  %v3716_v10 = vpop.f32.mrb[143].mxu1 }
 0x6bd   : > { %3816 = vst [vmem:[%s6953_s3 + $0xc0] sm:$0xff] %v3714_v63  ;;  %v3717_v40 = vadd.f32 %v7117_v36, %v3716_v10 }
 0x6be   : > { %3822 = vst [vmem:[%s6953_s3 + $0xf0] sm:$0xff] %v3725_v32 }
 0x6bf   : > { %3818 = vst [vmem:[%s6953_s3 + $0xd0] sm:$0xff] %v3717_v40 }
 0x6c9   : > { %v4739_v26 = vpop.f32.mrb[144].mxu1 }
 0x6ca   : > { %v3738_v38 = vadd.f32 %v4739_v26, %v7117_v36  ;;  %v3729_v0 = vpop.f32.mrb[145].mxu1 }
 0x6cb   : > { %v3730_v17 = vadd.f32 %v7117_v36, %v3729_v0  ;;  %v4740_v3 = vpop.f32.mrb[146].mxu1 }
 0x6cc   : > { %3828 = vst [vmem:[%s6953_s3 + $0x120] sm:$0xff] %v3738_v38  ;;  %v3741_v22 = vadd.f32 %v4740_v3, %v7117_v36  ;;  %v3732_v20 = vpop.f32.mrb[147].mxu1 }
 0x6cd   : > { %3824 = vst [vmem:[%s6953_s3 + $0x100] sm:$0xff] %v3730_v17  ;;  %v3733_v46 = vadd.f32 %v7117_v36, %v3732_v20 }
 0x6ce   : > { %3830 = vst [vmem:[%s6953_s3 + $0x130] sm:$0xff] %v3741_v22 }
 0x6cf   : > { %3826 = vst [vmem:[%s6953_s3 + $0x110] sm:$0xff] %v3733_v46 }
 0x6d9   : > { %v4743_v51 = vpop.f32.mrb[148].mxu1 }
 0x6da   : > { %v3754_v30 = vadd.f32 %v4743_v51, %v7117_v36  ;;  %v3745_v19 = vpop.f32.mrb[149].mxu1 }
 0x6db   : > { %v3746_v61 = vadd.f32 %v7117_v36, %v3745_v19  ;;  %v4744_v6 = vpop.f32.mrb[150].mxu1 }
 0x6dc   : > { %3836 = vst [vmem:[%s6953_s3 + $0x160] sm:$0xff] %v3754_v30  ;;  %v3757_v13 = vadd.f32 %v4744_v6, %v7117_v36  ;;  %v3748_v29 = vpop.f32.mrb[151].mxu1 }
 0x6dd   : > { %3832 = vst [vmem:[%s6953_s3 + $0x140] sm:$0xff] %v3746_v61  ;;  %v3749_v25 = vadd.f32 %v7117_v36, %v3748_v29 }
 0x6de   : > { %3838 = vst [vmem:[%s6953_s3 + $0x170] sm:$0xff] %v3757_v13 }
 0x6df   : > { %3834 = vst [vmem:[%s6953_s3 + $0x150] sm:$0xff] %v3749_v25 }
 0x6e9   : > { %v4747_v54 = vpop.f32.mrb[152].mxu1 }
 0x6ea   : > { %v3770_v59 = vadd.f32 %v4747_v54, %v7117_v36  ;;  %v3761_v52 = vpop.f32.mrb[153].mxu1 }
 0x6eb   : > { %v3762_v37 = vadd.f32 %v7117_v36, %v3761_v52  ;;  %v4748_v16 = vpop.f32.mrb[154].mxu1 }
 0x6ec   : > { %3844 = vst [vmem:[%s6953_s3 + $0x1a0] sm:$0xff] %v3770_v59  ;;  %v3773_v43 = vadd.f32 %v4748_v16, %v7117_v36  ;;  %v3764_v34 = vpop.f32.mrb[155].mxu1 }
 0x6ed   : > { %3840 = vst [vmem:[%s6953_s3 + $0x180] sm:$0xff] %v3762_v37  ;;  %v3765_v57 = vadd.f32 %v7117_v36, %v3764_v34 }
 0x6ee   : > { %3846 = vst [vmem:[%s6953_s3 + $0x1b0] sm:$0xff] %v3773_v43 }
 0x6ef   : > { %3842 = vst [vmem:[%s6953_s3 + $0x190] sm:$0xff] %v3765_v57 }
 0x6f9   : > { %v4751_v8 = vpop.f32.mrb[156].mxu1 }
 0x6fa   : > { %v3786_v62 = vadd.f32 %v4751_v8, %v7117_v36  ;;  %v3777_v31 = vpop.f32.mrb[157].mxu1 }
 0x6fb   : > { %v3778_v33 = vadd.f32 %v7117_v36, %v3777_v31  ;;  %v4752_v9 = vpop.f32.mrb[158].mxu1 }
 0x6fc   : > { %3852 = vst [vmem:[%s6953_s3 + $0x1e0] sm:$0xff] %v3786_v62  ;;  %v3789_v14 = vadd.f32 %v4752_v9, %v7117_v36  ;;  %v3780_v55 = vpop.f32.mrb[159].mxu1 }
 0x6fd   : > { %3848 = vst [vmem:[%s6953_s3 + $0x1c0] sm:$0xff] %v3778_v33  ;;  %v3781_v45 = vadd.f32 %v7117_v36, %v3780_v55 }
 0x6fe   : > { %3854 = vst [vmem:[%s6953_s3 + $0x1f0] sm:$0xff] %v3789_v14 }
 0x6ff   : > { %3850 = vst [vmem:[%s6953_s3 + $0x1d0] sm:$0xff] %v3781_v45 }
 0x700   : > { %5674 = shalt.err (!%p5671_p7)
}
 0x701   : > { %s5675_s3 = scalar_lea.hbm %s7184_s22, 8192  ;;  %s5679_s29 = scalar_lea.hbm %s7283_s13, 32768 }
 0x702   : > { %p5676_p6 = scmp.ne.s32.totalorder %s7184_s22, %s5675_s3  ;;  %p5680_p3 = scmp.lt.u32.totalorder %s7184_s22, %s7283_s13 }
 0x703   : > { %p5681_p5 = scmp.lt.u32.totalorder %s5679_s29, %s5675_s3  ;;  %p5683_p0 = scmp.lt.u32.totalorder %s5675_s3, %s7184_s22 }
 0x704   : > { %p5677_p8 = pnand %p5676_p6, %p7284_p4 }
 0x705   : > { %p5682_p2 = por %p5681_p5, %p5680_p3 }
 0x706   : > { %p5678_p9 = pneg %p5677_p8 }
 0x707   : > { %p5684_p10 = por %p5683_p0, %p5682_p2 }
 0x709   : > { %p5685_p1 = pnand %p5684_p10, %p5678_p9 }
 0x70b   : > { %5688 = shalt.err (!%p5685_p1)
}
 0x70c   : > { %s5755_s1 = smov 256   ;;  %s5756_s17 = smov 16  }
 0x70d   : > { %4782 = dma.vmem_to_hbm [thread:$0]  (%p7284_p4), %s7186_s18, 8192, %s7184_s22, %s3857_s14, %s5755_s1, %s5755_s1, %s5756_s17  }
 0x70e PF: > { %p4824_p11 = scmp.ge.s32.totalorder %s5739_s28, 2  ;;  %s3886_s20 = sand.u32 1, %s5727_s25  }
 0x70f   : > { %p7285_p12 = scmp.ne.s32.totalorder %s7270_s12, 0  ;;  %s3887_s10 = scalar_lea.sflag [#allocation4], %s3886_s20 }
 0x711   : > { %p4808_p13 = pnand %p4824_p11, %p7285_p12 }
 0x713   : > { %5722 = dma.done.wait (!%p4808_p13), %s3887_s10, 8192  }
 0x714   : > { %5724 = vsyncadd (!%p4808_p13), %s3887_s10, 4294959104  ;;  %p29_p7 = scmp.ge.s32.totalorder %s6016_s16, 6   ;;  %s7286_s25 = smov %s5731_s26 }
 0x715   : > { %s7287_s26 = smov %s5735_s27  ;;  %s7288_s27 = smov %s6027_s24 }
 0x716   : > { %s7289_s28 = smov %s6016_s16  ;;  %31 = sbr.rel (!%p29_p7) target bundleno = 16 (0x10), region = 141 }
 0x71d   :  { %3892 = vsyncpa [#allocation3], 1 }
 0x71e   :  { %3894 = vsyncpa [#allocation3 + $0x1], 1 }
 0x71f   :  { %3895 = vsyncpa [#allocation6], 1 }
 0x720   :  { %3896 = vsyncpa [#allocation9], 1 }
 0x721   :  { %3897 = vsyncpa [#allocation12], 1 }
 0x722   :  { %3898 = vsyncpa [#allocation4], 1 }
 0x723   :  { %3900 = vsyncpa [#allocation4 + $0x1], 1 }

</bundles_post_ra>
